<compile_context>
chip_gen: v5e
topology: v5e:2x2
jax: 0.10.0
libtpu: 0.0.40
codegen_flags: <defaults>
</compile_context>

<pallas_src>
import functools
import math

import jax
import jax.numpy as jnp
from jax import lax
from jax.experimental import pallas as pl
from jax.experimental.pallas import tpu as pltpu

EPS = 1e-7         # manifold.eps[float32]
MAX_NORM = 1000.0  # manifold.max_norm (torch.renorm maxnorm)


# ----------------------------- in-kernel math -----------------------------

def _arcosh(z):
    z = jnp.maximum(z, 1.0 + EPS)
    return jnp.log(z + jnp.sqrt(z * z - 1.0))


def _sinh(t):
    # One EUP exp + one reciprocal instead of two exps.
    e = jnp.exp(t)
    return 0.5 * (e - pl.reciprocal(e, approx=False))


def _log_map_zero_tail(head, tail, c):
    """manifold.log_map_zero + normalize_tangent_zero.

    Returns only the spatial part; the time coordinate of the result is
    exactly 0 (so it is simply omitted / kept as an all-zero lane)."""
    sqrt_c = jnp.float32(math.sqrt(c))
    dist = sqrt_c * _arcosh(head / sqrt_c + EPS)
    denom = jnp.sqrt(
        jnp.maximum(jnp.sum(tail * tail, axis=-1, keepdims=True), EPS))
    return tail * (dist / denom)


def _exp_map_zero(tail, c):
    """manifold.exp_map_zero of a tangent with zero time coordinate, followed
    by manifold.normalize (renorm spatial part, recompute time coordinate).

    `tail` may contain zero-padding lanes (and an all-zero time lane); they
    stay exactly zero.  Returns (head [rows,1], spatial [rows, lanes])."""
    sqrt_c = jnp.float32(math.sqrt(c))
    sq = jnp.sum(tail * tail, axis=-1, keepdims=True)
    lnorm = jnp.sqrt(jnp.maximum(sq + EPS, 1e-6))
    theta = jnp.minimum(lnorm, 50.0) / sqrt_c
    s = _sinh(theta)
    res_tail = tail * (sqrt_c * s / lnorm)
    # Analytic ||res_tail|| (avoids a second cross-lane reduction).
    tnorm = sqrt_c * s * jnp.sqrt(sq) / lnorm
    scale = jnp.where(tnorm > MAX_NORM, MAX_NORM / jnp.maximum(tnorm, EPS), 1.0)
    res_tail = res_tail * scale
    tnorm = tnorm * scale
    head = jnp.sqrt(c + tnorm * tnorm)
    return head, res_tail


# --------------------------------- kernels ---------------------------------

def _linear_kernel(xh_ref, xt_ref, w_ref, h_ref, *, c_in):
    """LorentzLinear (matvec_regular, use_bias=False, eval-mode dropout).

    xh: [TL, 1] time coords, xt: [TL, Fp_in] spatial coords (zero padded),
    w:  [Fp_in, Fp_h] pre-transposed weight, shifted so outputs land in
        lanes 1..F_out-1 (lane 0 reserved for the time coordinate),
    h:  [TL, Fp_h] output slab: lane 0 = time coord, lanes 1.. = spatial."""
    u_tail = _log_map_zero_tail(xh_ref[...], xt_ref[...], c_in)
    mx = jnp.dot(u_tail, w_ref[...], preferred_element_type=jnp.float32)
    # concat(0-head, mx) -> normalize_tangent_zero -> exp_map_zero -> normalize
    # (lane 0 of mx is already 0 thanks to the shifted weight padding).
    h_head, h_tail = _exp_map_zero(mx, c_in)
    # (matvec_regular's where(all-zero) guard is a forward no-op: head > 0.)
    lane = lax.broadcasted_iota(jnp.int32, h_tail.shape, 1)
    h_ref[...] = jnp.where(lane == 0, h_head, h_tail).astype(h_ref.dtype)


def _agg_kernel(adj_ref, h_ref, out_ref, acc_ref, *, c_in, c_out, compute_dtype):
    """LorentzAgg (dense spmm + Lorentz centroid) + LorentzAct + lorentz2poincare.

    Grid = (row tiles, K tiles); K is the reduction axis (last, "arbitrary")."""
    k = pl.program_id(1)
    sqrt_c_in = jnp.float32(math.sqrt(c_in))

    @pl.when(k == 0)
    def _init():
        acc_ref[...] = jnp.zeros_like(acc_ref)

    # Dominant matmul: low-precision inputs, f32 accumulation on the MXU.
    acc_ref[...] += jnp.dot(adj_ref[...].astype(compute_dtype), h_ref[...],
                            preferred_element_type=jnp.float32)

    @pl.when(k == pl.num_programs(1) - 1)
    def _finalize():
        s = acc_ref[...]                       # [TM, Fp_h]; lane 0 = time sum
        s_head = s[:, :1]                      # offset-0 lane slice (cheap)
        lane = lax.broadcasted_iota(jnp.int32, s.shape, 1)
        s0 = jnp.where(lane == 0, 0.0, s)      # spatial part (padding stays 0)

        # --- LorentzAgg.lorentz_centroid ---
        x_inner = jnp.sum(s0 * s0, axis=-1, keepdims=True) - s_head * s_head
        coeff = sqrt_c_in * lax.rsqrt(jnp.maximum(jnp.abs(x_inner), EPS))
        g_head = coeff * s_head
        g0 = coeff * s0

        # --- LorentzAct: log_map_zero(c_in) -> ReLU -> normalize_tangent_zero
        #                 -> exp_map_zero(c_out) ---
        dist = sqrt_c_in * _arcosh(g_head / sqrt_c_in + EPS)
        denom = jnp.sqrt(
            jnp.maximum(jnp.sum(g0 * g0, axis=-1, keepdims=True), EPS))
        t = jnp.maximum(g0 * (dist / denom), 0.0)    # time lane stays exactly 0
        o_head, o_tail = _exp_map_zero(t, c_out)

        # --- lorentz2poincare(h, c_in): spatial / (time + sqrt(c_in)) ---
        out_ref[...] = (o_tail * pl.reciprocal(o_head + sqrt_c_in, approx=True)
                        ).astype(out_ref.dtype)


# -------------------------------- wrapper ----------------------------------

def _round_up(a, b):
    return (a + b - 1) // b * b


def _pick_tile(n, candidates):
    for t in candidates:
        if n % t == 0:
            return t
    return n


def _pad2(a, rows, cols):
    r, c = rows - a.shape[0], cols - a.shape[1]
    if r == 0 and c == 0:
        return a
    return jnp.pad(a, ((0, r), (0, c)))


def lorentz_graph_decoder(x, adj, weight, *, c_in=1.0, c_out=1.0,
                          agg_dtype=jnp.bfloat16):
    """LorentzGraphDecoder forward (use_att=False).

    x:      [N, F_in]          hyperboloid points (time coordinate first)
    adj:    [N, N]             dense aggregation weights (torch.spmm stand-in)
    weight: [F_out-1, F_in-1]  LorentzLinear weight (F_out = out_features + 1)
    returns poincare_h: [N, F_out-1] float32
    """
    N, F_in = x.shape
    F_out_m1, F_in_m1 = weight.shape
    assert F_in_m1 == F_in - 1

    LANE = 128
    f32 = jnp.float32
    Fp_in = _round_up(F_in_m1, LANE)
    Fp_h = _round_up(F_out_m1 + 1, LANE)    # +1: lane 0 carries the time coord
    Np = _round_up(N, LANE)

    # Tile sizes: conservative enough for v7x's 64 MiB physical / 32 MiB scoped
    # VMEM (double-buffered adj f32 + h + accumulator stay under a few MiB even
    # at TM=256, TK=1024), and they also fit v5e/v6e defaults.
    TL = _pick_tile(Np, (512, 256, 128))          # linear-pass row tile
    TM = _pick_tile(Np, (256, 128))               # agg output-row tile
    TK = _pick_tile(Np, (1024, 512, 256, 128))    # agg reduction tile (adj cols)

    # Lane-dense zero-padded slabs; head/tail pre-split so kernels never slice
    # the lane axis at offset 1.
    x = x.astype(f32)
    x_head_p = _pad2(x[:, :1], Np, 1)
    x_tail_p = _pad2(x[:, 1:], Np, Fp_in)
    # Pre-transposed weight, shifted right by one output lane (no in-kernel .T,
    # no in-kernel concat of the time coordinate).
    w_p = jnp.pad(weight.astype(f32).T,
                  ((0, Fp_in - F_in_m1), (1, Fp_h - 1 - F_out_m1)))
    adj_p = _pad2(adj.astype(f32), Np, Np)

    itm = jnp.dtype(agg_dtype).itemsize

    # ---- pass 1: LorentzLinear (row-parallel) -> h slab [Np, Fp_h] ----------
    linear_cost = pl.CostEstimate(
        flops=2 * Np * Fp_in * Fp_h + 30 * Np * (Fp_in + Fp_h),
        transcendentals=6 * Np,
        bytes_accessed=4 * Np * (1 + Fp_in) + 4 * Fp_in * Fp_h + itm * Np * Fp_h)
    h = pl.pallas_call(
        functools.partial(_linear_kernel, c_in=float(c_in)),
        out_shape=jax.ShapeDtypeStruct((Np, Fp_h), agg_dtype),
        grid=(Np // TL,),
        in_specs=[
            pl.BlockSpec((TL, 1), lambda i: (i, 0)),
            pl.BlockSpec((TL, Fp_in), lambda i: (i, 0)),
            pl.BlockSpec((Fp_in, Fp_h), lambda i: (0, 0)),   # weight stays resident
        ],
        out_specs=pl.BlockSpec((TL, Fp_h), lambda i: (i, 0)),
        compiler_params=pltpu.CompilerParams(dimension_semantics=("parallel",)),
        cost_estimate=linear_cost,
    )(x_head_p, x_tail_p, w_p)

    # ---- pass 2: LorentzAgg + LorentzAct + lorentz2poincare -----------------
    agg_cost = pl.CostEstimate(
        flops=2 * Np * Np * Fp_h + 40 * Np * Fp_h,
        transcendentals=8 * Np,
        bytes_accessed=4 * Np * Np + itm * (Np // TM) * Np * Fp_h + 4 * Np * Fp_h)
    out_p = pl.pallas_call(
        functools.partial(_agg_kernel, c_in=float(c_in), c_out=float(c_out),
                          compute_dtype=agg_dtype),
        out_shape=jax.ShapeDtypeStruct((Np, Fp_h), jnp.float32),
        grid=(Np // TM, Np // TK),                 # reduction axis last
        in_specs=[
            pl.BlockSpec((TM, TK), lambda i, k: (i, k)),       # adj tile
            pl.BlockSpec((TK, Fp_h), lambda i, k: (k, 0)),     # h rows for this K
        ],
        out_specs=pl.BlockSpec((TM, Fp_h), lambda i, k: (i, 0)),
        scratch_shapes=[pltpu.VMEM((TM, Fp_h), jnp.float32)],  # f32 accumulator
        compiler_params=pltpu.CompilerParams(
            dimension_semantics=("parallel", "arbitrary")),
        cost_estimate=agg_cost,
    )(adj_p, h)

    # Strip the time lane and the zero padding.
    return out_p[:N, 1:1 + F_out_m1]


# ---------------------------- pure-JAX reference ----------------------------

def _reference_forward(x, adj, weight, *, c_in, c_out):
    """f32 reference mirroring the PyTorch module's forward (dense adj)."""
    f32 = jnp.float32
    x, adj, weight = x.astype(f32), adj.astype(f32), weight.astype(f32)
    sqrt_ci = jnp.sqrt(jnp.asarray(c_in, f32))

    def arcosh(z):
        z = jnp.maximum(z, 1.0 + EPS)
        return jnp.log(z + jnp.sqrt(z * z - 1.0))

    def log0_tail(head, tail, c):
        sc = jnp.sqrt(jnp.asarray(c, f32))
        dist = sc * arcosh(head / sc + EPS)
        denom = jnp.sqrt(jnp.maximum(jnp.sum(tail * tail, -1, keepdims=True), EPS))
        return dist * tail / denom

    def exp0(tail, c):
        sc = jnp.sqrt(jnp.asarray(c, f32))
        sq = jnp.sum(tail * tail, -1, keepdims=True)
        lnorm = jnp.sqrt(jnp.maximum(sq + EPS, 1e-6))
        theta = jnp.minimum(lnorm, 50.0) / sc
        res = sc * jnp.sinh(theta) * tail / lnorm
        tnorm = jnp.sqrt(jnp.sum(res * res, -1, keepdims=True))
        scale = jnp.where(tnorm > MAX_NORM, MAX_NORM / jnp.maximum(tnorm, EPS), 1.0)
        res = res * scale
        head = jnp.sqrt(c + jnp.sum(res * res, -1, keepdims=True))
        return head, res

    u_tail = log0_tail(x[:, :1], x[:, 1:], c_in)          # LorentzLinear
    h_head, h_tail = exp0(u_tail @ weight.T, c_in)
    h = jnp.concatenate([h_head, h_tail], axis=-1)
    s = adj @ h                                            # LorentzAgg
    s_head, s_tail = s[:, :1], s[:, 1:]
    x_inner = -s_head * s_head + jnp.sum(s_tail * s_tail, -1, keepdims=True)
    coeff = sqrt_ci / jnp.sqrt(jnp.abs(x_inner))
    t_tail = jnp.maximum(log0_tail(coeff * s_head, coeff * s_tail, c_in), 0.0)
    o_head, o_tail = exp0(t_tail, c_out)                   # LorentzAct
    return o_tail / (o_head + sqrt_ci)                     # lorentz2poincare(c_in)


# ----------------------------------- main -----------------------------------

if __name__ == "__main__":
    # N nodes; in_feature = F_in (time + space); decoder out_features -> the
    # poincare output has out_features columns; weight is [out_features, F_in-1].
    N = 384
    in_feature = 16
    out_features = 15
    c_in, c_out = 1.0, 1.0

    key = jax.random.PRNGKey(0)
    k_x, k_adj, k_w = jax.random.split(key, 3)

    # Valid hyperboloid input: random spatial part, time = sqrt(c + ||tail||^2).
    x_tail = 0.5 * jax.random.normal(k_x, (N, in_feature - 1), jnp.float32)
    x_head = jnp.sqrt(c_in + jnp.sum(x_tail * x_tail, axis=-1, keepdims=True))
    x = jnp.concatenate([x_head, x_tail], axis=-1)

    # Dense row-stochastic adjacency (stand-in for torch.spmm weights).
    a = jax.random.uniform(k_adj, (N, N), jnp.float32, minval=0.0, maxval=1.0)
    adj = a / jnp.sum(a, axis=-1, keepdims=True)

    # LorentzLinear weight: [out_features, in_feature-1], xavier_uniform gain sqrt(2).
    fan_out, fan_in = out_features, in_feature - 1
    bound = math.sqrt(2.0) * math.sqrt(6.0 / (fan_in + fan_out))
    weight = jax.random.uniform(k_w, (fan_out, fan_in), jnp.float32,
                                minval=-bound, maxval=bound)

    out = lorentz_graph_decoder(x, adj, weight, c_in=c_in, c_out=c_out)
    out = jax.block_until_ready(out)
    ref = jax.block_until_ready(
        _reference_forward(x, adj, weight, c_in=c_in, c_out=c_out))

    assert out.shape == (N, out_features)
    assert bool(jnp.all(jnp.isfinite(out)))
    err = float(jnp.max(jnp.abs(out - ref)))
    # bf16 matmul inputs (f32 accumulation) => loose tolerance vs the f32 ref.
    assert err < 1e-2, f"max |kernel - reference| = {err}"
    print("KERNEL_OK")
</pallas_src>

<mosaic_0001>
module attributes {stable_mosaic.version = 11 : i64} {
  func.func @_linear_kernel(%arg0: i32, %arg1: memref<128x1xf32, #tpu.memory_space<vmem>>, %arg2: memref<128x128xf32, #tpu.memory_space<vmem>>, %arg3: memref<128x128xf32, #tpu.memory_space<vmem>>, %arg4: memref<128x128xbf16, #tpu.memory_space<vmem>>) attributes {dimension_semantics = [#tpu.dimension_semantics<parallel>], iteration_bounds = array<i64: 3>, scalar_prefetch = 0 : i64, scratch_operands = 0 : i64, tpu.core_type = #tpu.core_type<tc>, window_params = [{transform_indices = @transform_0, window_bounds = array<i64: 128, 1>}, {transform_indices = @transform_1, window_bounds = array<i64: 128, 128>}, {pipeline_mode = #tpu.pipeline_mode<synchronous>, transform_indices = @transform_2, window_bounds = array<i64: 128, 128>}, {transform_indices = @transform_3, window_bounds = array<i64: 128, 128>}]} {
    %c0 = arith.constant 0 : index
    %c0_0 = arith.constant 0 : index
    %0 = vector.load %arg1[%c0, %c0_0] : memref<128x1xf32, #tpu.memory_space<vmem>>, vector<128x1xf32>
    %c0_1 = arith.constant 0 : index
    %c0_2 = arith.constant 0 : index
    %1 = vector.load %arg2[%c0_1, %c0_2] : memref<128x128xf32, #tpu.memory_space<vmem>>, vector<128x128xf32>
    %cst = arith.constant 1.000000e+00 : f32
    %2 = vector.broadcast %cst : f32 to vector<128x1xf32>
    %3 = arith.divf %0, %2 : vector<128x1xf32>
    %cst_3 = arith.constant 1.000000e-07 : f32
    %4 = vector.broadcast %cst_3 : f32 to vector<128x1xf32>
    %5 = arith.addf %3, %4 : vector<128x1xf32>
    %cst_4 = arith.constant 1.00000012 : f32
    %6 = vector.broadcast %cst_4 : f32 to vector<128x1xf32>
    %7 = arith.maximumf %5, %6 : vector<128x1xf32>
    %8 = arith.mulf %7, %7 : vector<128x1xf32>
    %cst_5 = arith.constant 1.000000e+00 : f32
    %9 = vector.broadcast %cst_5 : f32 to vector<128x1xf32>
    %10 = arith.subf %8, %9 : vector<128x1xf32>
    %11 = math.sqrt %10 : vector<128x1xf32>
    %12 = arith.addf %7, %11 : vector<128x1xf32>
    %13 = math.log %12 : vector<128x1xf32>
    %cst_6 = arith.constant 1.000000e+00 : f32
    %14 = vector.broadcast %cst_6 : f32 to vector<128x1xf32>
    %15 = arith.mulf %14, %13 : vector<128x1xf32>
    %16 = arith.mulf %1, %1 : vector<128x128xf32>
    %cst_7 = arith.constant dense<0.000000e+00> : vector<128xf32>
    %17 = vector.multi_reduction <add>, %16, %cst_7 [1] : vector<128x128xf32> to vector<128xf32>
    %18 = vector.shape_cast %17 : vector<128xf32> to vector<128x1xf32>
    %cst_8 = arith.constant 1.000000e-07 : f32
    %19 = vector.broadcast %cst_8 : f32 to vector<128x1xf32>
    %20 = arith.maximumf %18, %19 : vector<128x1xf32>
    %21 = math.sqrt %20 : vector<128x1xf32>
    %22 = arith.divf %15, %21 : vector<128x1xf32>
    %23 = vector.broadcast %22 : vector<128x1xf32> to vector<128x128xf32>
    %24 = arith.mulf %1, %23 : vector<128x128xf32>
    %c0_9 = arith.constant 0 : index
    %c0_10 = arith.constant 0 : index
    %25 = vector.load %arg3[%c0_9, %c0_10] : memref<128x128xf32, #tpu.memory_space<vmem>>, vector<128x128xf32>
    %cst_11 = arith.constant dense<0.000000e+00> : vector<128x128xf32>
    %26 = tpu.matmul %24, %25, %cst_11 {dimension_numbers = #tpu.dot_dimension_numbers<[1], [0], [0], [1], [0, 0, 1, 1], [], []>} : vector<128x128xf32>, vector<128x128xf32>, vector<128x128xf32> -> vector<128x128xf32>
    %27 = arith.mulf %26, %26 : vector<128x128xf32>
    %cst_12 = arith.constant dense<0.000000e+00> : vector<128xf32>
    %28 = vector.multi_reduction <add>, %27, %cst_12 [1] : vector<128x128xf32> to vector<128xf32>
    %29 = vector.shape_cast %28 : vector<128xf32> to vector<128x1xf32>
    %cst_13 = arith.constant 1.000000e-07 : f32
    %30 = vector.broadcast %cst_13 : f32 to vector<128x1xf32>
    %31 = arith.addf %29, %30 : vector<128x1xf32>
    %cst_14 = arith.constant 9.99999997E-7 : f32
    %32 = vector.broadcast %cst_14 : f32 to vector<128x1xf32>
    %33 = arith.maximumf %31, %32 : vector<128x1xf32>
    %34 = math.sqrt %33 : vector<128x1xf32>
    %cst_15 = arith.constant 5.000000e+01 : f32
    %35 = vector.broadcast %cst_15 : f32 to vector<128x1xf32>
    %36 = arith.minimumf %34, %35 : vector<128x1xf32>
    %cst_16 = arith.constant 1.000000e+00 : f32
    %37 = vector.broadcast %cst_16 : f32 to vector<128x1xf32>
    %38 = arith.divf %36, %37 : vector<128x1xf32>
    %39 = math.exp %38 : vector<128x1xf32>
    %40 = tpu.reciprocal %39 : vector<128x1xf32> -> vector<128x1xf32>
    %41 = arith.subf %39, %40 : vector<128x1xf32>
    %cst_17 = arith.constant 5.000000e-01 : f32
    %42 = vector.broadcast %cst_17 : f32 to vector<128x1xf32>
    %43 = arith.mulf %42, %41 : vector<128x1xf32>
    %cst_18 = arith.constant 1.000000e+00 : f32
    %44 = vector.broadcast %cst_18 : f32 to vector<128x1xf32>
    %45 = arith.mulf %44, %43 : vector<128x1xf32>
    %46 = arith.divf %45, %34 : vector<128x1xf32>
    %47 = vector.broadcast %46 : vector<128x1xf32> to vector<128x128xf32>
    %48 = arith.mulf %26, %47 : vector<128x128xf32>
    %cst_19 = arith.constant 1.000000e+00 : f32
    %49 = vector.broadcast %cst_19 : f32 to vector<128x1xf32>
    %50 = arith.mulf %49, %43 : vector<128x1xf32>
    %51 = math.sqrt %29 : vector<128x1xf32>
    %52 = arith.mulf %50, %51 : vector<128x1xf32>
    %53 = arith.divf %52, %34 : vector<128x1xf32>
    %cst_20 = arith.constant 1.000000e+03 : f32
    %54 = vector.broadcast %cst_20 : f32 to vector<128x1xf32>
    %55 = arith.cmpf ogt, %53, %54 : vector<128x1xf32>
    %cst_21 = arith.constant 1.000000e-07 : f32
    %56 = vector.broadcast %cst_21 : f32 to vector<128x1xf32>
    %57 = arith.maximumf %53, %56 : vector<128x1xf32>
    %cst_22 = arith.constant 1.000000e+03 : f32
    %58 = vector.broadcast %cst_22 : f32 to vector<128x1xf32>
    %59 = arith.divf %58, %57 : vector<128x1xf32>
    %cst_23 = arith.constant 1.000000e+00 : f32
    %60 = vector.broadcast %cst_23 : f32 to vector<128x1xf32>
    %61 = arith.select %55, %59, %60 : vector<128x1xi1>, vector<128x1xf32>
    %62 = vector.broadcast %61 : vector<128x1xf32> to vector<128x128xf32>
    %63 = arith.mulf %48, %62 : vector<128x128xf32>
    %64 = arith.mulf %53, %61 : vector<128x1xf32>
    %65 = arith.mulf %64, %64 : vector<128x1xf32>
    %cst_24 = arith.constant 1.000000e+00 : f32
    %66 = vector.broadcast %cst_24 : f32 to vector<128x1xf32>
    %67 = arith.addf %66, %65 : vector<128x1xf32>
    %68 = math.sqrt %67 : vector<128x1xf32>
    %69 = tpu.iota {dimensions = array<i32: 1>} : vector<128x128xi32>
    %c0_i32 = arith.constant 0 : i32
    %70 = vector.broadcast %c0_i32 : i32 to vector<128x128xi32>
    %71 = arith.cmpi eq, %69, %70 : vector<128x128xi32>
    %72 = vector.shape_cast %68 : vector<128x1xf32> to vector<128x1xf32>
    %73 = vector.broadcast %72 : vector<128x1xf32> to vector<128x128xf32>
    %74 = arith.select %71, %73, %63 : vector<128x128xi1>, vector<128x128xf32>
    %75 = arith.truncf %74 : vector<128x128xf32> to vector<128x128xbf16>
    %c0_25 = arith.constant 0 : index
    %c0_26 = arith.constant 0 : index
    %76 = vector.load %arg4[%c0_25, %c0_26] : memref<128x128xbf16, #tpu.memory_space<vmem>>, vector<128x128xbf16>
    tpu.vector_store %arg4[%c0_25, %c0_26], %75 {strides = array<i32>} : memref<128x128xbf16, #tpu.memory_space<vmem>>, vector<128x128xbf16>,
    return
  }
  func.func @transform_0(%arg0: i32) -> (i32, i32) {
    %c0_i32 = arith.constant 0 : i32
    %c0_i32_0 = arith.constant 0 : i32
    return %arg0, %c0_i32 : i32, i32
  }
  func.func @transform_1(%arg0: i32) -> (i32, i32) {
    %c0_i32 = arith.constant 0 : i32
    %c0_i32_0 = arith.constant 0 : i32
    return %arg0, %c0_i32 : i32, i32
  }
  func.func @transform_2(%arg0: i32) -> (i32, i32) {
    %c0_i32 = arith.constant 0 : i32
    %c0_i32_0 = arith.constant 0 : i32
    %c0_i32_1 = arith.constant 0 : i32
    return %c0_i32, %c0_i32_0 : i32, i32
  }
  func.func @transform_3(%arg0: i32) -> (i32, i32) {
    %c0_i32 = arith.constant 0 : i32
    %c0_i32_0 = arith.constant 0 : i32
    return %arg0, %c0_i32 : i32, i32
  }
}

</mosaic_0001>

<bundles_post_ra>
// kernel: tpu_custom_call.1
= control target key start
LH: loop header
LB: loop body
LE: loop exit
PB: predicated region body
PF: predicated region fallthrough
CT: control target
= control target key end

     0   :  { %8 = vsyncpa [#allocation3], 0  ;;  %s6680_s0 = inlined_call_operand.vmem [shape: f32[384,1], index: 0, kind: input, shape index: {}]   ;;  %s6681_s1 = inlined_call_operand.vmem [shape: f32[384,128], index: 1, kind: input, shape index: {}]   ;;  %s6682_s2 = inlined_call_operand.hbm [shape: f32[128,128], index: 2, kind: input, shape index: {}]   ;;  %s6683_s3 = inlined_call_operand.hbm [shape: bf16[384,128], index: 3, kind: output, shape index: {}]  }
   0x1   :  { %9 = vsyncpa [#allocation4], 0 }
   0x2   :  { %11 = vsyncpa [#allocation4 + $0x1], 0  ;;  %s3651_s12 = smov 0   ;;  %s3653_s13 = smov 0  }
   0x3   :  { %s3655_s14 = smov 0   ;;  %s3657_s15 = smov 0  }
   0x4 LB: > { %s3672_s16 = sadd.s32 4294967295, %s3623_s15   ;;  %s2973_s17 = sadd.s32 4294967294, %s3623_s15   ;;  %s3623_s15 = sphi %s3657_s15, %s6840_s15   ;;  %s3619_s14 = sphi %s3655_s14, %s6839_s14   ;;  %s3615_s13 = sphi %s3653_s13, %s6838_s13   ;;  %s3611_s12 = sphi %s3651_s12, %s6837_s12  }
   0x5   : > { %s3676_s18 = sadd.s32 1, %s3623_s15   ;;  %s97_s19 = sadd.s32 1, %s3619_s14 }
   0x6   : > { %s94_s20 = ssub.s32 %s3623_s15, %s3676_s18  ;;  %p107_p0 = scmp.ne.s32.totalorder %s3619_s14, %s3615_s13 }
   0x7   : > { %p95_p1 = scmp.eq.s32.totalorder %s94_s20, 0  ;;  %p108_p2 = scmp.eq.s32.totalorder %s3672_s16, 2 }
   0x8   : > { %p113_p3 = scmp.ne.s32.totalorder %s3615_s13, %s3611_s12  ;;  %p114_p4 = scmp.eq.s32.totalorder %s2973_s17, 2 }
   0x9   : > { %s3687_s21 = scalar_select %p95_p1, %s3619_s14, %s97_s19  }
   0xa   : > { %p3689_p5 = por %p108_p2, %p107_p0  ;;  %p3693_p6 = por %p114_p4, %p113_p3 }
   0xb   : > { %p2974_p7 = scmp.ge.s32.totalorder %s3623_s15, 1  ;;  %p121_p8 = scmp.lt.s32.totalorder %s3623_s15, 4 }
   0xc   : > { %p3115_p9 = scmp.eq.s32.totalorder %s3672_s16, 0  ;;  %s132_s26 = sshll.u32 %s6682_s2, 4  ;;  %s133_s26 = int_to_ptr.hbm [resolvable:$true] %s132_s26 }
   0xd   : > { %p122_p10 = pnand %p2974_p7, %p121_p8  ;;  %s3625_s27 = smov [#allocation2]  }
   0xe   : > { %s134_s28 = sshll.u32 %s3625_s27, 4  ;;  %s3626_s29 = smov 128   ;;  %s135_s28 = int_to_ptr.vmem [resolvable:$true] %s134_s28 }
   0xf   : > { %p3107_p11 = pneg %p122_p10  ;;  %s3627_s30 = smov 8  }
  0x10   : > { %168 = sbr.rel (%p122_p10) target bundleno = 1022 (0x3fe), region = 32 }
  0x11   : > { %p3108_p12 = pnand %p3115_p9, %p3107_p11 }
  0x13   : > { %3110 = dma.hbm_to_vmem [thread:$0]  (!%p3108_p12), %s133_s26, 2048, %s135_s28, [#allocation3], %s3626_s29, %s3626_s29, %s3627_s30  }
  0x15   : > { %3602 = dma.done.wait (%p3115_p9), [#allocation3], 2048  }
  0x16   : > { %3604 = vsyncadd (%p3115_p9), [#allocation3], 4294965248  ;;  %s2980_s4 = sshll.u32 %s3672_s16, 4  ;;  %s195_s17 = sand.u32 1, %s3615_s13  }
  0x17   : > { %p199_p13 = scmp.lt.s32.totalorder %s2980_s4, 47  ;;  %s2979_s19 = sshll.u32 %s195_s17, 6 }
  0x18   : > { %s5523_s20 = scalar_lea.vmem [#allocation5], %s2979_s19  ;;  %s3005_s24 = sshll.u32 %s3672_s16, 6 }
  0x19   : > { %s6842_s4 = smov (!%p199_p13, %s2980_s4), 47  ;;  %s2883_s27 = scalar_lea.hbm %s6683_s3, %s3005_s24 }
  0x1a   : > { %s2981_s5 = sshll.u32 %s6842_s4, 3  ;;  %s2884_s16 = sshll.u32 %s5523_s20, 4  ;;  %s2885_s16 = int_to_ptr.vmem [resolvable:$true] %s2884_s16 }
  0x1b   : > { %s3718_s8 = scalar_lea.vmem %s6681_s1, %s2981_s5  ;;  %s3741_s11 = scalar_lea.vmem %s6680_s0, %s2981_s5 }
  0x1c   : > { %v236_v0 = vld [vmem:[%s3718_s8 + $0x48] sm:$0xff]  ;;  %v235_v1 = vld [vmem:[%s3718_s8 + $0x40] sm:$0xff]  ;;  %v237_v12 = vld [vmem:[%s3718_s8 + $0x50] sm:$0xff]  ;;  %s2886_s28 = sshll.u32 %s2883_s27, 4  ;;  %s2872_s29 = scalar_lea.sflag [#allocation4], %s195_s17  ;;  %s2887_s28 = int_to_ptr.hbm [resolvable:$true] %s2886_s28 }
  0x1d   : > { %v227_v2 = vld [vmem:[%s3718_s8] sm:$0xff]  ;;  %v556_v3 = vmul.f32 %v236_v0, %v236_v0  ;;  %v555_v4 = vmul.f32 %v235_v1, %v235_v1  ;;  %v240_v6 = vld [vmem:[%s3718_s8 + $0x68] sm:$0xff]  ;;  %v557_v15 = vmul.f32 %v237_v12, %v237_v12  ;;  %v233_v18 = vld [vmem:[%s3718_s8 + $0x30] sm:$0xff]  ;;  %s3571_s30 = sshra.s32 %s2887_s28, 4  ;;  %s3577_s7 = scalar_lea.hbm %s6683_s3, 192  ;;  %s3572_s30 = int_to_ptr.hbm [resolvable:$true] %s3571_s30 }
  0x1e   : > { %v547_v5 = vmul.f32 %v227_v2, %v227_v2  ;;  %v239_v7 = vld [vmem:[%s3718_s8 + $0x60] sm:$0xff]  ;;  %v560_v9 = vmul.f32 %v240_v6, %v240_v6  ;;  %v228_v13 = vld [vmem:[%s3718_s8 + $0x8] sm:$0xff]  ;;  %v241_v19 = vld [vmem:[%s3718_s8 + $0x70] sm:$0xff]  ;;  %v553_v21 = vmul.f32 %v233_v18, %v233_v18  ;;  %s3573_s4 = scalar_lea.hbm %s3572_s30, 64  ;;  %p3578_p3 = scmp.lt.s32.totalorder %s3572_s30, %s6683_s3 }
  0x1f   : > { %581 = vadd.xlane.f32.xlu2 %v556_v3  ;;  %579 = vadd.xlane.f32.xlu0 %v555_v4  ;;  %v231_v8 = vld [vmem:[%s3718_s8 + $0x20] sm:$0xff]  ;;  %v559_v10 = vmul.f32 %v239_v7, %v239_v7  ;;  %v232_v14 = vld [vmem:[%s3718_s8 + $0x28] sm:$0xff]  ;;  %v548_v16 = vmul.f32 %v228_v13, %v228_v13  ;;  %v229_v20 = vld [vmem:[%s3718_s8 + $0x10] sm:$0xff]  ;;  %v561_v22 = vmul.f32 %v241_v19, %v241_v19  ;;  %p3574_p0 = scmp.ne.s32.totalorder %s3572_s30, %s3573_s4  ;;  %p3579_p4 = scmp.lt.s32.totalorder %s3577_s7, %s3573_s4 }
  0x20   : > { %563 = vadd.xlane.f32.xlu1 %v547_v5  ;;  %v551_v11 = vmul.f32 %v231_v8, %v231_v8  ;;  %v552_v17 = vmul.f32 %v232_v14, %v232_v14  ;;  %v549_v23 = vmul.f32 %v229_v20, %v229_v20  ;;  %v230_v24 = vld [vmem:[%s3718_s8 + $0x18] sm:$0xff]  ;;  %v219_v32 = vld [vmem:[%s3741_s11 + $0x40] sm:$0xff]  ;;  %v220_v38 = vld [vmem:[%s3741_s11 + $0x48] sm:$0xff] }
  0x21   : > { %v238_v25 = vld [vmem:[%s3718_s8 + $0x58] sm:$0xff]  ;;  %v550_v27 = vmul.f32 %v230_v24, %v230_v24  ;;  %v211_v33 = vld [vmem:[%s3741_s11] sm:$0xff]  ;;  %v251_v34 = vadd.f32 1e-07, %v219_v32  ;;  %v252_v41 = vadd.f32 1e-07, %v220_v38  ;;  %p3575_p1 = pnand %p3574_p0, %p3689_p5  ;;  %p3580_p7 = por %p3579_p4, %p3578_p3 }
  0x22   : > { %v242_v26 = vld [vmem:[%s3718_s8 + $0x78] sm:$0xff]  ;;  %v558_v28 = vmul.f32 %v238_v25, %v238_v25  ;;  %v243_v35 = vadd.f32 1e-07, %v211_v33  ;;  %v223_v47 = vld [vmem:[%s3741_s11 + $0x60] sm:$0xff] }
  0x23   : > { %v562_v29 = vmul.f32 %v242_v26, %v242_v26  ;;  %v234_v30 = vld [vmem:[%s3718_s8 + $0x38] sm:$0xff]  ;;  %v3745_v36 = vmax.f32 %v251_v34, 1.0000001  ;;  %v3754_v44 = vmax.f32 %v252_v41, 1.0000001  ;;  %v215_v62 = vld [vmem:[%s3741_s11 + $0x20] sm:$0xff]  ;;  %p3576_p2 = pneg %p3575_p1 }
  0x24   : > { %v554_v31 = vmul.f32 %v234_v30, %v234_v30  ;;  %v3747_v37 = vmax.f32 %v243_v35, 1.0000001  ;;  %v255_v48 = vadd.f32 1e-07, %v223_v47  ;;  %v247_v0 = vadd.f32 1e-07, %v215_v62 }
  0x25   : > { %v283_v39 = vmul.f32 %v3745_v36, %v3745_v36  ;;  %v284_v45 = vmul.f32 %v3754_v44, %v3754_v44  ;;  %p3581_p8 = pnand %p3580_p7, %p3576_p2 }
  0x26   : > { %v275_v40 = vmul.f32 %v3747_v37, %v3747_v37  ;;  %v3762_v50 = vmax.f32 %v255_v48, 1.0000001  ;;  %v3771_v4 = vmax.f32 %v247_v0, 1.0000001  ;;  %v3628_v48 = vmov 0  }
  0x27   : > { %589 = vadd.xlane.f32.xlu2 %v560_v9  ;;  %587 = vadd.xlane.f32.xlu0 %v559_v10  ;;  %v2992_v42 = vadd.f32 -1.0, %v283_v39  ;;  %v3758_v46 = vadd.f32 -1.0, %v284_v45 }
  0x28   : > { %571 = vadd.xlane.f32.xlu1 %v551_v11  ;;  %v2984_v43 = vadd.f32 -1.0, %v275_v40  ;;  %v287_v54 = vmul.f32 %v3762_v50, %v3762_v50  ;;  %v279_v10 = vmul.f32 %v3771_v4, %v3771_v4  ;;  %3158 = vset.pattern.permute.xlu0 %v3628_v48 }
  0x29   : > { %3159 = vrsqrt.f32 %v2992_v42  ;;  %vm410_vm0 = vcmp.eq.f32.partialorder %v2992_v42, inf  ;;  %v413_v20 = vand.u32 2147483648, %v2992_v42  ;;  %vm412_vm2 = vcmp.eq.f32.partialorder %v2992_v42, 0.0  ;;  %3156 = vset.pattern.permute.xlu1 %v3628_v48  ;;  %3157 = vset.pattern.permute.xlu2 %v3628_v48 }
  0x2a   : > { %3161 = vrsqrt.f32 %v2984_v43  ;;  %v3766_v58 = vadd.f32 -1.0, %v287_v54  ;;  %vm314_vm1 = vcmp.eq.f32.partialorder %v2984_v43, inf  ;;  %vm316_vm3 = vcmp.eq.f32.partialorder %v2984_v43, 0.0 }
  0x2b   : > { %3163 = vrsqrt.f32 %v3758_v46  ;;  %vm422_vm6 = vcmp.eq.f32.partialorder %v3758_v46, inf  ;;  %vm424_vm9 = vcmp.eq.f32.partialorder %v3758_v46, 0.0 }
  0x2c   : > { %3165 = vrsqrt.f32 %v3766_v58  ;;  %vm458_vm4 = vcmp.eq.f32.partialorder %v3766_v58, inf  ;;  %vm460_vm5 = vcmp.eq.f32.partialorder %v3766_v58, 0.0 }
  0x2f   : > { %583 = vadd.xlane.f32.xlu2 %v557_v15  ;;  %565 = vadd.xlane.f32.xlu0 %v548_v16  ;;  %v3160_v49 = vpop.eup %3159 }
  0x30   : > { %573 = vadd.xlane.f32.xlu1 %v552_v17  ;;  %v3162_v51 = vpop.eup %3161  ;;  %v404_v52 = vmul.f32 %v3160_v49, %v2992_v42 }
  0x31   : > { %v308_v53 = vmul.f32 %v3162_v51, %v2984_v43  ;;  %v3164_v56 = vpop.eup %3163 }
  0x32   : > { %v405_v55 = vmul.f32 %v3160_v49, %v404_v52  ;;  %v416_v60 = vmul.f32 %v3164_v56, %v3758_v46  ;;  %v3166_v6 = vpop.eup %3165 }
  0x33   : > { %v309_v57 = vmul.f32 %v3162_v51, %v308_v53  ;;  %v452_v9 = vmul.f32 %v3166_v6, %v3766_v58 }
  0x34   : > { %v406_v59 = vmul.f32 0.5, %v405_v55  ;;  %v417_v3 = vmul.f32 %v3164_v56, %v416_v60 }
  0x35   : > { %v310_v61 = vmul.f32 0.5, %v309_v57  ;;  %v453_v17 = vmul.f32 %v3166_v6, %v452_v9  ;;  %v425_v57 = vand.u32 2147483648, %v3758_v46 }
  0x36   : > { %v407_v63 = vsub.f32 1.5, %v406_v59  ;;  %v418_v8 = vmul.f32 0.5, %v417_v3 }
  0x37   : > { %575 = vadd.xlane.f32.xlu2 %v553_v21  ;;  %591 = vadd.xlane.f32.xlu0 %v561_v22  ;;  %v311_v1 = vsub.f32 1.5, %v310_v61  ;;  %v317_v22 = vand.u32 2147483648, %v2984_v43  ;;  %v454_v25 = vmul.f32 0.5, %v453_v17 }
  0x38   : > { %567 = vadd.xlane.f32.xlu1 %v549_v23  ;;  %v408_v2 = vmul.f32 %v3160_v49, %v407_v63  ;;  %v419_v21 = vsub.f32 1.5, %v418_v8  ;;  %v3783_v23 = vadd.f32 -1.0, %v279_v10 }
  0x39   : > { %v312_v5 = vmul.f32 %v3162_v51, %v311_v1 }
  0x3a   : > { %v409_v7 = vmul.f32 %v2992_v42, %v408_v2 }
  0x3b   : > { %v313_v13 = vmul.f32 %v2984_v43, %v312_v5 }
  0x3c   : > { %v411_v19 = vsel %vm410_vm0, %v2992_v42, %v409_v7  ;;  %vm362_vm0 = vcmp.eq.f32.partialorder %v3783_v23, inf }
  0x3d   : > { %v315_v24 = vsel %vm314_vm1, %v2984_v43, %v313_v13  ;;  %v414_v26 = vsel %vm412_vm2, %v413_v20, %v411_v19  ;;  %v224_v19 = vld [vmem:[%s3741_s11 + $0x68] sm:$0xff]  ;;  %vm364_vm2 = vcmp.eq.f32.partialorder %v3783_v23, 0.0 }
  0x3e   : > { %v507_v35 = vadd.f32 %v414_v26, %v3745_v36 }
  0x3f   : > { %569 = vadd.xlane.f32.xlu2 %v550_v27  ;;  %585 = vadd.xlane.f32.xlu0 %v558_v28  ;;  %v420_v27 = vmul.f32 %v3164_v56, %v419_v21  ;;  %v318_v28 = vsel %vm316_vm3, %v317_v22, %v315_v24 }
  0x40   : > { %593 = vadd.xlane.f32.xlu1 %v562_v29  ;;  %v455_v29 = vsub.f32 1.5, %v454_v25  ;;  %v499_v41 = vadd.f32 %v318_v28, %v3747_v37  ;;  %v461_v37 = vand.u32 2147483648, %v3766_v58  ;;  %v256_v28 = vadd.f32 1e-07, %v224_v19 }
  0x41   : > { %v421_v42 = vmul.f32 %v3758_v46, %v420_v27 }
  0x42   : > { %v456_v38 = vmul.f32 %v3166_v6, %v455_v29 }
  0x43   : > { %v423_v60 = vsel %vm422_vm6, %v3758_v46, %v421_v42 }
  0x44   : > { %v457_v47 = vmul.f32 %v3766_v58, %v456_v38  ;;  %v426_v10 = vsel %vm424_vm9, %v425_v57, %v423_v60  ;;  %v3893_v57 = vmax.f32 %v256_v28, 1.0000001 }
  0x46   : > { %v459_v53 = vsel %vm458_vm4, %v3766_v58, %v457_v47 }
  0x47   : > { %577 = vadd.xlane.f32.xlu0 %v554_v31  ;;  %v462_v56 = vsel %vm460_vm5, %v461_v37, %v459_v53 }
  0x48   : > { %v511_v6 = vadd.f32 %v462_v56, %v3762_v50 }
  0x92   : > { %v582_v11 = vpop.xlane.xlu2 %581  ;;  %v580_v12 = vpop.xlane.xlu0 %579 }
  0x93   : > { %v3776_v14 = vmax.f32 %v582_v11, 1e-07  ;;  %v3778_v15 = vmax.f32 %v580_v12, 1e-07  ;;  %v564_v16 = vpop.xlane.xlu1 %563  ;;  %v212_v11 = vld [vmem:[%s3741_s11 + $0x8] sm:$0xff] }
  0x94   : > { %v3780_v18 = vmax.f32 %v564_v16, 1e-07  ;;  %v244_v25 = vadd.f32 1e-07, %v212_v11 }
  0x95   : > { %3167 = vrsqrt.f32 %v3776_v14  ;;  %v717_v52 = vand.u32 2147483648, %v3778_v15  ;;  %vm714_vm7 = vcmp.eq.f32.partialorder %v3778_v15, inf  ;;  %vm716_vm8 = vcmp.eq.f32.partialorder %v3778_v15, 0.0 }
  0x96   : > { %3169 = vrsqrt.f32 %v3778_v15  ;;  %vm618_vm10 = vcmp.eq.f32.partialorder %v3780_v18, inf  ;;  %v621_v5 = vand.u32 2147483648, %v3780_v18  ;;  %vm620_vm11 = vcmp.eq.f32.partialorder %v3780_v18, 0.0 }
  0x97   : > { %3171 = vrsqrt.f32 %v3780_v18  ;;  %vm726_vm12 = vcmp.eq.f32.partialorder %v3776_v14, inf  ;;  %vm728_vm15 = vcmp.eq.f32.partialorder %v3776_v14, 0.0  ;;  %v3885_v53 = vmax.f32 %v244_v25, 1.0000001 }
  0x98   : > { %3173 = vrsqrt.f32 %v3783_v23 }
  0x9a   : > { %v590_v30 = vpop.xlane.xlu2 %589  ;;  %v588_v31 = vpop.xlane.xlu0 %587 }
  0x9b   : > { %v3788_v32 = vpop.eup %3167  ;;  %v3790_v33 = vmax.f32 %v588_v31, 1e-07  ;;  %v572_v34 = vpop.xlane.xlu1 %571  ;;  %v3811_v54 = vmax.f32 %v590_v30, 1e-07 }
  0x9c   : > { %v3170_v39 = vpop.eup %3169  ;;  %v720_v40 = vmul.f32 %v3788_v32, %v3776_v14  ;;  %v3821_v62 = vmax.f32 %v572_v34, 1e-07  ;;  %v508_v34 = vadd.f32 %v426_v10, %v3754_v44  ;;  %v729_v44 = vand.u32 2147483648, %v3776_v14 }
  0x9d   : > { %v3172_v43 = vpop.eup %3171  ;;  %v708_v45 = vmul.f32 %v3170_v39, %v3778_v15  ;;  %3175 = vrsqrt.f32 %v3790_v33  ;;  %vm762_vm13 = vcmp.eq.f32.partialorder %v3790_v33, inf  ;;  %vm764_vm14 = vcmp.eq.f32.partialorder %v3790_v33, 0.0 }
  0x9e   : > { %v612_v36 = vmul.f32 %v3172_v43, %v3780_v18  ;;  %v3805_v49 = vpop.eup %3173  ;;  %3177 = vlog2.f32 %v507_v35  ;;  %v721_v61 = vmul.f32 %v3788_v32, %v720_v40  ;;  %v765_v47 = vand.u32 2147483648, %v3790_v33 }
  0x9f   : > { %v709_v51 = vmul.f32 %v3170_v39, %v708_v45  ;;  %v356_v58 = vmul.f32 %v3805_v49, %v3783_v23  ;;  %3179 = vlog2.f32 %v499_v41 }
  0xa0   : > { %v613_v55 = vmul.f32 %v3172_v43, %v612_v36  ;;  %3181 = vrsqrt.f32 %v3811_v54  ;;  %v722_v17 = vmul.f32 0.5, %v721_v61  ;;  %v365_v61 = vand.u32 2147483648, %v3783_v23 }
  0xa1   : > { %v710_v59 = vmul.f32 0.5, %v709_v51  ;;  %3183 = vrsqrt.f32 %v3821_v62  ;;  %v357_v22 = vmul.f32 %v3805_v49, %v356_v58 }
  0xa2   : > { %v584_v63 = vpop.xlane.xlu2 %583  ;;  %v566_v0 = vpop.xlane.xlu0 %565  ;;  %v614_v1 = vmul.f32 0.5, %v613_v55  ;;  %3185 = vlog2.f32 %v511_v6  ;;  %v723_v27 = vsub.f32 1.5, %v722_v17 }
  0xa3   : > { %v574_v2 = vpop.xlane.xlu1 %573  ;;  %v711_v3 = vsub.f32 1.5, %v710_v59  ;;  %v3828_v7 = vpop.eup %3175  ;;  %v3831_v8 = vmax.f32 %v584_v63, 1e-07  ;;  %v3839_v16 = vmax.f32 %v566_v0, 1e-07  ;;  %v358_v41 = vmul.f32 0.5, %v357_v22 }
  0xa4   : > { %v615_v9 = vsub.f32 1.5, %v614_v1  ;;  %v3178_v12 = vpop.eup %3177  ;;  %v756_v13 = vmul.f32 %v3828_v7, %v3790_v33  ;;  %v3843_v20 = vmax.f32 %v574_v2, 1e-07  ;;  %v724_v36 = vmul.f32 %v3788_v32, %v723_v27 }
  0xa5   : > { %v712_v50 = vmul.f32 %v3170_v39, %v711_v3  ;;  %3187 = vrsqrt.f32 %v3831_v8  ;;  %v3180_v29 = vpop.eup %3179  ;;  %v3866_v42 = vmul.f32 0.6931472, %v3178_v12  ;;  %v359_v32 = vsub.f32 1.5, %v358_v41 }
  0xa6   : > { %v616_v21 = vmul.f32 %v3172_v43, %v615_v9  ;;  %v757_v24 = vmul.f32 %v3828_v7, %v756_v13  ;;  %3189 = vrsqrt.f32 %v3839_v16  ;;  %v3855_v35 = vpop.eup %3181  ;;  %v3873_v45 = vmul.f32 0.6931472, %v3180_v29 }
  0xa7   : > { %v713_v46 = vmul.f32 %v712_v50, %v3778_v15  ;;  %3191 = vrsqrt.f32 %v3843_v20  ;;  %v3871_v43 = vpop.eup %3183  ;;  %v3891_v56 = vmul.f32 %v3855_v35, %v3811_v54  ;;  %v725_v2 = vmul.f32 %v724_v36, %v3776_v14 }
  0xa8   : > { %v617_v26 = vmul.f32 %v616_v21, %v3780_v18  ;;  %v758_v31 = vmul.f32 0.5, %v757_v24  ;;  %v3186_v48 = vpop.eup %3185  ;;  %v360_v11 = vmul.f32 %v3805_v49, %v359_v32 }
  0xa9   : > { %v715_v30 = vsel %vm714_vm7, %v3778_v15, %v713_v46  ;;  %v3912_v6 = vmul.f32 0.6931472, %v3186_v48  ;;  %v727_v17 = vsel %vm726_vm12, %v3776_v14, %v725_v2  ;;  %vm666_vm12 = vcmp.eq.f32.partialorder %v3821_v62, inf }
  0xaa   : > { %v576_v38 = vpop.xlane.xlu2 %575  ;;  %v3860_v39 = vsel %vm716_vm8, %v717_v52, %v715_v30  ;;  %v619_v40 = vsel %vm618_vm10, %v3780_v18, %v617_v26  ;;  %v592_v15 = vpop.xlane.xlu0 %591  ;;  %v759_v52 = vsub.f32 1.5, %v758_v31  ;;  %v660_v18 = vmul.f32 %v3871_v43, %v3821_v62 }
  0xab   : > { %3193 = vrcp.f32 %v3860_v39  ;;  %v3878_v37 = vmax.f32 %v576_v38, 1e-07  ;;  %v3882_v51 = vsel %vm620_vm11, %v621_v5, %v619_v40  ;;  %v3887_v55 = vpop.eup %3187  ;;  %v3899_v60 = vmax.f32 %v592_v15, 1e-07  ;;  %v568_v0 = vpop.xlane.xlu1 %567 }
  0xac   : > { %3195 = vlog2.f32 %v508_v34  ;;  %v3895_v59 = vpop.eup %3189  ;;  %v932_v1 = vand.u32 2147483647, %v3860_v39  ;;  %v760_v58 = vmul.f32 %v3828_v7, %v759_v52  ;;  %vm928_vm1 = vweird.f32 %v3860_v39 }
  0xad   : > { %v3903_v63 = vpop.eup %3191  ;;  %3197 = vrcp.f32 %v3882_v51  ;;  %v934_v5 = vand.u32 2147483648, %v3860_v39  ;;  %v3917_v9 = vmul.f32 %v3887_v55, %v3831_v8  ;;  %v3924_v12 = vmul.f32 %v3895_v59, %v3839_v16 }
  0xae   : > { %3199 = vrsqrt.f32 %v3878_v37  ;;  %v761_v7 = vmul.f32 %v760_v58, %v3790_v33  ;;  %v3928_v13 = vmul.f32 %v3903_v63, %v3843_v20  ;;  %v3930_v50 = vmax.f32 %v568_v0, 1e-07 }
  0xaf   : > { %3201 = vrsqrt.f32 %v3899_v60  ;;  %vm3936_vm3 = vcmp.eq.f32.partialorder %v932_v1, 8.507059e+37  ;;  %v935_v24 = vor.u32 1.1754944e-38, %v934_v5  ;;  %v812_v25 = vand.u32 2147483647, %v3882_v51 }
  0xb0   : > { %v763_v22 = vsel %vm762_vm13, %v3790_v33, %v761_v7  ;;  %v814_v26 = vand.u32 2147483648, %v3882_v51  ;;  %v3951_v31 = vsel %vm728_vm15, %v729_v44, %v727_v17  ;;  %v361_v34 = vmul.f32 %v3783_v23, %v360_v11 }
  0xb1   : > { %v3194_v3 = vpop.eup %3193  ;;  %v3947_v27 = vsel %vm764_vm14, %v765_v47, %v763_v22  ;;  %3203 = vrsqrt.f32 %v3930_v50  ;;  %vm808_vm5 = vweird.f32 %v3882_v51  ;;  %v661_v14 = vmul.f32 %v3871_v43, %v660_v18 }
  0xb2   : > { %v924_v10 = vmul.f32 %v3194_v3, %v3860_v39  ;;  %v3196_v19 = vpop.eup %3195  ;;  %v570_v46 = vpop.xlane.xlu2 %569  ;;  %vm929_vm4 = vweird.f32 %v3194_v3  ;;  %3205 = vrcp.f32 %v3947_v27  ;;  %vm3969_vm7 = vcmp.eq.f32.partialorder %v812_v25, 8.507059e+37 }
  0xb3   : > { %v3198_v28 = vpop.eup %3197  ;;  %v586_v29 = vpop.xlane.xlu0 %585  ;;  %v3959_v33 = vmul.f32 0.6931472, %v3196_v19  ;;  %v3961_v41 = vmax.f32 %v570_v46, 1e-07  ;;  %vm930_vm6 = vmor %vm928_vm1, %vm929_vm4  ;;  %3207 = vrcp.f32 %v3951_v31  ;;  %v815_v18 = vor.u32 1.1754944e-38, %v814_v26 }
  0xb4   : > { %v925_v21 = vsub.f32 1.0, %v924_v10  ;;  %v3954_v38 = vpop.eup %3199  ;;  %v804_v40 = vmul.f32 %v3198_v28, %v3882_v51  ;;  %v594_v15 = vpop.xlane.xlu1 %593  ;;  %v3965_v44 = vmax.f32 %v586_v29, 1e-07  ;;  %v363_v39 = vsel %vm362_vm0, %v3783_v23, %v361_v34 }
  0xb5   : > { %v3974_v52 = vpop.eup %3201  ;;  %v3978_v32 = vmul.f32 %v3954_v38, %v3878_v37  ;;  %v3983_v1 = vmax.f32 %v594_v15, 1e-07  ;;  %vm809_vm8 = vweird.f32 %v3198_v28  ;;  %3209 = vrsqrt.f32 %v3961_v41 }
  0xb6   : > { %v926_v30 = vmul.f32 %v3194_v3, %v925_v21  ;;  %v805_v36 = vsub.f32 1.0, %v804_v40  ;;  %v662_v10 = vmul.f32 0.5, %v661_v14  ;;  %v3997_v11 = vmul.f32 %v3974_v52, %v3899_v60  ;;  %vm810_vm10 = vmor %vm808_vm5, %vm809_vm8 }
  0xb7   : > { %v3993_v7 = vpop.eup %3203  ;;  %3211 = vrsqrt.f32 %v3965_v44  ;;  %vm988_vm9 = vweird.f32 %v3947_v27  ;;  %v992_v23 = vand.u32 2147483647, %v3947_v27  ;;  %vm943_vm11 = vweird.f32 %v3951_v31 }
  0xb8   : > { %v927_v47 = vadd.f32 %v3194_v3, %v926_v30  ;;  %v806_v2 = vmul.f32 %v3198_v28, %v805_v36  ;;  %v3206_v19 = vpop.eup %3205  ;;  %v663_v21 = vsub.f32 1.5, %v662_v10  ;;  %vm668_vm13 = vcmp.eq.f32.partialorder %v3821_v62, 0.0 }
  0xb9   : > { %v3208_v49 = vpop.eup %3207  ;;  %v984_v46 = vmul.f32 %v3206_v19, %v3947_v27  ;;  %v276_v30 = vmul.f32 %v3885_v53, %v3885_v53  ;;  %vm989_vm14 = vweird.f32 %v3206_v19  ;;  %v949_v36 = vand.u32 2147483648, %v3951_v31 }
  0xba   : > { %v931_v0 = vsel %vm930_vm6, %v3194_v3, %v927_v47  ;;  %v366_v3 = vsel %vm364_vm2, %v365_v61, %v363_v39  ;;  %v807_v17 = vadd.f32 %v3198_v28, %v806_v2  ;;  %v939_v25 = vmul.f32 %v3208_v49, %v3951_v31  ;;  %vm990_vm0 = vmor %vm988_vm9, %vm989_vm14 }
  0xbb   : > { %v936_v58 = vsel %vm3936_vm3, %v935_v24, %v931_v0  ;;  %v503_v61 = vadd.f32 %v366_v3, %v3771_v4  ;;  %v947_v24 = vand.u32 2147483647, %v3951_v31  ;;  %v664_v26 = vmul.f32 %v3871_v43, %v663_v21  ;;  %v4019_v34 = vpop.eup %3209  ;;  %v578_v40 = vpop.xlane.xlu0 %577 }
  0xbc   : > { %v937_v5 = vmul.f32 %v936_v58, %v3866_v42  ;;  %v994_v42 = vand.u32 2147483648, %v3947_v27  ;;  %v811_v22 = vsel %vm810_vm10, %v3198_v28, %v807_v17  ;;  %v985_v29 = vsub.f32 1.0, %v984_v46  ;;  %v221_v27 = vld [vmem:[%s3741_s11 + $0x50] sm:$0xff] }
  0xbd   : > { %v816_v51 = vsel %vm3969_vm7, %v815_v18, %v811_v22  ;;  %v669_v28 = vand.u32 2147483648, %v3821_v62  ;;  %v940_v15 = vsub.f32 1.0, %v939_v25  ;;  %3213 = vlog2.f32 %v503_v61  ;;  %v4024_v14 = vpop.eup %3211 }
  0xbe   : > { %1085 = vperm.xlu1 %3156, %v937_v5   ;;  %v817_v4 = vmul.f32 %v816_v51, %v3873_v45  ;;  %v665_v47 = vmul.f32 %v664_v26, %v3821_v62  ;;  %v625_v43 = vmul.f32 %v3895_v59, %v3924_v12  ;;  %v986_v45 = vmul.f32 %v3206_v19, %v985_v29 }
  0xbf   : > { %v4027_v48 = vadd.f32 -1.0, %v276_v30  ;;  %v941_v0 = vmul.f32 %v3208_v49, %v940_v15  ;;  %vm944_vm15 = vweird.f32 %v3208_v49  ;;  %v4032_v58 = vmax.f32 %v578_v40, 1e-07 }
  0xc0   : > { %1045 = vperm.xlu0 %3158, %v817_v4   ;;  %v667_v18 = vsel %vm666_vm12, %v3821_v62, %v665_v47  ;;  %v626_v39 = vmul.f32 0.5, %v625_v43  ;;  %v987_v2 = vadd.f32 %v3206_v19, %v986_v45  ;;  %v4041_v5 = vmul.f32 %v3993_v7, %v3930_v50  ;;  %vm945_vm2 = vmor %vm943_vm11, %vm944_vm15 }
  0xc1   : > { %v4036_v12 = vsel %vm668_vm13, %v669_v28, %v667_v18  ;;  %3215 = vrsqrt.f32 %v4027_v48  ;;  %v995_v3 = vor.u32 1.1754944e-38, %v994_v42  ;;  %v942_v10 = vadd.f32 %v3208_v49, %v941_v0 }
  0xc2   : > { %3217 = vrcp.f32 %v4036_v12  ;;  %v991_v17 = vsel %vm990_vm0, %v3206_v19, %v987_v2  ;;  %vm993_vm1 = vcmp.eq.f32.partialorder %v992_v23, 8.507059e+37  ;;  %v950_v62 = vor.u32 1.1754944e-38, %v949_v36 }
  0xc3   : > { %3219 = vrsqrt.f32 %v3983_v1  ;;  %v3214_v61 = vpop.eup %3213  ;;  %v996_v21 = vsel %vm993_vm1, %v995_v3, %v991_v17  ;;  %v946_v22 = vsel %vm945_vm2, %v3208_v49, %v942_v10  ;;  %vm948_vm3 = vcmp.eq.f32.partialorder %v947_v24, 8.507059e+37 }
  0xc4   : > { %v627_v46 = vsub.f32 1.5, %v626_v39  ;;  %3221 = vrsqrt.f32 %v4032_v58  ;;  %v997_v42 = vmul.f32 %v996_v21, %v3912_v6  ;;  %v951_v51 = vsel %vm948_vm3, %v950_v62, %v946_v22 }
  0xc5   : > { %vm630_vm4 = vcmp.eq.f32.partialorder %v3839_v16, inf  ;;  %v952_v19 = vmul.f32 %v951_v51, %v3959_v33  ;;  %v288_v31 = vmul.f32 %v3893_v57, %v3893_v57  ;;  %v769_v49 = vmul.f32 %v3855_v35, %v3891_v56 }
  0xc6   : > { %v628_v23 = vmul.f32 %v3895_v59, %v627_v46  ;;  %1105 = vperm.xlu2 %3157, %v997_v42   ;;  %v524_v25 = vmul.f32 0.6931472, %v3214_v61  ;;  %vm632_vm5 = vcmp.eq.f32.partialorder %v3839_v16, 0.0  ;;  %v633_v6 = vand.u32 2147483648, %v3839_v16 }
  0xc7   : > { %v3216_v24 = vpop.eup %3215  ;;  %v253_v26 = vadd.f32 1e-07, %v221_v27  ;;  %1090 = vperm.xlu1 %3156, %v952_v19   ;;  %v872_v33 = vand.u32 2147483647, %v4036_v12  ;;  %v4065_v28 = vadd.f32 -1.0, %v288_v31  ;;  %v874_v40 = vand.u32 2147483648, %v4036_v12 }
  0xc8   : > { %v3218_v4 = vpop.eup %3217  ;;  %v320_v59 = vmul.f32 %v3216_v24, %v4027_v48  ;;  %v629_v29 = vmul.f32 %v628_v23, %v3839_v16  ;;  %vm326_vm6 = vcmp.eq.f32.partialorder %v4027_v48, inf  ;;  %v770_v15 = vmul.f32 0.5, %v769_v49 }
  0xc9   : > { %v4067_v30 = vpop.eup %3219  ;;  %v864_v56 = vmul.f32 %v3218_v4, %v4036_v12  ;;  %v4072_v47 = vmax.f32 %v253_v26, 1.0000001  ;;  %3223 = vrsqrt.f32 %v4065_v28  ;;  %v733_v36 = vmul.f32 %v3887_v55, %v3917_v9 }
  0xca   : > { %v321_v43 = vmul.f32 %v3216_v24, %v320_v59  ;;  %v631_v45 = vsel %vm630_vm4, %v3839_v16, %v629_v29  ;;  %v4080_v0 = vpop.eup %3221  ;;  %vm868_vm7 = vweird.f32 %v4036_v12  ;;  %vm328_vm8 = vcmp.eq.f32.partialorder %v4027_v48, 0.0 }
  0xcb   : > { %v865_v18 = vsub.f32 1.0, %v864_v56  ;;  %v4086_v39 = vsel %vm632_vm5, %v633_v6, %v631_v45  ;;  %vm4088_vm9 = vcmp.eq.f32.partialorder %v872_v33, 8.507059e+37  ;;  %v329_v10 = vand.u32 2147483648, %v4027_v48 }
  0xcc   : > { %v322_v3 = vmul.f32 0.5, %v321_v43  ;;  %3225 = vrcp.f32 %v4086_v39  ;;  %vm869_vm10 = vweird.f32 %v3218_v4  ;;  %v771_v17 = vsub.f32 1.5, %v770_v15 }
  0xcd   : > { %v866_v9 = vmul.f32 %v3218_v4, %v865_v18  ;;  %v285_v62 = vmul.f32 %v4072_v47, %v4072_v47  ;;  %v875_v61 = vor.u32 1.1754944e-38, %v874_v40  ;;  %vm774_vm11 = vcmp.eq.f32.partialorder %v3811_v54, inf  ;;  %vm870_vm13 = vmor %vm868_vm7, %vm869_vm10 }
  0xce   : > { %v323_v21 = vsub.f32 1.5, %v322_v3  ;;  %v734_v16 = vmul.f32 0.5, %v733_v36  ;;  %v772_v46 = vmul.f32 %v3855_v35, %v771_v17  ;;  %vm776_vm12 = vcmp.eq.f32.partialorder %v3811_v54, 0.0  ;;  %v225_v3 = vld [vmem:[%s3741_s11 + $0x70] sm:$0xff] }
  0xcf   : > { %v867_v22 = vadd.f32 %v3218_v4, %v866_v9  ;;  %v4099_v27 = vadd.f32 -1.0, %v285_v62  ;;  %v3224_v42 = vpop.eup %3223  ;;  %v827_v19 = vand.u32 2147483647, %v4086_v39  ;;  %v777_v23 = vand.u32 2147483648, %v3811_v54 }
  0xd0   : > { %v324_v51 = vmul.f32 %v3216_v24, %v323_v21  ;;  %v735_v31 = vsub.f32 1.5, %v734_v16  ;;  %v464_v6 = vmul.f32 %v3224_v42, %v4065_v28  ;;  %v773_v26 = vmul.f32 %v772_v46, %v3811_v54 }
  0xd1   : > { %v871_v49 = vsel %vm870_vm13, %v3218_v4, %v867_v22  ;;  %3227 = vrsqrt.f32 %v4099_v27  ;;  %v829_v24 = vand.u32 2147483648, %v4086_v39  ;;  %vm470_vm14 = vcmp.eq.f32.partialorder %v4065_v28, inf }
  0xd2   : > { %v3226_v35 = vpop.eup %3225  ;;  %v876_v33 = vsel %vm4088_vm9, %v875_v61, %v871_v49  ;;  %v325_v12 = vmul.f32 %v4027_v48, %v324_v51  ;;  %v465_v29 = vmul.f32 %v3224_v42, %v464_v6  ;;  %vm472_vm15 = vcmp.eq.f32.partialorder %v4065_v28, 0.0 }
  0xd3   : > { %v877_v59 = vmul.f32 %v876_v33, %v524_v25  ;;  %v819_v4 = vmul.f32 %v3226_v35, %v4086_v39  ;;  %v473_v56 = vand.u32 2147483648, %v4065_v28  ;;  %vm823_vm0 = vweird.f32 %v4086_v39 }
  0xd4   : > { %v327_v40 = vsel %vm326_vm6, %v4027_v48, %v325_v12  ;;  %v775_v15 = vsel %vm774_vm11, %v3811_v54, %v773_v26  ;;  %v736_v43 = vmul.f32 %v3887_v55, %v735_v31  ;;  %vm4126_vm1 = vcmp.eq.f32.partialorder %v827_v19, 8.507059e+37 }
  0xd5   : > { %1065 = vperm.xlu2 %3157, %v877_v59   ;;  %v330_v25 = vsel %vm328_vm8, %v329_v10, %v327_v40  ;;  %v820_v45 = vsub.f32 1.0, %v819_v4  ;;  %v466_v18 = vmul.f32 0.5, %v465_v29  ;;  %v4132_v2 = vsel %vm776_vm12, %v777_v23, %v775_v15 }
  0xd6   : > { %v500_v9 = vadd.f32 %v330_v25, %v3885_v53  ;;  %v830_v17 = vor.u32 1.1754944e-38, %v829_v24  ;;  %3229 = vrcp.f32 %v4132_v2  ;;  %vm738_vm2 = vcmp.eq.f32.partialorder %v3831_v8, inf }
  0xd7   : > { %v3228_v55 = vpop.eup %3227  ;;  %v821_v48 = vmul.f32 %v3226_v35, %v820_v45  ;;  %vm824_vm3 = vweird.f32 %v3226_v35  ;;  %v467_v10 = vsub.f32 1.5, %v466_v18  ;;  %v737_v62 = vmul.f32 %v736_v43, %v3831_v8 }
  0xd8   : > { %3231 = vlog2.f32 %v500_v9  ;;  %v428_v61 = vmul.f32 %v3228_v55, %v4099_v27  ;;  %v741_v54 = vand.u32 2147483648, %v3831_v8  ;;  %v257_v21 = vadd.f32 1e-07, %v225_v3  ;;  %vm4145_vm5 = vmor %vm823_vm0, %vm824_vm3 }
  0xd9   : > { %v822_v16 = vadd.f32 %v3226_v35, %v821_v48  ;;  %v468_v22 = vmul.f32 %v3224_v42, %v467_v10  ;;  %v739_v53 = vsel %vm738_vm2, %v3831_v8, %v737_v62  ;;  %vm740_vm4 = vcmp.eq.f32.partialorder %v3831_v8, 0.0 }
  0xda   : > { %v429_v51 = vmul.f32 %v3228_v55, %v428_v61  ;;  %vm434_vm6 = vcmp.eq.f32.partialorder %v4099_v27, inf  ;;  %v4150_v19 = vsel %vm740_vm4, %v741_v54, %v739_v53  ;;  %v4152_v23 = vmax.f32 %v257_v21, 1.0000001 }
  0xdb   : > { %v826_v42 = vsel %vm4145_vm5, %v3226_v35, %v822_v16  ;;  %v469_v31 = vmul.f32 %v4065_v28, %v468_v22  ;;  %vm436_vm7 = vcmp.eq.f32.partialorder %v4099_v27, 0.0  ;;  %3233 = vrcp.f32 %v4150_v19 }
  0xdc   : > { %v3230_v8 = vpop.eup %3229  ;;  %v1007_v39 = vand.u32 2147483647, %v4132_v2  ;;  %v1009_v49 = vand.u32 2147483648, %v4132_v2  ;;  %v430_v6 = vmul.f32 0.5, %v429_v51  ;;  %v781_v26 = vmul.f32 %v3974_v52, %v3997_v11 }
  0xdd   : > { %v471_v33 = vsel %vm470_vm14, %v4065_v28, %v469_v31  ;;  %v999_v35 = vmul.f32 %v3230_v8, %v4132_v2  ;;  %v437_v12 = vand.u32 2147483648, %v4099_v27  ;;  %v289_v24 = vmul.f32 %v4152_v23, %v4152_v23 }
  0xde   : > { %v3232_v59 = vpop.eup %3231  ;;  %v831_v4 = vsel %vm4126_vm1, %v830_v17, %v826_v42  ;;  %v474_v29 = vsel %vm472_vm15, %v473_v56, %v471_v33  ;;  %vm1003_vm8 = vweird.f32 %v4132_v2  ;;  %v431_v11 = vsub.f32 1.5, %v430_v6  ;;  %v216_v17 = vld [vmem:[%s3741_s11 + $0x28] sm:$0xff] }
  0xdf   : > { %v518_v40 = vmul.f32 0.6931472, %v3232_v59  ;;  %v512_v15 = vadd.f32 %v474_v29, %v3893_v57  ;;  %v1000_v43 = vsub.f32 1.0, %v999_v35  ;;  %v4176_v25 = vadd.f32 -1.0, %v289_v24 }
  0xe0   : > { %vm4178_vm9 = vcmp.eq.f32.partialorder %v1007_v39, 8.507059e+37  ;;  %v1010_v18 = vor.u32 1.1754944e-38, %v1009_v49  ;;  %v432_v36 = vmul.f32 %v3228_v55, %v431_v11  ;;  %v782_v3 = vmul.f32 0.5, %v781_v26 }
  0xe1   : > { %v4182_v9 = vpop.eup %3233  ;;  %v832_v28 = vmul.f32 %v831_v4, %v518_v40  ;;  %3235 = vlog2.f32 %v512_v15  ;;  %v1001_v56 = vmul.f32 %v3230_v8, %v1000_v43  ;;  %vm1004_vm10 = vweird.f32 %v3230_v8 }
  0xe2   : > { %v433_v48 = vmul.f32 %v4099_v27, %v432_v36  ;;  %v954_v57 = vmul.f32 %v4182_v9, %v4150_v19  ;;  %vm958_vm11 = vweird.f32 %v4150_v19  ;;  %3237 = vrsqrt.f32 %v4176_v25  ;;  %vm1005_vm12 = vmor %vm1003_vm8, %vm1004_vm10 }
  0xe3   : > { %1050 = vperm.xlu1 %3156, %v832_v28   ;;  %v1002_v10 = vadd.f32 %v3230_v8, %v1001_v56  ;;  %v962_v55 = vand.u32 2147483647, %v4150_v19  ;;  %v964_v62 = vand.u32 2147483648, %v4150_v19  ;;  %v783_v61 = vsub.f32 1.5, %v782_v3  ;;  %v217_v19 = vld [vmem:[%s3741_s11 + $0x30] sm:$0xff] }
  0xe4   : > { %v435_v54 = vsel %vm434_vm6, %v4099_v27, %v433_v48  ;;  %v955_v21 = vsub.f32 1.0, %v954_v57  ;;  %vm786_vm13 = vcmp.eq.f32.partialorder %v3899_v60, inf  ;;  %v248_v16 = vadd.f32 1e-07, %v216_v17  ;;  %v222_v48 = vld [vmem:[%s3741_s11 + $0x58] sm:$0xff] }
  0xe5   : > { %v1006_v22 = vsel %vm1005_vm12, %v3230_v8, %v1002_v10  ;;  %v438_v53 = vsel %vm436_vm7, %v437_v12, %v435_v54  ;;  %v784_v46 = vmul.f32 %v3974_v52, %v783_v61  ;;  %v673_v51 = vmul.f32 %v3903_v63, %v3928_v13 }
  0xe6   : > { %v509_v2 = vadd.f32 %v438_v53, %v4072_v47  ;;  %v956_v42 = vmul.f32 %v4182_v9, %v955_v21  ;;  %vm959_vm14 = vweird.f32 %v4182_v9  ;;  %v4206_v31 = vmax.f32 %v248_v16, 1.0000001 }
  0xe7   : > { %v3236_v39 = vpop.eup %3235  ;;  %v1011_v8 = vsel %vm4178_vm9, %v1010_v18, %v1006_v22  ;;  %v785_v27 = vmul.f32 %v784_v46, %v3899_v60  ;;  %v789_v49 = vand.u32 2147483648, %v3899_v60  ;;  %v674_v52 = vmul.f32 0.5, %v673_v51  ;;  %vm4228_vm0 = vmor %vm958_vm11, %vm959_vm14 }
  0xe8   : > { %v3238_v6 = vpop.eup %3237  ;;  %v542_v26 = vmul.f32 0.6931472, %v3236_v39  ;;  %3239 = vlog2.f32 %v509_v2  ;;  %v957_v13 = vadd.f32 %v4182_v9, %v956_v42  ;;  %v280_v47 = vmul.f32 %v4206_v31, %v4206_v31 }
  0xe9   : > { %v476_v33 = vmul.f32 %v3238_v6, %v4176_v25  ;;  %v787_v35 = vsel %vm786_vm13, %v3899_v60, %v785_v27  ;;  %vm788_vm15 = vcmp.eq.f32.partialorder %v3899_v60, 0.0  ;;  %v675_v12 = vsub.f32 1.5, %v674_v52 }
  0xea   : > { %v4222_v24 = vmul.f32 %v4019_v34, %v3961_v41  ;;  %v1012_v59 = vmul.f32 %v1011_v8, %v542_v26  ;;  %v4232_v29 = vsel %vm788_vm15, %v789_v49, %v787_v35  ;;  %v4234_v11 = vadd.f32 -1.0, %v280_v47 }
  0xeb   : > { %v4238_v60 = vmul.f32 %v4024_v14, %v3965_v44  ;;  %v961_v40 = vsel %vm4228_vm0, %v4182_v9, %v957_v13  ;;  %v477_v15 = vmul.f32 %v3238_v6, %v476_v33  ;;  %3241 = vrcp.f32 %v4232_v29 }
  0xec   : > { %v4247_v43 = vmul.f32 %v4080_v0, %v4032_v58  ;;  %1110 = vperm.xlu2 %3157, %v1012_v59   ;;  %vm963_vm1 = vcmp.eq.f32.partialorder %v962_v55, 8.507059e+37  ;;  %v965_v45 = vor.u32 1.1754944e-38, %v964_v62  ;;  %3243 = vrsqrt.f32 %v4234_v11 }
  0xed   : > { %v478_v18 = vmul.f32 0.5, %v477_v15  ;;  %vm482_vm2 = vcmp.eq.f32.partialorder %v4176_v25, inf  ;;  %v676_v36 = vmul.f32 %v3903_v63, %v675_v12  ;;  %vm678_vm3 = vcmp.eq.f32.partialorder %v3843_v20, inf }
  0xee   : > { %v3240_v3 = vpop.eup %3239  ;;  %v966_v9 = vsel %vm963_vm1, %v965_v45, %v961_v40  ;;  %v681_v28 = vand.u32 2147483648, %v3843_v20  ;;  %v249_v56 = vadd.f32 1e-07, %v217_v19  ;;  %v685_v17 = vmul.f32 %v3954_v38, %v3978_v32 }
  0xef   : > { %v536_v57 = vmul.f32 0.6931472, %v3240_v3  ;;  %v479_v10 = vsub.f32 1.5, %v478_v18  ;;  %v677_v55 = vmul.f32 %v676_v36, %v3843_v20  ;;  %vm680_vm4 = vcmp.eq.f32.partialorder %v3843_v20, 0.0 }
  0xf0   : > { %vm484_vm5 = vcmp.eq.f32.partialorder %v4176_v25, 0.0  ;;  %v485_v63 = vand.u32 2147483648, %v4176_v25  ;;  %v4261_v62 = vmax.f32 %v249_v56, 1.0000001  ;;  %v686_v61 = vmul.f32 0.5, %v685_v17 }
  0xf1   : > { %v4263_v54 = vpop.eup %3241  ;;  %v967_v21 = vmul.f32 %v966_v9, %v536_v57  ;;  %v480_v16 = vmul.f32 %v3238_v6, %v479_v10  ;;  %v679_v32 = vsel %vm678_vm3, %v3843_v20, %v677_v55  ;;  %v254_v22 = vadd.f32 1e-07, %v222_v48 }
  0xf2   : > { %v3244_v53 = vpop.eup %3243  ;;  %v1014_v46 = vmul.f32 %v4263_v54, %v4232_v29  ;;  %vm1018_vm6 = vweird.f32 %v4232_v29  ;;  %v4271_v51 = vsel %vm680_vm4, %v681_v28, %v679_v32  ;;  %v281_v2 = vmul.f32 %v4261_v62, %v4261_v62 }
  0xf3   : > { %1095 = vperm.xlu1 %3156, %v967_v21   ;;  %v481_v42 = vmul.f32 %v4176_v25, %v480_v16  ;;  %v1022_v39 = vand.u32 2147483647, %v4232_v29  ;;  %v368_v8 = vmul.f32 %v3244_v53, %v4234_v11  ;;  %3245 = vrcp.f32 %v4271_v51 }
  0xf4   : > { %v1015_v20 = vsub.f32 1.0, %v1014_v46  ;;  %v1024_v27 = vand.u32 2147483648, %v4232_v29  ;;  %vm374_vm7 = vcmp.eq.f32.partialorder %v4234_v11, inf  ;;  %v4281_v49 = vadd.f32 -1.0, %v281_v2 }
  0xf5   : > { %v483_v52 = vsel %vm482_vm2, %v4176_v25, %v481_v42  ;;  %v369_v6 = vmul.f32 %v3244_v53, %v368_v8  ;;  %v687_v26 = vsub.f32 1.5, %v686_v61  ;;  %v4286_v13 = vmax.f32 %v254_v22, 1.0000001 }
  0xf6   : > { %v486_v47 = vsel %vm484_vm5, %v485_v63, %v483_v52  ;;  %v1016_v33 = vmul.f32 %v4263_v54, %v1015_v20  ;;  %vm376_vm8 = vcmp.eq.f32.partialorder %v4234_v11, 0.0  ;;  %v377_v35 = vand.u32 2147483648, %v4234_v11 }
  0xf7   : > { %v513_v12 = vadd.f32 %v486_v47, %v4152_v23  ;;  %vm4294_vm9 = vcmp.eq.f32.partialorder %v1022_v39, 8.507059e+37  ;;  %v370_v4 = vmul.f32 0.5, %v369_v6  ;;  %3247 = vrsqrt.f32 %v4281_v49  ;;  %v213_v39 = vld [vmem:[%s3741_s11 + $0x10] sm:$0xff] }
  0xf8   : > { %v1017_v40 = vadd.f32 %v4263_v54, %v1016_v33  ;;  %vm1019_vm10 = vweird.f32 %v4263_v54  ;;  %v1025_v25 = vor.u32 1.1754944e-38, %v1024_v27  ;;  %v688_v15 = vmul.f32 %v3954_v38, %v687_v26 }
  0xf9   : > { %v4302_v19 = vpop.eup %3245  ;;  %3249 = vlog2.f32 %v513_v12  ;;  %v371_v45 = vsub.f32 1.5, %v370_v4  ;;  %vm690_vm11 = vcmp.eq.f32.partialorder %v3878_v37, inf  ;;  %v286_v23 = vmul.f32 %v4286_v13, %v4286_v13  ;;  %vm4315_vm13 = vmor %vm1018_vm6, %vm1019_vm10 }
  0xfa   : > { %v879_v18 = vmul.f32 %v4302_v19, %v4271_v51  ;;  %v689_v36 = vmul.f32 %v688_v15, %v3878_v37  ;;  %vm692_vm12 = vcmp.eq.f32.partialorder %v3878_v37, 0.0  ;;  %v745_v3 = vmul.f32 %v4024_v14, %v4238_v60 }
  0xfb   : > { %v372_v9 = vmul.f32 %v3244_v53, %v371_v45  ;;  %v887_v28 = vand.u32 2147483647, %v4271_v51  ;;  %v693_v56 = vand.u32 2147483648, %v3878_v37  ;;  %v4321_v17 = vadd.f32 -1.0, %v286_v23 }
  0xfc   : > { %v1021_v48 = vsel %vm4315_vm13, %v4263_v54, %v1017_v40  ;;  %v880_v57 = vsub.f32 1.0, %v879_v18  ;;  %v889_v60 = vand.u32 2147483648, %v4271_v51  ;;  %v691_v29 = vsel %vm690_vm11, %v3878_v37, %v689_v36 }
  0xfd   : > { %v3248_v10 = vpop.eup %3247  ;;  %v373_v55 = vmul.f32 %v4234_v11, %v372_v9  ;;  %vm883_vm14 = vweird.f32 %v4271_v51  ;;  %v4330_v63 = vsel %vm692_vm12, %v693_v56, %v691_v29  ;;  %3251 = vrsqrt.f32 %v4321_v17 }
  0xfe   : > { %v881_v61 = vmul.f32 %v4302_v19, %v880_v57  ;;  %v380_v21 = vmul.f32 %v3248_v10, %v4281_v49  ;;  %3253 = vrcp.f32 %v4330_v63  ;;  %v746_v54 = vmul.f32 0.5, %v745_v3 }
  0xff   : > { %v3250_v16 = vpop.eup %3249  ;;  %v1026_v37 = vsel %vm4294_vm9, %v1025_v25, %v1021_v48  ;;  %v375_v32 = vsel %vm374_vm7, %v4234_v11, %v373_v55  ;;  %vm884_vm15 = vweird.f32 %v4302_v19  ;;  %vm4342_vm0 = vcmp.eq.f32.partialorder %v887_v28, 8.507059e+37  ;;  %v214_v48 = vld [vmem:[%s3741_s11 + $0x18] sm:$0xff] }
 0x100   : > { %v544_v53 = vmul.f32 0.6931472, %v3250_v16  ;;  %v378_v46 = vsel %vm376_vm8, %v377_v35, %v375_v32  ;;  %v890_v2 = vor.u32 1.1754944e-38, %v889_v60  ;;  %v381_v42 = vmul.f32 %v3248_v10, %v380_v21  ;;  %vm4355_vm3 = vmor %vm883_vm14, %vm884_vm15 }
 0x101   : > { %v504_v8 = vadd.f32 %v378_v46, %v4206_v31  ;;  %v882_v20 = vadd.f32 %v4302_v19, %v881_v61  ;;  %vm386_vm1 = vcmp.eq.f32.partialorder %v4281_v49, inf  ;;  %vm388_vm2 = vcmp.eq.f32.partialorder %v4281_v49, 0.0  ;;  %v226_v46 = vld [vmem:[%s3741_s11 + $0x78] sm:$0xff] }
 0x102   : > { %v1027_v27 = vmul.f32 %v1026_v37, %v544_v53  ;;  %v382_v11 = vmul.f32 0.5, %v381_v42  ;;  %v389_v6 = vand.u32 2147483648, %v4281_v49  ;;  %v747_v26 = vsub.f32 1.5, %v746_v54 }
 0x103   : > { %v3252_v47 = vpop.eup %3251  ;;  %3255 = vlog2.f32 %v504_v8  ;;  %vm750_vm4 = vcmp.eq.f32.partialorder %v3965_v44, inf  ;;  %vm752_vm5 = vcmp.eq.f32.partialorder %v3965_v44, 0.0  ;;  %v245_v31 = vadd.f32 1e-07, %v213_v39 }
 0x104   : > { %v4362_v33 = vpop.eup %3253  ;;  %1115 = vperm.xlu0 %3158, %v1027_v27   ;;  %v383_v35 = vsub.f32 1.5, %v382_v11  ;;  %v440_v51 = vmul.f32 %v3252_v47, %v4321_v17  ;;  %v748_v12 = vmul.f32 %v4024_v14, %v747_v26  ;;  %v637_v59 = vmul.f32 %v3993_v7, %v4041_v5  ;;  %v218_v26 = vld [vmem:[%s3741_s11 + $0x38] sm:$0xff] }
 0x105   : > { %v886_v4 = vsel %vm4355_vm3, %v4302_v19, %v882_v20  ;;  %v894_v40 = vmul.f32 %v4362_v33, %v4330_v63  ;;  %v902_v25 = vand.u32 2147483647, %v4330_v63  ;;  %vm446_vm6 = vcmp.eq.f32.partialorder %v4321_v17, inf }
 0x106   : > { %v4375_v15 = vmax.f32 %v245_v31, 1.0000001  ;;  %v384_v45 = vmul.f32 %v3248_v10, %v383_v35  ;;  %v904_v14 = vand.u32 2147483648, %v4330_v63  ;;  %v441_v23 = vmul.f32 %v3252_v47, %v440_v51 }
 0x107   : > { %v749_v5 = vmul.f32 %v748_v12, %v3965_v44  ;;  %v895_v18 = vsub.f32 1.0, %v894_v40  ;;  %v753_v36 = vand.u32 2147483648, %v3965_v44  ;;  %v638_v3 = vmul.f32 0.5, %v637_v59 }
 0x108   : > { %v277_v19 = vmul.f32 %v4375_v15, %v4375_v15  ;;  %v891_v38 = vsel %vm4342_vm0, %v890_v2, %v886_v4  ;;  %v385_v9 = vmul.f32 %v4281_v49, %v384_v45  ;;  %v442_v28 = vmul.f32 0.5, %v441_v23 }
 0x109   : > { %v751_v56 = vsel %vm750_vm4, %v3965_v44, %v749_v5  ;;  %v3256_v57 = vpop.eup %3255  ;;  %v896_v60 = vmul.f32 %v4362_v33, %v895_v18  ;;  %vm899_vm7 = vweird.f32 %v4362_v33  ;;  %v639_v37 = vsub.f32 1.5, %v638_v3 }
 0x10a   : > { %v4393_v29 = vsel %vm752_vm5, %v753_v36, %v751_v56  ;;  %v4395_v10 = vadd.f32 -1.0, %v277_v19  ;;  %v526_v55 = vmul.f32 0.6931472, %v3256_v57  ;;  %v387_v61 = vsel %vm386_vm1, %v4281_v49, %v385_v9 }
 0x10b   : > { %v443_v21 = vsub.f32 1.5, %v442_v28  ;;  %3257 = vrcp.f32 %v4393_v29  ;;  %v390_v54 = vsel %vm388_vm2, %v389_v6, %v387_v61  ;;  %v897_v16 = vadd.f32 %v4362_v33, %v896_v60 }
 0x10c   : > { %v246_v32 = vadd.f32 1e-07, %v214_v48  ;;  %v892_v44 = vmul.f32 %v891_v38, %v526_v55  ;;  %v505_v22 = vadd.f32 %v390_v54, %v4261_v62  ;;  %vm898_vm8 = vweird.f32 %v4330_v63 }
 0x10d   : > { %v444_v53 = vmul.f32 %v3252_v47, %v443_v21  ;;  %vm4406_vm9 = vcmp.eq.f32.partialorder %v902_v25, 8.507059e+37  ;;  %vm448_vm10 = vcmp.eq.f32.partialorder %v4321_v17, 0.0  ;;  %v449_v2 = vand.u32 2147483648, %v4321_v17  ;;  %vm4415_vm11 = vmor %vm898_vm8, %vm899_vm7 }
 0x10e   : > { %3259 = vrsqrt.f32 %v4395_v10  ;;  %1070 = vperm.xlu2 %3157, %v892_v44   ;;  %v905_v49 = vor.u32 1.1754944e-38, %v904_v14  ;;  %vm642_vm12 = vcmp.eq.f32.partialorder %v3930_v50, inf  ;;  %v901_v42 = vsel %vm4415_vm11, %v4362_v33, %v897_v16 }
 0x10f   : > { %3261 = vlog2.f32 %v505_v22  ;;  %v445_v63 = vmul.f32 %v4321_v17, %v444_v53  ;;  %v640_v39 = vmul.f32 %v3993_v7, %v639_v37  ;;  %vm644_vm13 = vcmp.eq.f32.partialorder %v3930_v50, 0.0 }
 0x110   : > { %v4426_v8 = vmax.f32 %v246_v32, 1.0000001  ;;  %v977_v52 = vand.u32 2147483647, %v4393_v29  ;;  %v645_v11 = vand.u32 2147483648, %v3930_v50  ;;  %v649_v6 = vmul.f32 %v4019_v34, %v4222_v24 }
 0x111   : > { %v3258_v20 = vpop.eup %3257  ;;  %v447_v27 = vsel %vm446_vm6, %v4321_v17, %v445_v63  ;;  %v979_v31 = vand.u32 2147483648, %v4393_v29  ;;  %v641_v33 = vmul.f32 %v640_v39, %v3930_v50  ;;  %v906_v35 = vsel %vm4406_vm9, %v905_v49, %v901_v42 }
 0x112   : > { %v450_v7 = vsel %vm448_vm10, %v449_v2, %v447_v27  ;;  %v969_v47 = vmul.f32 %v3258_v20, %v4393_v29  ;;  %vm974_vm14 = vweird.f32 %v3258_v20  ;;  %v278_v12 = vmul.f32 %v4426_v8, %v4426_v8 }
 0x113   : > { %v510_v51 = vadd.f32 %v450_v7, %v4286_v13  ;;  %v643_v17 = vsel %vm642_vm12, %v3930_v50, %v641_v33  ;;  %v650_v4 = vmul.f32 0.5, %v649_v6  ;;  %v250_v40 = vadd.f32 1e-07, %v218_v26 }
 0x114   : > { %v3260_v24 = vpop.eup %3259  ;;  %v970_v59 = vsub.f32 1.0, %v969_v47  ;;  %v4452_v14 = vsel %vm644_vm13, %v645_v11, %v643_v17  ;;  %v4454_v13 = vadd.f32 -1.0, %v278_v12  ;;  %v697_v18 = vmul.f32 %v4080_v0, %v4247_v43 }
 0x115   : > { %v3262_v25 = vpop.eup %3261  ;;  %3263 = vlog2.f32 %v510_v51  ;;  %v332_v45 = vmul.f32 %v3260_v24, %v4395_v10  ;;  %v4461_v36 = vmul.f32 %v4067_v30, %v3983_v1  ;;  %vm973_vm15 = vweird.f32 %v4393_v29 }
 0x116   : > { %v528_v23 = vmul.f32 0.6931472, %v3262_v25  ;;  %v971_v5 = vmul.f32 %v3258_v20, %v970_v59  ;;  %3265 = vrcp.f32 %v4452_v14  ;;  %vm978_vm0 = vcmp.eq.f32.partialorder %v977_v52, 8.507059e+37  ;;  %vm975_vm1 = vmor %vm973_vm15, %vm974_vm14 }
 0x117   : > { %v333_v19 = vmul.f32 %v3260_v24, %v332_v45  ;;  %3267 = vrsqrt.f32 %v4454_v13  ;;  %v980_v38 = vor.u32 1.1754944e-38, %v979_v31  ;;  %vm338_vm2 = vcmp.eq.f32.partialorder %v4395_v10, inf }
 0x118   : > { %v907_v3 = vmul.f32 %v906_v35, %v528_v23  ;;  %v972_v50 = vadd.f32 %v3258_v20, %v971_v5  ;;  %vm340_vm3 = vcmp.eq.f32.partialorder %v4395_v10, 0.0  ;;  %v651_v28 = vsub.f32 1.5, %v650_v4 }
 0x119   : > { %v334_v9 = vmul.f32 0.5, %v333_v19  ;;  %v4468_v56 = vmax.f32 %v250_v40, 1.0000001  ;;  %v698_v48 = vmul.f32 0.5, %v697_v18  ;;  %v341_v29 = vand.u32 2147483648, %v4395_v10 }
 0x11a   : > { %1075 = vperm.xlu1 %3156, %v907_v3   ;;  %v976_v43 = vsel %vm975_vm1, %v3258_v20, %v972_v50  ;;  %vm654_vm4 = vcmp.eq.f32.partialorder %v3961_v41, inf  ;;  %v652_v54 = vmul.f32 %v4019_v34, %v651_v28  ;;  %vm656_vm5 = vcmp.eq.f32.partialorder %v3961_v41, 0.0 }
 0x11b   : > { %v3264_v57 = vpop.eup %3263  ;;  %v981_v60 = vsel %vm978_vm0, %v980_v38, %v976_v43  ;;  %v335_v55 = vsub.f32 1.5, %v334_v9  ;;  %v282_v16 = vmul.f32 %v4468_v56, %v4468_v56  ;;  %v699_v37 = vsub.f32 1.5, %v698_v48 }
 0x11c   : > { %v4472_v61 = vpop.eup %3265  ;;  %v538_v21 = vmul.f32 0.6931472, %v3264_v57  ;;  %v657_v53 = vand.u32 2147483648, %v3961_v41  ;;  %v653_v49 = vmul.f32 %v652_v54, %v3961_v41  ;;  %vm838_vm6 = vweird.f32 %v4452_v14 }
 0x11d   : > { %v3268_v32 = vpop.eup %3267  ;;  %v336_v44 = vmul.f32 %v3260_v24, %v335_v55  ;;  %v834_v22 = vmul.f32 %v4472_v61, %v4452_v14  ;;  %v4484_v34 = vadd.f32 -1.0, %v282_v16  ;;  %v700_v39 = vmul.f32 %v4080_v0, %v699_v37 }
 0x11e   : > { %v982_v2 = vmul.f32 %v981_v60, %v538_v21  ;;  %v344_v62 = vmul.f32 %v3268_v32, %v4454_v13  ;;  %v655_v27 = vsel %vm654_vm4, %v3961_v41, %v653_v49  ;;  %v258_v52 = vadd.f32 1e-07, %v226_v46  ;;  %v1152_v49 = vld [vmem:[#allocation2 + $0x68] sm:$0xff] }
 0x11f   : > { %v337_v63 = vmul.f32 %v4395_v10, %v336_v44  ;;  %v835_v42 = vsub.f32 1.0, %v834_v22  ;;  %3269 = vrsqrt.f32 %v4484_v34  ;;  %v844_v26 = vand.u32 2147483648, %v4452_v14  ;;  %v1153_v44 = vld [vmem:[#allocation2 + $0x70] sm:$0xff]  ;;  %v1140_v46 = vld [vmem:[#allocation2 + $0x8] sm:$0xff] }
 0x120   : > { %1100 = vperm.xlu0 %3158, %v982_v2   ;;  %v345_v20 = vmul.f32 %v3268_v32, %v344_v62  ;;  %v4500_v0 = vsel %vm656_vm5, %v657_v53, %v655_v27  ;;  %vm839_vm7 = vweird.f32 %v4472_v61  ;;  %v842_v33 = vand.u32 2147483647, %v4452_v14 }
 0x121   : > { %v339_v11 = vsel %vm338_vm2, %v4395_v10, %v337_v63  ;;  %v836_v6 = vmul.f32 %v4472_v61, %v835_v42  ;;  %3271 = vrcp.f32 %v4500_v0  ;;  %vm350_vm8 = vcmp.eq.f32.partialorder %v4454_v13, inf  ;;  %vm4516_vm10 = vmor %vm838_vm6, %vm839_vm7 }
 0x122   : > { %v342_v7 = vsel %vm340_vm3, %v341_v29, %v339_v11  ;;  %v346_v47 = vmul.f32 0.5, %v345_v20  ;;  %vm352_vm9 = vcmp.eq.f32.partialorder %v4454_v13, 0.0  ;;  %v701_v51 = vmul.f32 %v700_v39, %v4032_v58  ;;  %v1151_v11 = vld [vmem:[#allocation2 + $0x60] sm:$0xff] }
 0x123   : > { %v501_v31 = vadd.f32 %v342_v7, %v4375_v15  ;;  %v837_v41 = vadd.f32 %v4472_v61, %v836_v6  ;;  %v4512_v10 = vmax.f32 %v258_v52, 1.0000001  ;;  %v845_v15 = vor.u32 1.1754944e-38, %v844_v26 }
 0x124   : > { %v347_v35 = vsub.f32 1.5, %v346_v47  ;;  %vm702_vm11 = vcmp.eq.f32.partialorder %v4032_v58, inf  ;;  %v705_v24 = vand.u32 2147483648, %v4032_v58  ;;  %vm704_vm12 = vcmp.eq.f32.partialorder %v4032_v58, 0.0 }
 0x125   : > { %3273 = vlog2.f32 %v501_v31  ;;  %v3270_v59 = vpop.eup %3269  ;;  %v703_v4 = vsel %vm702_vm11, %v4032_v58, %v701_v51  ;;  %v290_v40 = vmul.f32 %v4512_v10, %v4512_v10  ;;  %v353_v25 = vand.u32 2147483648, %v4454_v13 }
 0x126   : > { %v348_v17 = vmul.f32 %v3268_v32, %v347_v35  ;;  %v392_v45 = vmul.f32 %v3270_v59, %v4484_v34  ;;  %v4528_v14 = vsel %vm704_vm12, %v705_v24, %v703_v4  ;;  %v793_v23 = vmul.f32 %v4067_v30, %v4461_v36  ;;  %v1154_v32 = vld [vmem:[#allocation2 + $0x78] sm:$0xff]  ;;  %v1149_v24 = vld [vmem:[#allocation2 + $0x50] sm:$0xff] }
 0x127   : > { %v4532_v5 = vpop.eup %3271  ;;  %v841_v18 = vsel %vm4516_vm10, %v4472_v61, %v837_v41  ;;  %vm843_vm13 = vcmp.eq.f32.partialorder %v842_v33, 8.507059e+37  ;;  %3275 = vrcp.f32 %v4528_v14  ;;  %v4544_v36 = vadd.f32 -1.0, %v290_v40  ;;  %3055 = vmatpush.msra.mxu3 %v1154_v32  ;;  %3053 = vmatpush.msra.mxu1 %v1154_v32  ;;  %v1150_v41 = vld [vmem:[#allocation2 + $0x58] sm:$0xff]  ;;  %v1148_v40 = vld [vmem:[#allocation2 + $0x48] sm:$0xff] }
 0x128   : > { %v349_v58 = vmul.f32 %v4454_v13, %v348_v17  ;;  %v849_v19 = vmul.f32 %v4532_v5, %v4500_v0  ;;  %v393_v3 = vmul.f32 %v3270_v59, %v392_v45  ;;  %v794_v38 = vmul.f32 0.5, %v793_v23  ;;  %1155 = vmatpush.msra.mxu0 %v1154_v32  ;;  %3054 = vmatpush.msra.mxu2 %v1154_v32  ;;  %v1147_v23 = vld [vmem:[#allocation2 + $0x40] sm:$0xff] }
 0x129   : > { %v846_v43 = vsel %vm843_vm13, %v845_v15, %v841_v18  ;;  %3277 = vrsqrt.f32 %v4544_v36  ;;  %vm854_vm14 = vweird.f32 %v4532_v5  ;;  %v857_v61 = vand.u32 2147483647, %v4500_v0  ;;  %3058 = vmatpush.msra.mxu3 %v1153_v44  ;;  %3056 = vmatpush.msra.mxu1 %v1153_v44  ;;  %v4608_v18 = vpop.permute.xlu2 %1105 }
 0x12a   : > { %v351_v50 = vsel %vm350_vm8, %v4454_v13, %v349_v58  ;;  %v850_v48 = vsub.f32 1.0, %v849_v19  ;;  %v394_v57 = vmul.f32 0.5, %v393_v3  ;;  %v859_v13 = vand.u32 2147483648, %v4500_v0  ;;  %1156 = vmatpush.msra.mxu0 %v1153_v44  ;;  %3057 = vmatpush.msra.mxu2 %v1153_v44  ;;  %v1146_v19 = vld [vmem:[#allocation2 + $0x38] sm:$0xff] }
 0x12b   : > { %v3274_v9 = vpop.eup %3273  ;;  %v354_v28 = vsel %vm352_vm9, %v353_v25, %v351_v50  ;;  %v795_v37 = vsub.f32 1.5, %v794_v38  ;;  %vm853_vm15 = vweird.f32 %v4500_v0  ;;  %vm398_vm1 = vcmp.eq.f32.partialorder %v4484_v34, inf  ;;  %3061 = vmatpush.msra.mxu3 %v1152_v49  ;;  %3059 = vmatpush.msra.mxu1 %v1152_v49 }
 0x12c   : > { %v520_v60 = vmul.f32 0.6931472, %v3274_v9  ;;  %v502_v55 = vadd.f32 %v354_v28, %v4426_v8  ;;  %v851_v29 = vmul.f32 %v4532_v5, %v850_v48  ;;  %v395_v21 = vsub.f32 1.5, %v394_v57  ;;  %vm4562_vm0 = vmor %vm853_vm15, %vm854_vm14  ;;  %1157 = vmatpush.msra.mxu0 %v1152_v49  ;;  %3060 = vmatpush.msra.mxu2 %v1152_v49  ;;  %v1145_v28 = vld [vmem:[#allocation2 + $0x30] sm:$0xff] }
 0x12d   : > { %v4553_v54 = vpop.eup %3275  ;;  %vm400_vm2 = vcmp.eq.f32.partialorder %v4484_v34, 0.0  ;;  %v401_v2 = vand.u32 2147483648, %v4484_v34  ;;  %v796_v62 = vmul.f32 %v4067_v30, %v795_v37  ;;  %vm798_vm3 = vcmp.eq.f32.partialorder %v3983_v1, inf  ;;  %3064 = vmatpush.msra.mxu3 %v1151_v11  ;;  %3062 = vmatpush.msra.mxu1 %v1151_v11 }
 0x12e   : > { %v847_v16 = vmul.f32 %v846_v43, %v520_v60  ;;  %3279 = vlog2.f32 %v502_v55  ;;  %v852_v8 = vadd.f32 %v4532_v5, %v851_v29  ;;  %v396_v22 = vmul.f32 %v3270_v59, %v395_v21  ;;  %1158 = vmatpush.msra.mxu0 %v1151_v11  ;;  %3063 = vmatpush.msra.mxu2 %v1151_v11  ;;  %v1144_v29 = vld [vmem:[#allocation2 + $0x28] sm:$0xff] }
 0x12f   : > { %v909_v53 = vmul.f32 %v4553_v54, %v4528_v14  ;;  %v3278_v20 = vpop.eup %3277  ;;  %vm858_vm4 = vcmp.eq.f32.partialorder %v857_v61, 8.507059e+37  ;;  %v860_v27 = vor.u32 1.1754944e-38, %v859_v13  ;;  %v797_v52 = vmul.f32 %v796_v62, %v3983_v1  ;;  %3067 = vmatpush.msra.mxu3 %v1150_v41  ;;  %3065 = vmatpush.msra.mxu1 %v1150_v41 }
 0x130   : > { %1055 = vperm.xlu2 %3157, %v847_v16   ;;  %v856_v63 = vsel %vm4562_vm0, %v4532_v5, %v852_v8  ;;  %v397_v42 = vmul.f32 %v4484_v34, %v396_v22  ;;  %v801_v30 = vand.u32 2147483648, %v3983_v1  ;;  %v488_v0 = vmul.f32 %v3278_v20, %v4544_v36  ;;  %1159 = vmatpush.msra.mxu0 %v1150_v41  ;;  %v1143_v16 = vld [vmem:[#allocation2 + $0x20] sm:$0xff]  ;;  %v1141_v22 = vld [vmem:[#allocation2 + $0x10] sm:$0xff] }
 0x131   : > { %v910_v39 = vsub.f32 1.0, %v909_v53  ;;  %vm800_vm5 = vcmp.eq.f32.partialorder %v3983_v1, 0.0  ;;  %v861_v47 = vsel %vm858_vm4, %v860_v27, %v856_v63  ;;  %v799_v33 = vsel %vm798_vm3, %v3983_v1, %v797_v52  ;;  %3070 = vmatpush.msra.mxu3 %v1149_v24  ;;  %3068 = vmatpush.msra.mxu1 %v1149_v24  ;;  %v1066_v8 = vpop.permute.xlu2 %1065  ;;  %v3511_v63 = vld [vmem:[%s3718_s8 + $0x60] sm:$0xff]  ;;  %v3519_v1 = vld [vmem:[%s3718_s8 + $0x50] sm:$0xff] }
 0x132   : > { %v399_v6 = vsel %vm398_vm1, %v4484_v34, %v397_v42  ;;  %v489_v12 = vmul.f32 %v3278_v20, %v488_v0  ;;  %vm914_vm6 = vweird.f32 %v4553_v54  ;;  %v4593_v34 = vsel %vm800_vm5, %v801_v30, %v799_v33  ;;  %3066 = vmatpush.msra.mxu2 %v1150_v41  ;;  %1160 = vmatpush.msra.mxu0 %v1149_v24  ;;  %v1046_v27 = vpop.permute.xlu0 %1045  ;;  %v3512_v30 = vld [vmem:[%s3718_s8 + $0x20] sm:$0xff] }
 0x133   : > { %v911_v26 = vmul.f32 %v4553_v54, %v910_v39  ;;  %v402_v31 = vsel %vm400_vm2, %v401_v2, %v399_v6  ;;  %v919_v17 = vand.u32 2147483648, %v4528_v14  ;;  %vm913_vm7 = vweird.f32 %v4528_v14  ;;  %3073 = vmatpush.msra.mxu3 %v1148_v40  ;;  %3071 = vmatpush.msra.mxu1 %v1148_v40  ;;  %v1139_v39 = vld [vmem:[#allocation2] sm:$0xff] }
 0x134   : > { %v3280_v7 = vpop.eup %3279  ;;  %v506_v51 = vadd.f32 %v402_v31, %v4468_v56  ;;  %v490_v4 = vmul.f32 0.5, %v489_v12  ;;  %v917_v56 = vand.u32 2147483647, %v4528_v14  ;;  %vm4601_vm8 = vmor %vm913_vm7, %vm914_vm6  ;;  %vm494_vm10 = vcmp.eq.f32.partialorder %v4544_v36, inf  ;;  %3069 = vmatpush.msra.mxu2 %v1149_v24  ;;  %1161 = vmatpush.msra.mxu0 %v1148_v40  ;;  %v3513_v6 = vld [vmem:[%s3718_s8] sm:$0xff]  ;;  %v3515_v31 = vld [vmem:[%s3718_s8 + $0x68] sm:$0xff] }
 0x135   : > { %v522_v35 = vmul.f32 0.6931472, %v3280_v7  ;;  %v912_v15 = vadd.f32 %v4553_v54, %v911_v26  ;;  %v920_v14 = vor.u32 1.1754944e-38, %v919_v17  ;;  %v497_v58 = vand.u32 2147483648, %v4544_v36  ;;  %3076 = vmatpush.msra.mxu3 %v1147_v23  ;;  %3074 = vmatpush.msra.mxu1 %v1147_v23  ;;  %v3514_v0 = vld [vmem:[%s3718_s8 + $0x40] sm:$0xff] }
 0x136   : > { %3281 = vlog2.f32 %v506_v51  ;;  %v491_v25 = vsub.f32 1.5, %v490_v4  ;;  %vm918_vm9 = vcmp.eq.f32.partialorder %v917_v56, 8.507059e+37  ;;  %vm496_vm11 = vcmp.eq.f32.partialorder %v4544_v36, 0.0  ;;  %3072 = vmatpush.msra.mxu2 %v1148_v40  ;;  %1162 = vmatpush.msra.mxu0 %v1147_v23 }
 0x137   : > { %v862_v59 = vmul.f32 %v861_v47, %v522_v35  ;;  %3283 = vrcp.f32 %v4593_v34  ;;  %v916_v45 = vsel %vm4601_vm8, %v4553_v54, %v912_v15  ;;  %3079 = vmatpush.msra.mxu3 %v1146_v19  ;;  %vm1033_vm12 = vweird.f32 %v4593_v34  ;;  %3077 = vmatpush.msra.mxu1 %v1146_v19  ;;  %v3516_v35 = vld [vmem:[%s3718_s8 + $0x48] sm:$0xff] }
 0x138   : > { %v492_v5 = vmul.f32 %v3278_v20, %v491_v25  ;;  %v921_v50 = vsel %vm918_vm9, %v920_v14, %v916_v45  ;;  %3075 = vmatpush.msra.mxu2 %v1147_v23  ;;  %v1039_v54 = vand.u32 2147483648, %v4593_v34  ;;  %1163 = vmatpush.msra.mxu0 %v1146_v19  ;;  %v1135_v42 = vmul.f32 %v3511_v63, %v4608_v18  ;;  %v1086_v20 = vpop.permute.xlu1 %1085  ;;  %v3517_v15 = vld [vmem:[%s3718_s8 + $0x28] sm:$0xff]  ;;  %v3520_v45 = vld [vmem:[%s3718_s8 + $0x70] sm:$0xff] }
 0x139   : > { %1060 = vperm.xlu1 %3156, %v862_v59   ;;  %3082 = vmatpush.msra.mxu3 %v1145_v28  ;;  %v1127_v11 = vmul.f32 %v3512_v30, %v1066_v8  ;;  %v1123_v26 = vmul.f32 %v3513_v6, %v1046_v27  ;;  %v1131_v7 = vmul.f32 %v3514_v0, %v1086_v20  ;;  %v3518_v59 = vld [vmem:[%s3718_s8 + $0x8] sm:$0xff]  ;;  %v3521_v14 = vld [vmem:[%s3718_s8 + $0x10] sm:$0xff] }
 0x13a   : > { %v493_v38 = vmul.f32 %v4544_v36, %v492_v5  ;;  %3080 = vmatpush.msra.mxu1 %v1145_v28  ;;  %3078 = vmatpush.msra.mxu2 %v1146_v19  ;;  %v1040_v44 = vor.u32 1.1754944e-38, %v1039_v54 }
 0x13b   : > { %3085 = vmatpush.msra.mxu3 %v1144_v29  ;;  %1164 = vmatpush.msra.mxu0 %v1145_v28 }
 0x13c   : > { %v3282_v3 = vpop.eup %3281  ;;  %v495_v48 = vsel %vm494_vm10, %v4544_v36, %v493_v38  ;;  %v1037_v36 = vand.u32 2147483647, %v4593_v34  ;;  %3083 = vmatpush.msra.mxu1 %v1144_v29  ;;  %3081 = vmatpush.msra.mxu2 %v1145_v28 }
 0x13d   : > { %v3284_v9 = vpop.eup %3283  ;;  %v530_v43 = vmul.f32 0.6931472, %v3282_v3  ;;  %v498_v55 = vsel %vm496_vm11, %v497_v58, %v495_v48  ;;  %3088 = vmatpush.msra.mxu3 %v1143_v16  ;;  %1165 = vmatpush.msra.mxu0 %v1144_v29  ;;  %v3522_v58 = vld [vmem:[%s3718_s8 + $0x30] sm:$0xff] }
 0x13e   : > { %v1029_v57 = vmul.f32 %v3284_v9, %v4593_v34  ;;  %v514_v61 = vadd.f32 %v498_v55, %v4512_v10  ;;  %vm1034_vm13 = vweird.f32 %v3284_v9  ;;  %v1142_v10 = vld [vmem:[#allocation2 + $0x18] sm:$0xff]  ;;  %vm1038_vm15 = vcmp.eq.f32.partialorder %v1037_v36, 8.507059e+37  ;;  %3086 = vmatpush.msra.mxu1 %v1143_v16  ;;  %3084 = vmatpush.msra.mxu2 %v1144_v29 }
 0x13f   : > { %v922_v60 = vmul.f32 %v921_v50, %v530_v43  ;;  %vm4624_vm14 = vmor %vm1033_vm12, %vm1034_vm13  ;;  %3091 = vmatpush.msra.mxu3 %v1142_v10  ;;  %1166 = vmatpush.msra.mxu0 %v1143_v16  ;;  %v3523_v50 = vld [vmem:[%s3718_s8 + $0x58] sm:$0xff] }
 0x140   : > { %v1030_v21 = vsub.f32 1.0, %v1029_v57  ;;  %3285 = vlog2.f32 %v514_v61  ;;  %3089 = vmatpush.msra.mxu1 %v1142_v10  ;;  %3087 = vmatpush.msra.mxu2 %v1143_v16  ;;  %v1091_v41 = vpop.permute.xlu1 %1090  ;;  %v3524_v43 = vld [vmem:[%s3718_s8 + $0x78] sm:$0xff] }
 0x141   : > { %1080 = vperm.xlu0 %3158, %v922_v60   ;;  %3094 = vmatpush.msra.mxu3 %v1141_v22  ;;  %v1132_v51 = vmul.f32 %v3516_v35, %v1091_v41  ;;  %v3525_v57 = vld [vmem:[%s3718_s8 + $0x18] sm:$0xff] }
 0x142   : > { %v1031_v13 = vmul.f32 %v3284_v9, %v1030_v21  ;;  %3092 = vmatpush.msra.mxu1 %v1141_v22  ;;  %1167 = vmatpush.msra.mxu0 %v1142_v10  ;;  %v3526_v29 = vld [vmem:[%s3718_s8 + $0x38] sm:$0xff] }
 0x143   : > { %3097 = vmatpush.msra.mxu3 %v1140_v46  ;;  %3090 = vmatpush.msra.mxu2 %v1142_v10 }
 0x144   : > { %v1032_v32 = vadd.f32 %v3284_v9, %v1031_v13  ;;  %3095 = vmatpush.msra.mxu1 %v1140_v46  ;;  %1168 = vmatpush.msra.mxu0 %v1141_v22 }
 0x145   : > { %3100 = vmatpush.msra.mxu3 %v1139_v39  ;;  %3093 = vmatpush.msra.mxu2 %v1141_v22 }
 0x146   : > { %v1036_v53 = vsel %vm4624_vm14, %v3284_v9, %v1032_v32  ;;  %v3286_v2 = vpop.eup %3285  ;;  %1207 = vmatmul.f32.vlgmr.msra.gmra.mxu3 %v1135_v42  ;;  %3098 = vmatpush.msra.mxu1 %v1139_v39  ;;  %v1111_v47 = vpop.permute.xlu2 %1110 }
 0x147   : > { %v1041_v62 = vsel %vm1038_vm15, %v1040_v44, %v1036_v53  ;;  %v546_v49 = vmul.f32 0.6931472, %v3286_v2  ;;  %1169 = vmatpush.msra.mxu0 %v1140_v46  ;;  %1183 = vmatmul.f32.vlgmr.msra.gmra.mxu1 %v1127_v11  ;;  %v1136_v33 = vmul.f32 %v3515_v31, %v1111_v47 }
 0x148   : > { %3096 = vmatpush.msra.mxu2 %v1140_v46 }
 0x149   : > { %v1042_v52 = vmul.f32 %v1041_v62, %v546_v49  ;;  %1170 = vmatpush.msra.mxu0 %v1139_v39 }
 0x14a   : > { %3099 = vmatpush.msra.mxu2 %v1139_v39  ;;  %1171 = vmatmul.f32.vlgmr.msra.gmra.mxu0 %v1123_v26 }
 0x14b   : > { %1120 = vperm.xlu2 %3157, %v1042_v52   ;;  %1195 = vmatmul.f32.vlgmr.msra.gmra.mxu2 %v1131_v7 }
 0x14e   : > { %1210 = vmatmul.f32.gmra.mxu3 %v1136_v33 }
 0x153   : > { %1198 = vmatmul.f32.gmra.mxu2 %v1132_v51 }
 0x155   : > { %v1051_v24 = vpop.permute.xlu1 %1050 }
 0x156   : > { %v1124_v17 = vmul.f32 %v3518_v59, %v1051_v24 }
 0x158   : > { %1174 = vmatmul.f32.gmra.mxu0 %v1124_v17 }
 0x165   : > { %v1096_v4 = vpop.permute.xlu1 %1095 }
 0x166   : > { %v1133_v25 = vmul.f32 %v3519_v1, %v1096_v4 }
 0x168   : > { %v1071_v12 = vpop.permute.xlu2 %1070  ;;  %1201 = vmatmul.f32.gmra.mxu2 %v1133_v25 }
 0x169   : > { %v1128_v34 = vmul.f32 %v3517_v15, %v1071_v12 }
 0x16b   : > { %1186 = vmatmul.f32.gmra.mxu1 %v1128_v34 }
 0x176   : > { %v1116_v56 = vpop.permute.xlu0 %1115 }
 0x177   : > { %v1137_v23 = vmul.f32 %v3520_v45, %v1116_v56 }
 0x179   : > { %1213 = vmatmul.f32.gmra.mxu3 %v1137_v23 }
 0x18a   : > { %v1056_v40 = vpop.permute.xlu2 %1055 }
 0x18b   : > { %v1125_v5 = vmul.f32 %v3521_v14, %v1056_v40 }
 0x18c   : > { %v1076_v18 = vpop.permute.xlu1 %1075 }
 0x18d   : > { %1177 = vmatmul.f32.gmra.mxu0 %v1125_v5  ;;  %v1129_v19 = vmul.f32 %v3522_v58, %v1076_v18 }
 0x18f   : > { %1189 = vmatmul.f32.gmra.mxu1 %v1129_v19 }
 0x192   : > { %v1101_v3 = vpop.permute.xlu0 %1100 }
 0x193   : > { %v1134_v38 = vmul.f32 %v3523_v50, %v1101_v3 }
 0x195   : > { %1204 = vmatmul.f32.gmra.mxu2 %v1134_v38 }
 0x1a5   : > { %v1121_v9 = vpop.permute.xlu2 %1120 }
 0x1a6   : > { %v1138_v28 = vmul.f32 %v3524_v43, %v1121_v9 }
 0x1a8   : > { %1216 = vmatmul.f32.gmra.mxu3 %v1138_v28 }
 0x1ab   : > { %v1061_v48 = vpop.permute.xlu1 %1060 }
 0x1ac   : > { %v1126_v60 = vmul.f32 %v3525_v57, %v1061_v48 }
 0x1ae   : > { %1180 = vmatmul.f32.gmra.mxu0 %v1126_v60 }
 0x1b3   : > { %v1081_v55 = vpop.permute.xlu0 %1080 }
 0x1b4   : > { %v1130_v61 = vmul.f32 %v3526_v29, %v1081_v55 }
 0x1b6   : > { %1192 = vmatmul.f32.gmra.mxu1 %v1130_v61 }
 0x1c4   : > { %v4647_v21 = vpop.f32.mrf.mxu1 }
 0x1c5   : > { %v1224_v54 = vmul.f32 %v4647_v21, %v4647_v21 }
 0x1c7   : > { %v4651_v36 = vpop.f32.mrf.mxu0  ;;  %1244 = vadd.xlane.f32.xlu1 %v1224_v54 }
 0x1c8   : > { %v1220_v16 = vmul.f32 %v4651_v36, %v4651_v36 }
 0x1c9   : > { %v4655_v13 = vpop.f32.mrf.mxu3 }
 0x1ca   : > { %6729 = vst [vmem:[#allocation8_spill] sm:$0xff] %v4655_v13  ;;  %v1232_v37 = vmul.f32 %v4655_v13, %v4655_v13  ;;  %1236 = vadd.xlane.f32.xlu2 %v1220_v16 }
 0x1cc   : > { %1260 = vadd.xlane.f32.xlu0 %v1232_v37 }
 0x1ce   : > { %v4659_v10 = vpop.f32.mrf.mxu2 }
 0x1cf   : > { %v1228_v32 = vmul.f32 %v4659_v10, %v4659_v10 }
 0x1d1   : > { %v4687_v27 = vpop.f32.mrf.mxu3 }
 0x1d2   : > { %1252 = vadd.xlane.f32.xlu2 %v1228_v32  ;;  %6731 = vst [vmem:[#allocation10_spill] sm:$0xff] %v4687_v27  ;;  %v1233_v41 = vmul.f32 %v4687_v27, %v4687_v27 }
 0x1d5   : > { %v4671_v46 = vpop.f32.mrf.mxu0 }
 0x1d6   : > { %v4663_v44 = vpop.f32.mrf.mxu2  ;;  %v1221_v2 = vmul.f32 %v4671_v46, %v4671_v46 }
 0x1d7   : > { %v1229_v8 = vmul.f32 %v4663_v44, %v4663_v44 }
 0x1d8   : > { %1238 = vadd.xlane.f32.xlu1 %v1221_v2 }
 0x1d9   : > { %1254 = vadd.xlane.f32.xlu0 %v1229_v8 }
 0x1e8   : > { %v4667_v22 = vpop.f32.mrf.mxu1 }
 0x1e9   : > { %v1225_v53 = vmul.f32 %v4667_v22, %v4667_v22 }
 0x1eb   : > { %1246 = vadd.xlane.f32.xlu2 %v1225_v53  ;;  %v4679_v63 = vpop.f32.mrf.mxu2 }
 0x1ec   : > { %6730 = vst [vmem:[#allocation9_spill] sm:$0xff] %v4679_v63  ;;  %v1230_v42 = vmul.f32 %v4679_v63, %v4679_v63 }
 0x1ee   : > { %1256 = vadd.xlane.f32.xlu1 %v1230_v42 }
 0x1fc   : > { %v4689_v52 = vpop.f32.mrf.mxu3 }
 0x1fd   : > { %6732 = vst [vmem:[#allocation11_spill] sm:$0xff] %v4689_v52  ;;  %v1234_v33 = vmul.f32 %v4689_v52, %v4689_v52 }
 0x20a   : > { %v4675_v62 = vpop.f32.mrf.mxu0 }
 0x20b   : > { %v1222_v49 = vmul.f32 %v4675_v62, %v4675_v62 }
 0x20c   : > { %v4683_v39 = vpop.f32.mrf.mxu1 }
 0x20d   : > { %1240 = vadd.xlane.f32.xlu0 %v1222_v49  ;;  %v1226_v20 = vmul.f32 %v4683_v39, %v4683_v39 }
 0x215   : > { %1248 = vadd.xlane.f32.xlu0 %v1226_v20 }
 0x218   : > { %v4699_v0 = vpop.f32.mrf.mxu2 }
 0x219   : > { %6734 = vst [vmem:[#allocation13_spill] sm:$0xff] %v4699_v0  ;;  %v1231_v7 = vmul.f32 %v4699_v0, %v4699_v0 }
 0x22b   : > { %v4691_v30 = vpop.f32.mrf.mxu0  ;;  %v4695_v6 = vpop.f32.mrf.mxu3 }
 0x22c   : > { %v1223_v11 = vmul.f32 %v4691_v30, %v4691_v30  ;;  %6733 = vst [vmem:[#allocation12_spill] sm:$0xff] %v4695_v6  ;;  %v1235_v26 = vmul.f32 %v4695_v6, %v4695_v6 }
 0x22e   : > { %1242 = vadd.xlane.f32.xlu2 %v1223_v11  ;;  %1266 = vadd.xlane.f32.xlu0 %v1235_v26 }
 0x233   : > { %v4703_v47 = vpop.f32.mrf.mxu1 }
 0x234   : > { %v1227_v31 = vmul.f32 %v4703_v47, %v4703_v47 }
 0x236   : > { %1258 = vadd.xlane.f32.xlu2 %v1231_v7  ;;  %1250 = vadd.xlane.f32.xlu1 %v1227_v31 }
 0x23a   : > { %v4714_v40 = vpop.xlane.xlu1 %1244 }
 0x23b   : > { %v1272_v1 = vadd.f32 1e-07, %v4714_v40  ;;  %vm2107_vm6 = vcmp.eq.f32.partialorder %v4714_v40, inf  ;;  %vm2109_vm8 = vcmp.eq.f32.partialorder %v4714_v40, 0.0 }
 0x23d   : > { %v1288_v25 = vmax.f32 %v1272_v1, 1e-06  ;;  %v4719_v5 = vpop.xlane.xlu2 %1236 }
 0x23e   : > { %1264 = vadd.xlane.f32.xlu2 %v1234_v33  ;;  %1262 = vadd.xlane.f32.xlu1 %v1233_v41  ;;  %v1268_v18 = vadd.f32 1e-07, %v4719_v5  ;;  %vm2059_vm11 = vcmp.eq.f32.partialorder %v4719_v5, inf }
 0x23f   : > { %v4711_v35 = vpop.xlane.xlu0 %1260  ;;  %vm1355_vm2 = vcmp.eq.f32.partialorder %v1288_v25, inf  ;;  %v1358_v8 = vand.u32 2147483648, %v1288_v25  ;;  %vm1357_vm3 = vcmp.eq.f32.partialorder %v1288_v25, 0.0 }
 0x240   : > { %v1280_v51 = vadd.f32 1e-07, %v4711_v35  ;;  %v4723_v3 = vmax.f32 %v1268_v18, 1e-06 }
 0x242   : > { %v1296_v12 = vmax.f32 %v1280_v51, 1e-06  ;;  %vm1307_vm4 = vcmp.eq.f32.partialorder %v4723_v3, inf  ;;  %v1310_v18 = vand.u32 2147483648, %v4723_v3  ;;  %vm1309_vm5 = vcmp.eq.f32.partialorder %v4723_v3, 0.0 }
 0x244   : > { %3287 = vrsqrt.f32 %v1296_v12  ;;  %vm1451_vm0 = vcmp.eq.f32.partialorder %v1296_v12, inf  ;;  %v1454_v23 = vand.u32 2147483648, %v1296_v12  ;;  %vm1453_vm1 = vcmp.eq.f32.partialorder %v1296_v12, 0.0 }
 0x245   : > { %3289 = vrsqrt.f32 %v1288_v25  ;;  %v4727_v28 = vpop.xlane.xlu2 %1252 }
 0x246   : > { %3291 = vrsqrt.f32 %v4714_v40  ;;  %v1276_v60 = vadd.f32 1e-07, %v4727_v28 }
 0x247   : > { %3293 = vrsqrt.f32 %v4723_v3 }
 0x248   : > { %v4731_v54 = vmax.f32 %v1276_v60, 1e-06 }
 0x24a   : > { %v3288_v15 = vpop.eup %3287  ;;  %vm1403_vm7 = vcmp.eq.f32.partialorder %v4731_v54, inf  ;;  %vm1405_vm9 = vcmp.eq.f32.partialorder %v4731_v54, 0.0 }
 0x24b   : > { %v1445_v34 = vmul.f32 %v3288_v15, %v1296_v12  ;;  %v3290_v19 = vpop.eup %3289 }
 0x24c   : > { %v1349_v50 = vmul.f32 %v3290_v19, %v1288_v25  ;;  %v3292_v48 = vpop.eup %3291 }
 0x24d   : > { %v1446_v24 = vmul.f32 %v3288_v15, %v1445_v34  ;;  %v3294_v55 = vpop.eup %3293  ;;  %v2101_v16 = vmul.f32 %v3292_v48, %v4714_v40 }
 0x24e   : > { %v1350_v9 = vmul.f32 %v3290_v19, %v1349_v50  ;;  %v1301_v61 = vmul.f32 %v3294_v55, %v4723_v3 }
 0x24f   : > { %v1447_v59 = vmul.f32 0.5, %v1446_v24  ;;  %v2102_v20 = vmul.f32 %v3292_v48, %v2101_v16 }
 0x250   : > { %v1351_v43 = vmul.f32 0.5, %v1350_v9  ;;  %v1302_v32 = vmul.f32 %v3294_v55, %v1301_v61 }
 0x251   : > { %v1448_v17 = vsub.f32 1.5, %v1447_v59  ;;  %v2103_v41 = vmul.f32 0.5, %v2102_v20 }
 0x252   : > { %v1352_v57 = vsub.f32 1.5, %v1351_v43  ;;  %v1303_v49 = vmul.f32 0.5, %v1302_v32 }
 0x253   : > { %v1449_v4 = vmul.f32 %v3288_v15, %v1448_v17 }
 0x254   : > { %v1353_v29 = vmul.f32 %v3290_v19, %v1352_v57  ;;  %v1304_v26 = vsub.f32 1.5, %v1303_v49  ;;  %v4777_v57 = vpop.xlane.xlu0 %1254 }
 0x255   : > { %v1450_v56 = vmul.f32 %v1449_v4, %v1296_v12  ;;  %v1277_v32 = vadd.f32 1e-07, %v4777_v57 }
 0x256   : > { %v1354_v37 = vmul.f32 %v1353_v29, %v1288_v25 }
 0x257   : > { %v1452_v45 = vsel %vm1451_vm0, %v1296_v12, %v1450_v56  ;;  %v1305_v12 = vmul.f32 %v3294_v55, %v1304_v26  ;;  %v2104_v56 = vsub.f32 1.5, %v2103_v41  ;;  %vm2061_vm0 = vcmp.eq.f32.partialorder %v4719_v5, 0.0 }
 0x258   : > { %v4717_v14 = vsel %vm1453_vm1, %v1454_v23, %v1452_v45  ;;  %v1356_v2 = vsel %vm1355_vm2, %v1288_v25, %v1354_v37 }
 0x259   : > { %v1504_v58 = vmin.f32 %v4717_v14, 50.0  ;;  %v4740_v42 = vsel %vm1357_vm3, %v1358_v8, %v1356_v2  ;;  %v1306_v59 = vmul.f32 %v1305_v12, %v4723_v3  ;;  %v2105_v60 = vmul.f32 %v3292_v48, %v2104_v56 }
 0x25a   : > { %v1496_v11 = vmin.f32 %v4740_v42, 50.0  ;;  %v2110_v2 = vand.u32 2147483648, %v4714_v40  ;;  %vm1861_vm1 = vweird.f32 %v4740_v42  ;;  %vm2155_vm3 = vcmp.eq.f32.partialorder %v4727_v28, inf }
 0x25b   : > { %v1532_v38 = vmul.f32 1.442695, %v1504_v58  ;;  %v1308_v23 = vsel %vm1307_vm4, %v4723_v3, %v1306_v59 }
 0x25c   : > { %v1516_v31 = vmul.f32 1.442695, %v1496_v11  ;;  %v4775_v43 = vsel %vm1309_vm5, %v1310_v18, %v1308_v23  ;;  %v2106_v11 = vmul.f32 %v2105_v60, %v4714_v40  ;;  %v1406_v60 = vand.u32 2147483648, %v4731_v54 }
 0x25d   : > { %3295 = vpow2.f32 %v1532_v38  ;;  %v1492_v3 = vmin.f32 %v4775_v43, 50.0 }
 0x25e   : > { %3297 = vrsqrt.f32 %v4731_v54 }
 0x25f   : > { %3299 = vrsqrt.f32 %v4711_v35  ;;  %v1508_v49 = vmul.f32 1.442695, %v1492_v3 }
 0x260   : > { %3301 = vrsqrt.f32 %v4719_v5 }
 0x261   : > { %3303 = vrcp.f32 %v4717_v14 }
 0x263   : > { %v4736_v53 = vpop.eup %3295 }
 0x264   : > { %3305 = vrcp.f32 %v4736_v53  ;;  %v3298_v7 = vpop.eup %3297 }
 0x265   : > { %3307 = vrsqrt.f32 %v4727_v28  ;;  %v4745_v33 = vpop.eup %3299  ;;  %v1397_v15 = vmul.f32 %v3298_v7, %v4731_v54 }
 0x266   : > { %3309 = vrcp.f32 %v4740_v42  ;;  %v4748_v51 = vpop.eup %3301  ;;  %v2197_v24 = vmul.f32 %v4745_v33, %v4711_v35 }
 0x267   : > { %3311 = vpow2.f32 %v1516_v31  ;;  %v4751_v34 = vpop.eup %3303  ;;  %v1398_v17 = vmul.f32 %v3298_v7, %v1397_v15  ;;  %v2053_v1 = vmul.f32 %v4748_v51, %v4719_v5 }
 0x268   : > { %v1977_v45 = vmul.f32 %v4751_v34, %v4717_v14  ;;  %v2198_v9 = vmul.f32 %v4745_v33, %v2197_v24 }
 0x269   : > { %v1399_v58 = vmul.f32 0.5, %v1398_v17  ;;  %v2054_v55 = vmul.f32 %v4748_v51, %v2053_v1  ;;  %v2062_v17 = vand.u32 2147483648, %v4719_v5  ;;  %v4799_v1 = vmax.f32 %v1277_v32, 1e-06 }
 0x26a   : > { %v4756_v4 = vpop.eup %3305  ;;  %v1978_v61 = vsub.f32 1.0, %v1977_v45  ;;  %v2199_v48 = vmul.f32 0.5, %v2198_v9 }
 0x26b   : > { %v4761_v25 = vpop.eup %3307  ;;  %v1709_v38 = vmul.f32 %v4756_v4, %v4736_v53  ;;  %v1400_v29 = vsub.f32 1.5, %v1399_v58  ;;  %v2055_v26 = vmul.f32 0.5, %v2054_v55  ;;  %v2108_v58 = vsel %vm2107_vm6, %v4714_v40, %v2106_v11 }
 0x26c   : > { %v4767_v19 = vpop.eup %3309  ;;  %v2149_v16 = vmul.f32 %v4761_v25, %v4727_v28  ;;  %v4794_v12 = vmul.f32 %v4751_v34, %v1978_v61  ;;  %v2200_v23 = vsub.f32 1.5, %v2199_v48  ;;  %v1867_v11 = vand.u32 2147483648, %v4740_v42 }
 0x26d   : > { %v4770_v50 = vpop.eup %3311  ;;  %v1857_v37 = vmul.f32 %v4767_v19, %v4740_v42  ;;  %v1710_v8 = vsub.f32 1.0, %v1709_v38  ;;  %v1401_v31 = vmul.f32 %v3298_v7, %v1400_v29  ;;  %v2056_v38 = vsub.f32 1.5, %v2055_v26 }
 0x26e   : > { %3313 = vrcp.f32 %v4770_v50  ;;  %v2150_v15 = vmul.f32 %v4761_v25, %v2149_v16  ;;  %v1605_v61 = vand.u32 2147483647, %v4770_v50  ;;  %v1607_v3 = vand.u32 2147483648, %v4770_v50 }
 0x26f   : > { %3315 = vrcp.f32 %v4775_v43  ;;  %v1858_v59 = vsub.f32 1.0, %v1857_v37  ;;  %v1402_v56 = vmul.f32 %v1401_v31, %v4731_v54  ;;  %v1711_v45 = vmul.f32 %v4756_v4, %v1710_v8 }
 0x270   : > { %3317 = vpow2.f32 %v1508_v49  ;;  %v2151_v29 = vmul.f32 0.5, %v2150_v15  ;;  %v1865_v49 = vand.u32 2147483647, %v4740_v42  ;;  %v2057_v26 = vmul.f32 %v4748_v51, %v2056_v38 }
 0x271   : > { %v1404_v9 = vsel %vm1403_vm7, %v4731_v54, %v1402_v56  ;;  %3319 = vrsqrt.f32 %v4799_v1  ;;  %v1859_v16 = vmul.f32 %v4767_v19, %v1858_v59  ;;  %vm1601_vm12 = vweird.f32 %v4770_v50 }
 0x272   : > { %v4817_v37 = vsel %vm1405_vm9, %v1406_v60, %v1404_v9  ;;  %v2152_v59 = vsub.f32 1.5, %v2151_v29  ;;  %v1608_v56 = vor.u32 1.1754944e-38, %v1607_v3  ;;  %vm1862_vm14 = vweird.f32 %v4767_v19 }
 0x273   : > { %v1500_v54 = vmin.f32 %v4817_v37, 50.0  ;;  %vm1606_vm15 = vcmp.eq.f32.partialorder %v1605_v61, 8.507059e+37  ;;  %v4837_v51 = vmul.f32 %v4745_v33, %v2200_v23  ;;  %v2058_v29 = vmul.f32 %v2057_v26, %v4719_v5  ;;  %vm4845_vm2 = vmor %vm1861_vm1, %vm1862_vm14 }
 0x274   : > { %v3314_v24 = vpop.eup %3313  ;;  %v4842_v3 = vadd.f32 %v4756_v4, %v1711_v45  ;;  %v2111_v33 = vsel %vm2109_vm8, %v2110_v2, %v2108_v58  ;;  %v2153_v23 = vmul.f32 %v4761_v25, %v2152_v59  ;;  %vm1866_vm4 = vcmp.eq.f32.partialorder %v1865_v49, 8.507059e+37 }
 0x275   : > { %v1597_v7 = vmul.f32 %v3314_v24, %v4770_v50  ;;  %v4804_v18 = vpop.eup %3315  ;;  %vm1602_vm10 = vweird.f32 %v3314_v24  ;;  %v1524_v15 = vmul.f32 1.442695, %v1500_v54  ;;  %v1805_v58 = vand.u32 2147483647, %v4775_v43 }
 0x276   : > { %v4819_v32 = vpop.eup %3317  ;;  %v1797_v48 = vmul.f32 %v4804_v18, %v4775_v43  ;;  %vm1603_vm13 = vmor %vm1601_vm12, %vm1602_vm10  ;;  %v1807_v54 = vand.u32 2147483648, %v4775_v43  ;;  %vm1802_vm5 = vweird.f32 %v4804_v18  ;;  %vm1801_vm7 = vweird.f32 %v4775_v43 }
 0x277   : > { %v1598_v55 = vsub.f32 1.0, %v1597_v7  ;;  %3321 = vrcp.f32 %v4819_v32  ;;  %v1860_v7 = vadd.f32 %v4767_v19, %v1859_v16  ;;  %v4833_v9 = vpop.eup %3319  ;;  %v1549_v59 = vand.u32 2147483647, %v4819_v32  ;;  %vm4907_vm10 = vmor %vm1801_vm7, %vm1802_vm5 }
 0x278   : > { %3323 = vrcp.f32 %v4817_v37  ;;  %v1409_v61 = vmul.f32 %v4833_v9, %v4799_v1  ;;  %vm4898_vm8 = vcmp.eq.f32.partialorder %v1805_v58, 8.507059e+37  ;;  %vm1545_vm9 = vweird.f32 %v4819_v32 }
 0x279   : > { %v1599_v8 = vmul.f32 %v3314_v24, %v1598_v55  ;;  %v1798_v55 = vsub.f32 1.0, %v1797_v48  ;;  %3325 = vpow2.f32 %v1524_v15  ;;  %v1864_v45 = vsel %vm4845_vm2, %v4767_v19, %v1860_v7 }
 0x27a   : > { %v1868_v48 = vor.u32 1.1754944e-38, %v1867_v11  ;;  %v2060_v19 = vsel %vm2059_vm11, %v4719_v5, %v2058_v29  ;;  %3327 = vrsqrt.f32 %v4777_v57  ;;  %v2154_v15 = vmul.f32 %v2153_v23, %v4727_v28 }
 0x27b   : > { %v1600_v31 = vadd.f32 %v3314_v24, %v1599_v8  ;;  %v1799_v25 = vmul.f32 %v4804_v18, %v1798_v55  ;;  %v1551_v55 = vand.u32 2147483648, %v4819_v32  ;;  %v2063_v29 = vsel %vm2061_vm0, %v2062_v17, %v2060_v19 }
 0x27c   : > { %v4875_v26 = vsel %vm1866_vm4, %v1868_v48, %v1864_v45  ;;  %v1808_v45 = vor.u32 1.1754944e-38, %v1807_v54  ;;  %v4914_v43 = vsel %vm2155_vm3, %v4727_v28, %v2154_v15  ;;  %vm1415_vm11 = vcmp.eq.f32.partialorder %v4799_v1, inf }
 0x27d   : > { %v1604_v60 = vsel %vm1603_vm13, %v3314_v24, %v1600_v31  ;;  %v3322_v42 = vpop.eup %3321  ;;  %vm1550_vm13 = vcmp.eq.f32.partialorder %v1549_v59, 8.507059e+37  ;;  %v1552_v48 = vor.u32 1.1754944e-38, %v1551_v55  ;;  %vm1417_vm14 = vcmp.eq.f32.partialorder %v4799_v1, 0.0 }
 0x27e   : > { %v1609_v38 = vsel %vm1606_vm15, %v1608_v56, %v1604_v60  ;;  %v1541_v40 = vmul.f32 %v3322_v42, %v4819_v32  ;;  %v4865_v2 = vpop.eup %3323  ;;  %v1410_v56 = vmul.f32 %v4833_v9, %v1409_v61  ;;  %vm1546_vm6 = vweird.f32 %v3322_v42 }
 0x27f   : > { %v1768_v16 = vsub.f32 %v4770_v50, %v1609_v38  ;;  %v2158_v50 = vand.u32 2147483648, %v4727_v28  ;;  %v4873_v49 = vpop.eup %3325  ;;  %v1800_v38 = vadd.f32 %v4804_v18, %v1799_v25  ;;  %vm1547_vm12 = vmor %vm1545_vm9, %vm1546_vm6  ;;  %v1418_v59 = vand.u32 2147483648, %v4799_v1 }
 0x280   : > { %v1542_v31 = vsub.f32 1.0, %v1541_v40  ;;  %3329 = vrcp.f32 %v4873_v49  ;;  %v4902_v61 = vpop.eup %3327  ;;  %v1411_v17 = vmul.f32 0.5, %v1410_v56  ;;  %v1661_v54 = vand.u32 2147483647, %v4873_v49 }
 0x281   : > { %v4861_v8 = vmul.f32 0.5, %v1768_v16  ;;  %v1917_v16 = vmul.f32 %v4865_v2, %v4817_v37  ;;  %v1804_v40 = vsel %vm4907_vm10, %v4804_v18, %v1800_v38  ;;  %v1663_v55 = vand.u32 2147483648, %v4873_v49 }
 0x282   : > { %v1543_v60 = vmul.f32 %v3322_v42, %v1542_v31  ;;  %v4924_v31 = vpop.xlane.xlu2 %1246  ;;  %vm1657_vm15 = vweird.f32 %v4873_v49  ;;  %vm1921_vm0 = vweird.f32 %v4817_v37  ;;  %vm2157_vm1 = vcmp.eq.f32.partialorder %v4727_v28, 0.0 }
 0x283   : > { %v2248_v11 = vmul.f32 %v2111_v33, %v4861_v8  ;;  %v1918_v19 = vsub.f32 1.0, %v1917_v16  ;;  %v4936_v16 = vsel %vm4898_vm8, %v1808_v45, %v1804_v40  ;;  %v1273_v5 = vadd.f32 1e-07, %v4924_v31 }
 0x284   : > { %v1544_v33 = vadd.f32 %v3322_v42, %v1543_v60  ;;  %v2161_v60 = vmul.f32 %v4902_v61, %v4777_v57  ;;  %vm1714_vm2 = vweird.f32 %v4756_v4  ;;  %vm4945_vm3 = vcmp.eq.f32.partialorder %v1661_v54, 8.507059e+37 }
 0x285   : > { %v4884_v7 = vmul.f32 %v2248_v11, %v4875_v26  ;;  %v1412_v11 = vsub.f32 1.5, %v1411_v17  ;;  %vm1922_vm5 = vweird.f32 %v4865_v2  ;;  %vm1713_vm6 = vweird.f32 %v4736_v53 }
 0x286   : > { %v3330_v25 = vpop.eup %3329  ;;  %v1548_v58 = vsel %vm1547_vm12, %v3322_v42, %v1544_v33  ;;  %v1927_v42 = vand.u32 2147483648, %v4817_v37  ;;  %v2162_v40 = vmul.f32 %v4902_v61, %v2161_v60  ;;  %vm4989_vm10 = vmor %vm1921_vm0, %vm1922_vm5 }
 0x287   : > { %v4896_v24 = vmax.f32 %v4884_v7, 1e-07  ;;  %v1553_v15 = vsel %vm1550_vm13, %v1552_v48, %v1548_v58  ;;  %v1653_v56 = vmul.f32 %v3330_v25, %v4873_v49  ;;  %v1413_v38 = vmul.f32 %v4833_v9, %v1412_v11  ;;  %vm5008_vm13 = vmor %vm1713_vm6, %vm1714_vm2 }
 0x288   : > { %v1764_v18 = vsub.f32 %v4819_v32, %v1553_v15  ;;  %v1919_v9 = vmul.f32 %v4865_v2, %v1918_v19  ;;  %vm1658_vm4 = vweird.f32 %v3330_v25  ;;  %v1664_v11 = vor.u32 1.1754944e-38, %v1663_v55 }
 0x289   : > { %3331 = vrcp.f32 %v4896_v24  ;;  %v1654_v33 = vsub.f32 1.0, %v1653_v56  ;;  %v1414_v23 = vmul.f32 %v1413_v38, %v4799_v1  ;;  %v4956_v15 = vmax.f32 %v1273_v5, 1e-06  ;;  %vm1659_vm7 = vmor %vm1657_vm15, %vm1658_vm4 }
 0x28a   : > { %v4943_v32 = vmul.f32 0.5, %v1764_v18  ;;  %v2377_v19 = vand.u32 2147483647, %v4896_v24  ;;  %v2379_v56 = vand.u32 2147483648, %v4896_v24  ;;  %v2163_v41 = vmul.f32 0.5, %v2162_v40 }
 0x28b   : > { %v1655_v48 = vmul.f32 %v3330_v25, %v1654_v33  ;;  %v1416_v38 = vsel %vm1415_vm11, %v4799_v1, %v1414_v23  ;;  %3333 = vrsqrt.f32 %v4956_v15  ;;  %v1925_v1 = vand.u32 2147483647, %v4817_v37 }
 0x28c   : > { %v2244_v54 = vmul.f32 %v2063_v29, %v4943_v32  ;;  %v1920_v29 = vadd.f32 %v4865_v2, %v1919_v9  ;;  %v4971_v55 = vsel %vm1417_vm14, %v1418_v59, %v1416_v38  ;;  %vm2373_vm9 = vweird.f32 %v4896_v24 }
 0x28d   : > { %v1656_v18 = vadd.f32 %v3330_v25, %v1655_v48  ;;  %v1501_v48 = vmin.f32 %v4971_v55, 50.0  ;;  %3335 = vrcp.f32 %v4971_v55  ;;  %vm2378_vm12 = vcmp.eq.f32.partialorder %v2377_v19, 8.507059e+37 }
 0x28e   : > { %v4964_v60 = vmul.f32 %v2244_v54, %v4936_v16  ;;  %v1924_v40 = vsel %vm4989_vm10, %v4865_v2, %v1920_v29  ;;  %v1928_v54 = vor.u32 1.1754944e-38, %v1927_v42  ;;  %vm1926_vm14 = vcmp.eq.f32.partialorder %v1925_v1, 8.507059e+37 }
 0x28f   : > { %v3332_v45 = vpop.eup %3331  ;;  %v1660_v5 = vsel %vm1659_vm7, %v3330_v25, %v1656_v18  ;;  %v1526_v59 = vmul.f32 1.442695, %v1501_v48  ;;  %v1716_v2 = vsel %vm5008_vm13, %v4756_v4, %v4842_v3  ;;  %vm2203_vm15 = vcmp.eq.f32.partialorder %v4711_v35, inf }
 0x290   : > { %v2369_v58 = vmul.f32 %v3332_v45, %v4896_v24  ;;  %vm2374_vm8 = vweird.f32 %v3332_v45  ;;  %v4975_v23 = vmax.f32 %v4964_v60, 1e-07  ;;  %v5020_v42 = vsel %vm1926_vm14, %v1928_v54, %v1924_v40 }
 0x291   : > { %vm2375_vm11 = vmor %vm2373_vm9, %vm2374_vm8  ;;  %v6747_v19 = vand.u32 2147483647, %v4736_v53  ;;  %v6748_v18 = vand.u32 2147483648, %v4736_v53  ;;  %v5034_v4 = vadd.f32 %v4751_v34, %v4794_v12  ;;  %v2202_v3 = vmul.f32 %v4837_v51, %v4711_v35 }
 0x292   : > { %v2370_v33 = vsub.f32 1.0, %v2369_v58  ;;  %v1665_v58 = vsel %vm4945_vm3, %v1664_v11, %v1660_v5  ;;  %3337 = vrcp.f32 %v4975_v23  ;;  %v2164_v11 = vsub.f32 1.5, %v2163_v41 }
 0x293   : > { %v1772_v9 = vsub.f32 %v4873_v49, %v1665_v58  ;;  %v2159_v49 = vsel %vm2157_vm1, %v2158_v50, %v4914_v43  ;;  %3339 = vpow2.f32 %v1526_v59  ;;  %vm1718_vm0 = vcmp.eq.f32.partialorder %v6747_v19, 8.507059e+37 }
 0x294   : > { %v2371_v20 = vmul.f32 %v3332_v45, %v2370_v33  ;;  %v1720_v38 = vor.u32 1.1754944e-38, %v6748_v18  ;;  %vm2280_vm1 = vcmp.gt.f32.partialorder %v4884_v7, 1000.0  ;;  %v2165_v48 = vmul.f32 %v4902_v61, %v2164_v11 }
 0x295   : > { %v4999_v24 = vmul.f32 0.5, %v1772_v9  ;;  %3341 = vrsqrt.f32 %v4924_v31  ;;  %v2317_v12 = vand.u32 2147483647, %v4975_v23  ;;  %v5064_v40 = vsel %vm2203_vm15, %v4711_v35, %v2202_v3 }
 0x296   : > { %v2372_v25 = vadd.f32 %v3332_v45, %v2371_v20  ;;  %v2380_v20 = vor.u32 1.1754944e-38, %v2379_v56  ;;  %v5013_v56 = vpop.eup %3333  ;;  %v5043_v9 = vsel %vm1718_vm0, %v1720_v38, %v1716_v2  ;;  %vm2276_vm2 = vcmp.gt.f32.partialorder %v4964_v60, 1000.0 }
 0x297   : > { %v2252_v43 = vmul.f32 %v2159_v49, %v4999_v24  ;;  %v1361_v51 = vmul.f32 %v5013_v56, %v4956_v15  ;;  %v2319_v49 = vand.u32 2147483648, %v4975_v23  ;;  %vm2313_vm3 = vweird.f32 %v4975_v23 }
 0x298   : > { %v2376_v37 = vsel %vm2375_vm11, %v3332_v45, %v2372_v25  ;;  %v5022_v45 = vpop.eup %3335  ;;  %vm5079_vm5 = vcmp.eq.f32.partialorder %v2317_v12, 8.507059e+37  ;;  %vm1367_vm6 = vcmp.eq.f32.partialorder %v4956_v15, inf  ;;  %vm1369_vm7 = vcmp.eq.f32.partialorder %v4956_v15, 0.0 }
 0x299   : > { %v2381_v50 = vsel %vm2378_vm12, %v2380_v20, %v2376_v37  ;;  %v5030_v33 = vmul.f32 %v2252_v43, %v5020_v42  ;;  %v3338_v29 = vpop.eup %3337  ;;  %v5068_v37 = vmul.f32 %v2165_v48, %v4777_v57  ;;  %v1362_v43 = vmul.f32 %v5013_v56, %v1361_v51  ;;  %v5093_v51 = vpop.xlane.xlu1 %1238 }
 0x29a   : > { %v2382_v41 = vmul.f32 1000.0, %v2381_v50  ;;  %v5041_v58 = vpop.eup %3339  ;;  %v2309_v59 = vmul.f32 %v3338_v29, %v4975_v23  ;;  %vm2314_vm4 = vweird.f32 %v3338_v29  ;;  %v2320_v19 = vor.u32 1.1754944e-38, %v2319_v49 }
 0x29b   : > { %v5051_v25 = vmax.f32 %v5030_v33, 1e-07  ;;  %3343 = vrcp.f32 %v5041_v58  ;;  %v5077_v2 = vpop.eup %3341  ;;  %v1363_v48 = vmul.f32 0.5, %v1362_v43  ;;  %vm2315_vm8 = vmor %vm2313_vm3, %vm2314_vm4  ;;  %vm1671_vm9 = vweird.f32 %v5041_v58 }
 0x29c   : > { %v5038_v5 = vsel %vm2280_vm1, %v2382_v41, 1.0  ;;  %v2310_v17 = vsub.f32 1.0, %v2309_v59  ;;  %v1675_v12 = vand.u32 2147483647, %v5041_v58  ;;  %vm1937_vm10 = vweird.f32 %v5022_v45 }
 0x29d   : > { %v2584_v1 = vmul.f32 %v5038_v5, %v4884_v7  ;;  %v1932_v7 = vmul.f32 %v5022_v45, %v4971_v55  ;;  %3345 = vrcp.f32 %v5051_v25  ;;  %vm2433_vm11 = vweird.f32 %v5051_v25 }
 0x29e   : > { %v2311_v11 = vmul.f32 %v3338_v29, %v2310_v17  ;;  %v1677_v49 = vand.u32 2147483648, %v5041_v58  ;;  %v2437_v43 = vand.u32 2147483647, %v5051_v25  ;;  %vm1936_vm12 = vweird.f32 %v4971_v55 }
 0x29f   : > { %v2600_v61 = vmul.f32 %v2584_v1, %v2584_v1  ;;  %v1933_v18 = vsub.f32 1.0, %v1932_v7  ;;  %v1370_v1 = vand.u32 2147483648, %v4956_v15  ;;  %v1364_v7 = vsub.f32 1.5, %v1363_v48 }
 0x2a0   : > { %v2312_v3 = vadd.f32 %v3338_v29, %v2311_v11  ;;  %vm2167_vm13 = vcmp.eq.f32.partialorder %v4777_v57, inf  ;;  %v1269_v50 = vadd.f32 1e-07, %v5093_v51  ;;  %vm5111_vm15 = vcmp.eq.f32.partialorder %v1675_v12, 8.507059e+37 }
 0x2a1   : > { %v5070_v54 = vadd.f32 1.0, %v2600_v61  ;;  %v3344_v38 = vpop.eup %3343  ;;  %v1934_v41 = vmul.f32 %v5022_v45, %v1933_v18  ;;  %vm2169_vm0 = vcmp.eq.f32.partialorder %v4777_v57, 0.0  ;;  %vm5124_vm3 = vcmp.eq.f32.partialorder %v2437_v43, 8.507059e+37 }
 0x2a2   : > { %v1667_v59 = vmul.f32 %v3344_v38, %v5041_v58  ;;  %v2316_v17 = vsel %vm2315_vm8, %v3338_v29, %v2312_v3  ;;  %v2439_v29 = vand.u32 2147483648, %v5051_v25  ;;  %v1365_v3 = vmul.f32 %v5013_v56, %v1364_v7 }
 0x2a3   : > { %3347 = vrsqrt.f32 %v5070_v54  ;;  %v3346_v61 = vpop.eup %3345  ;;  %v2321_v23 = vsel %vm5079_vm5, %v2320_v19, %v2316_v17  ;;  %vm1672_vm14 = vweird.f32 %v3344_v38  ;;  %v2113_v56 = vmul.f32 %v5077_v2, %v4924_v31 }
 0x2a4   : > { %v2429_v11 = vmul.f32 %v3346_v61, %v5051_v25  ;;  %v1668_v28 = vsub.f32 1.0, %v1667_v59  ;;  %v2322_v20 = vmul.f32 1000.0, %v2321_v23  ;;  %v1366_v17 = vmul.f32 %v1365_v3, %v4956_v15  ;;  %vm1673_vm4 = vmor %vm1671_vm9, %vm1672_vm14 }
 0x2a5   : > { %vm2434_vm1 = vweird.f32 %v3346_v61  ;;  %v1678_v23 = vor.u32 1.1754944e-38, %v1677_v49  ;;  %v5133_v3 = vmax.f32 %v1269_v50, 1e-06  ;;  %vm1981_vm5 = vweird.f32 %v4717_v14 }
 0x2a6   : > { %v2430_v48 = vsub.f32 1.0, %v2429_v11  ;;  %v1669_v52 = vmul.f32 %v3344_v38, %v1668_v28  ;;  %v5109_v19 = vsel %vm2276_vm2, %v2322_v20, 1.0  ;;  %vm1982_vm2 = vweird.f32 %v4751_v34  ;;  %vm2435_vm8 = vmor %vm2433_vm11, %vm2434_vm1 }
 0x2a7   : > { %v2580_v28 = vmul.f32 %v5109_v19, %v4964_v60  ;;  %v1368_v11 = vsel %vm1367_vm6, %v4956_v15, %v1366_v17  ;;  %v2440_v49 = vor.u32 1.1754944e-38, %v2439_v29  ;;  %vm5156_vm6 = vmor %vm1936_vm12, %vm1937_vm10  ;;  %3349 = vrsqrt.f32 %v5133_v3 }
 0x2a8   : > { %v2431_v18 = vmul.f32 %v3346_v61, %v2430_v48  ;;  %v1670_v20 = vadd.f32 %v3344_v38, %v1669_v52  ;;  %v1935_v52 = vadd.f32 %v5022_v45, %v1934_v41  ;;  %v5138_v43 = vsel %vm1369_vm7, %v1370_v1, %v1368_v11  ;;  %vm5209_vm11 = vmor %vm1981_vm5, %vm1982_vm2 }
 0x2a9   : > { %v5119_v7 = vpop.eup %3347  ;;  %v2596_v17 = vmul.f32 %v2580_v28, %v2580_v28  ;;  %v2114_v1 = vmul.f32 %v5077_v2, %v2113_v56  ;;  %v6757_v59 = vand.u32 2147483648, %v4971_v55  ;;  %v2170_v28 = vand.u32 2147483648, %v4777_v57 }
 0x2aa   : > { %v2432_v60 = vadd.f32 %v3346_v61, %v2431_v18  ;;  %v1674_v48 = vsel %vm1673_vm4, %v3344_v38, %v1670_v20  ;;  %v2677_v6 = vmul.f32 %v5119_v7, %v5070_v54  ;;  %v1497_v38 = vmin.f32 %v5138_v43, 50.0 }
 0x2ab   : > { %v1679_v50 = vsel %vm5111_vm15, %v1678_v23, %v1674_v48  ;;  %v1943_v56 = vor.u32 1.1754944e-38, %v6757_v59  ;;  %3351 = vrcp.f32 %v5138_v43  ;;  %vm2284_vm7 = vcmp.gt.f32.partialorder %v5030_v33, 1000.0 }
 0x2ac   : > { %v2436_v41 = vsel %vm2435_vm8, %v3346_v61, %v2432_v60  ;;  %v1773_v15 = vsub.f32 %v5041_v58, %v1679_v50  ;;  %v2168_v61 = vsel %vm2167_vm13, %v4777_v57, %v5068_v37  ;;  %v1518_v29 = vmul.f32 1.442695, %v1497_v38 }
 0x2ad   : > { %v2441_v18 = vsel %vm5124_vm3, %v2440_v49, %v2436_v41  ;;  %v1939_v58 = vsel %vm5156_vm6, %v5022_v45, %v1935_v52  ;;  %v2678_v20 = vmul.f32 %v5119_v7, %v2677_v6  ;;  %v5175_v37 = vadd.f32 1.0, %v2596_v17  ;;  %v5196_v41 = vpop.eup %3349 }
 0x2ae   : > { %v2442_v12 = vmul.f32 1000.0, %v2441_v18  ;;  %v5173_v23 = vmul.f32 0.5, %v1773_v15  ;;  %3353 = vpow2.f32 %v1518_v29  ;;  %v2171_v45 = vsel %vm2169_vm0, %v2170_v28, %v2168_v61 }
 0x2af   : > { %v2115_v11 = vmul.f32 0.5, %v2114_v1  ;;  %v6758_v60 = vsub.f32 %v4736_v53, %v5043_v9  ;;  %v6760_v6 = vand.u32 2147483647, %v4971_v55  ;;  %v1985_v50 = vand.u32 2147483647, %v4717_v14 }
 0x2b0   : > { %v5185_v52 = vsel %vm2284_vm7, %v2442_v12, 1.0  ;;  %v2253_v49 = vmul.f32 %v2171_v45, %v5173_v23  ;;  %v2206_v38 = vand.u32 2147483648, %v4711_v35  ;;  %v1987_v53 = vand.u32 2147483648, %v4717_v14 }
 0x2b1   : > { %v5183_v48 = vmul.f32 0.5, %v6758_v60  ;;  %vm1941_vm9 = vcmp.eq.f32.partialorder %v6760_v6, 8.507059e+37  ;;  %v2588_v57 = vmul.f32 %v5185_v52, %v5030_v33  ;;  %vm2205_vm10 = vcmp.eq.f32.partialorder %v4711_v35, 0.0  ;;  %v5203_v15 = vpop.eup %3351 }
 0x2b2   : > { %v5194_v17 = vsel %vm1941_vm9, %v1943_v56, %v1939_v58  ;;  %v2679_v9 = vmul.f32 0.5, %v2678_v20  ;;  %v2207_v1 = vsel %vm2205_vm10, %v2206_v38, %v5064_v40  ;;  %3355 = vrsqrt.f32 %v5175_v37 }
 0x2b3   : > { %6759 = vst [vmem:[#allocation14_spill] sm:$0xff] %v5183_v48  ;;  %v5201_v55 = vmul.f32 %v2253_v49, %v5194_v17  ;;  %v2604_v18 = vmul.f32 %v2588_v57, %v2588_v57  ;;  %v2116_v35 = vsub.f32 1.5, %v2115_v11  ;;  %v1984_v61 = vsel %vm5209_vm11, %v4751_v34, %v5034_v4 }
 0x2b4   : > { %v5215_v25 = vpop.eup %3353  ;;  %v2256_v29 = vmul.f32 %v2207_v1, %v5183_v48  ;;  %3357 = vrsqrt.f32 %v5093_v51  ;;  %v2820_v58 = vlaneseq  ;;  %v1313_v59 = vmul.f32 %v5196_v41, %v5133_v3 }
 0x2b5   : > { %v5223_v14 = vmax.f32 %v5201_v55, 1e-07  ;;  %v5226_v40 = vadd.f32 1.0, %v2604_v18  ;;  %3359 = vrcp.f32 %v5215_v25  ;;  %v1988_v56 = vor.u32 1.1754944e-38, %v1987_v53 }
 0x2b6   : > { %v2680_v28 = vsub.f32 1.5, %v2679_v9  ;;  %vm1986_vm12 = vcmp.eq.f32.partialorder %v1985_v50, 8.507059e+37  ;;  %v1872_v34 = vmul.f32 %v5203_v15, %v5138_v43  ;;  %v2117_v4 = vmul.f32 %v5077_v2, %v2116_v35 }
 0x2b7   : > { %3361 = vrcp.f32 %v5223_v14  ;;  %v5236_v20 = vsel %vm1986_vm12, %v1988_v56, %v1984_v61  ;;  %v5243_v11 = vand.u32 127, %v2820_v58  ;;  %v2452_v60 = vand.u32 2147483647, %v5223_v14 }
 0x2b8   : > { %3363 = vrsqrt.f32 %v5226_v40  ;;  %6763 = vst [vmem:[#allocation15_spill] sm:$0xff] %v5236_v20  ;;  %v5238_v12 = vpop.eup %3355  ;;  %v5241_v45 = vmul.f32 %v2256_v29, %v5236_v20  ;;  %v1314_v6 = vmul.f32 %v5196_v41, %v1313_v59  ;;  %v5250_v50 = vmul.f32 %v5119_v7, %v2680_v28 }
 0x2b9   : > { %v1619_v2 = vand.u32 2147483647, %v5215_v25  ;;  %v2454_v9 = vand.u32 2147483648, %v5223_v14  ;;  %v1873_v33 = vsub.f32 1.0, %v1872_v34  ;;  %v2118_v1 = vmul.f32 %v2117_v4, %v4924_v31 }
 0x2ba   : > { %v5247_v49 = vpop.eup %3357  ;;  %v1315_v18 = vmul.f32 0.5, %v1314_v6  ;;  %v2629_v61 = vmul.f32 %v5238_v12, %v5175_v37  ;;  %vm2448_vm13 = vweird.f32 %v5223_v14  ;;  %vm1615_vm14 = vweird.f32 %v5215_v25 }
 0x2bb   : > { %v3360_v53 = vpop.eup %3359  ;;  %vm5263_vm15 = vcmp.eq.f32.partialorder %v2452_v60, 8.507059e+37  ;;  %vm1877_vm0 = vweird.f32 %v5203_v15  ;;  %vm2119_vm1 = vcmp.eq.f32.partialorder %v4924_v31, inf  ;;  %v2065_v28 = vmul.f32 %v5247_v49, %v5093_v51 }
 0x2bc   : > { %v1611_v7 = vmul.f32 %v3360_v53, %v5215_v25  ;;  %v1316_v56 = vsub.f32 1.5, %v1315_v18  ;;  %vm5272_vm2 = vcmp.eq.f32.partialorder %v1619_v2, 8.507059e+37  ;;  %v1621_v60 = vand.u32 2147483648, %v5215_v25 }
 0x2bd   : > { %v3362_v35 = vpop.eup %3361  ;;  %v2455_v38 = vor.u32 1.1754944e-38, %v2454_v9  ;;  %v1874_v27 = vmul.f32 %v5203_v15, %v1873_v33  ;;  %vm1876_vm3 = vweird.f32 %v5138_v43  ;;  %vm1616_vm4 = vweird.f32 %v3360_v53  ;;  %v5284_v9 = vpop.xlane.xlu0 %1240 }
 0x2be   : > { %v3364_v29 = vpop.eup %3363  ;;  %v2444_v58 = vmul.f32 %v3362_v35, %v5223_v14  ;;  %v1612_v4 = vsub.f32 1.0, %v1611_v7  ;;  %v1317_v18 = vmul.f32 %v5196_v41, %v1316_v56  ;;  %vm1319_vm5 = vcmp.eq.f32.partialorder %v5133_v3, inf  ;;  %vm1617_vm9 = vmor %vm1615_vm14, %vm1616_vm4 }
 0x2bf   : > { %v2725_v34 = vmul.f32 %v3364_v29, %v5226_v40  ;;  %vm2449_vm8 = vweird.f32 %v3362_v35  ;;  %vm2121_vm6 = vcmp.eq.f32.partialorder %v4924_v31, 0.0  ;;  %vm1321_vm7 = vcmp.eq.f32.partialorder %v5133_v3, 0.0  ;;  %vm5316_vm12 = vmor %vm1876_vm3, %vm1877_vm0 }
 0x2c0   : > { %v2445_v57 = vsub.f32 1.0, %v2444_v58  ;;  %v1613_v20 = vmul.f32 %v3360_v53, %v1612_v4  ;;  %v1318_v2 = vmul.f32 %v1317_v18, %v5133_v3  ;;  %v2066_v58 = vmul.f32 %v5247_v49, %v2065_v28  ;;  %vm2450_vm10 = vmor %vm2448_vm13, %vm2449_vm8 }
 0x2c1   : > { %v2726_v13 = vmul.f32 %v3364_v29, %v2725_v34  ;;  %v1322_v41 = vand.u32 2147483648, %v5133_v3  ;;  %v1875_v34 = vadd.f32 %v5203_v15, %v1874_v27  ;;  %v1270_v28 = vadd.f32 1e-07, %v5284_v9 }
 0x2c2   : > { %v2446_v7 = vmul.f32 %v3362_v35, %v2445_v57  ;;  %v1614_v48 = vadd.f32 %v3360_v53, %v1613_v20  ;;  %v1622_v57 = vor.u32 1.1754944e-38, %v1621_v60  ;;  %v1320_v4 = vsel %vm1319_vm5, %v5133_v3, %v1318_v2 }
 0x2c3   : > { %v2727_v33 = vmul.f32 0.5, %v2726_v13  ;;  %v5295_v20 = vsel %vm1321_vm7, %v1322_v41, %v1320_v4  ;;  %v2067_v63 = vmul.f32 0.5, %v2066_v58  ;;  %v1882_v14 = vand.u32 2147483648, %v5138_v43 }
 0x2c4   : > { %v2447_v56 = vadd.f32 %v3362_v35, %v2446_v7  ;;  %v1618_v13 = vsel %vm1617_vm9, %v3360_v53, %v1614_v48  ;;  %v1493_v60 = vmin.f32 %v5295_v20, 50.0  ;;  %v2120_v48 = vsel %vm2119_vm1, %v4924_v31, %v2118_v1 }
 0x2c5   : > { %v2728_v18 = vsub.f32 1.5, %v2727_v33  ;;  %v1623_v7 = vsel %vm5272_vm2, %v1622_v57, %v1618_v13  ;;  %v2630_v53 = vmul.f32 %v5238_v12, %v2629_v61  ;;  %vm2285_vm11 = vcmp.gt.f32.partialorder %v5201_v55, 1000.0 }
 0x2c6   : > { %v2451_v0 = vsel %vm2450_vm10, %v3362_v35, %v2447_v56  ;;  %v1769_v3 = vsub.f32 %v5215_v25, %v1623_v7  ;;  %v1510_v6 = vmul.f32 1.442695, %v1493_v60  ;;  %3365 = vrcp.f32 %v5295_v20 }
 0x2c7   : > { %v2456_v27 = vsel %vm5263_vm15, %v2455_v38, %v2451_v0  ;;  %v2729_v35 = vmul.f32 %v3364_v29, %v2728_v18  ;;  %v5321_v25 = vmax.f32 %v1270_v28, 1e-06  ;;  %v1879_v1 = vsel %vm5316_vm12, %v5203_v15, %v1875_v34 }
 0x2c8   : > { %v2457_v2 = vmul.f32 1000.0, %v2456_v27  ;;  %v5310_v33 = vmul.f32 0.5, %v1769_v3  ;;  %3367 = vpow2.f32 %v1510_v6  ;;  %v2068_v61 = vsub.f32 1.5, %v2067_v63 }
 0x2c9   : > { %v6770_v59 = vand.u32 2147483647, %v5138_v43  ;;  %v1883_v58 = vor.u32 1.1754944e-38, %v1882_v14  ;;  %v6771_v41 = vand.u32 2147483648, %v4924_v31  ;;  %v2631_v57 = vmul.f32 0.5, %v2630_v53 }
 0x2ca   : > { %v2557_v38 = vsel %vm2285_vm11, %v2457_v2, 1.0  ;;  %v2730_v4 = vmul.f32 %v2729_v35, %v5226_v40  ;;  %3369 = vrsqrt.f32 %v5321_v25  ;;  %vm6692_vm14 = vcmp.eq.s32.totalorder %v5243_v11, 0  ;;  %v5391_v2 = vpop.xlane.xlu1 %1256 }
 0x2cb   : > { %v2589_v29 = vmul.f32 %v2557_v38, %v5201_v55  ;;  %vm1881_vm13 = vcmp.eq.f32.partialorder %v6770_v59, 8.507059e+37  ;;  %v2123_v56 = vsel %vm2121_vm6, %v6771_v41, %v2120_v48  ;;  %v1930_v63 = vmul.f32 %v5020_v42, %v4999_v24 }
 0x2cc   : > { %v2249_v18 = vmul.f32 %v2123_v56, %v5310_v33  ;;  %v5339_v55 = vsel %vm1881_vm13, %v1883_v58, %v1879_v1  ;;  %v5343_v15 = vmul.f32 %v4875_v26, %v4861_v8  ;;  %v2069_v34 = vmul.f32 %v5247_v49, %v2068_v61  ;;  %v5350_v13 = vpop.eup %3365 }
 0x2cd   : > { %v2605_v43 = vmul.f32 %v2589_v29, %v2589_v29  ;;  %3371 = vrsqrt.f32 %v5284_v9  ;;  %v2682_v28 = vmul.f32 %v5250_v50, %v5070_v54  ;;  %v5356_v24 = vmul.f32 %v4936_v16, %v4943_v32 }
 0x2ce   : > { %v5346_v31 = vmul.f32 %v2249_v18, %v5339_v55  ;;  %vm2731_vm15 = vcmp.eq.f32.partialorder %v5226_v40, inf  ;;  %v5361_v26 = vpop.eup %3367  ;;  %v2632_v42 = vsub.f32 1.5, %v2631_v57  ;;  %v1945_v7 = vmul.f32 %v5194_v17, %v5173_v23 }
 0x2cf   : > { %v5359_v8 = vadd.f32 1.0, %v2605_v43  ;;  %v2732_v49 = vsel %vm2731_vm15, %v5226_v40, %v2730_v4  ;;  %v2044_v50 = vmul.f32 %v1930_v63, %v4659_v10  ;;  %v2734_v16 = vand.u32 2147483648, %v5226_v40 }
 0x2d0   : > { %v5367_v60 = vmax.f32 %v5346_v31, 1e-07  ;;  %v1822_v32 = vand.u32 2147483648, %v5295_v20  ;;  %v3370_v27 = vpop.eup %3369  ;;  %vm2683_vm0 = vcmp.eq.f32.partialorder %v5070_v54, inf  ;;  %vm2733_vm1 = vcmp.eq.f32.partialorder %v5226_v40, 0.0 }
 0x2d1   : > { %3373 = vrsqrt.f32 %v5359_v8  ;;  %v2070_v23 = vmul.f32 %v2069_v34, %v5093_v51  ;;  %v2572_v17 = vmul.f32 %v5185_v52, %v2044_v50  ;;  %v2735_v3 = vsel %vm2733_vm1, %v2734_v16, %v2732_v49 }
 0x2d2   : > { %3375 = vrcp.f32 %v5367_v60  ;;  %v1812_v10 = vmul.f32 %v5350_v13, %v5295_v20  ;;  %v5384_v48 = vsel %vm2683_vm0, %v5070_v54, %v2682_v28  ;;  %v5387_v53 = vmul.f32 %v5238_v12, %v2632_v42 }
 0x2d3   : > { %3377 = vrcp.f32 %v5361_v26  ;;  %v5381_v14 = vpop.eup %3371  ;;  %v2045_v40 = vmul.f32 %v1945_v7, %v4663_v44  ;;  %v1325_v35 = vmul.f32 %v3370_v27, %v5321_v25  ;;  %v1820_v52 = vand.u32 2147483647, %v5295_v20 }
 0x2d4   : > { %v5394_v6 = vor.u32 1.1754944e-38, %v1822_v32  ;;  %vm2071_vm2 = vcmp.eq.f32.partialorder %v5093_v51, inf  ;;  %v2074_v0 = vand.u32 2147483648, %v5093_v51  ;;  %v5400_v1 = vsel %vm6692_vm14, %v2735_v3, %v2572_v17 }
 0x2d5   : > { %v5402_v12 = vmul.f32 %v2557_v38, %v2045_v40  ;;  %v5405_v44 = vsel %vm2071_vm2, %v5093_v51, %v2070_v23  ;;  %v1326_v61 = vmul.f32 %v3370_v27, %v1325_v35  ;;  %v2392_v59 = vand.u32 2147483647, %v5367_v60 }
 0x2d6   : > { %v1813_v58 = vsub.f32 1.0, %v1812_v10  ;;  %vm1331_vm3 = vcmp.eq.f32.partialorder %v5321_v25, inf  ;;  %v2077_v41 = vmul.f32 %v5381_v14, %v5284_v9  ;;  %v1278_v56 = vadd.f32 1e-07, %v5391_v2 }
 0x2d7   : > { %v3374_v29 = vpop.eup %3373  ;;  %vm2388_vm4 = vweird.f32 %v5367_v60  ;;  %vm1817_vm5 = vweird.f32 %v5350_v13  ;;  %v1327_v38 = vmul.f32 0.5, %v1326_v61  ;;  %vm1333_vm8 = vcmp.eq.f32.partialorder %v5321_v25, 0.0 }
 0x2d8   : > { %v3376_v57 = vpop.eup %3375  ;;  %v2737_v4 = vmul.f32 %v3374_v29, %v5359_v8  ;;  %v1334_v18 = vand.u32 2147483648, %v5321_v25  ;;  %v2394_v34 = vand.u32 2147483648, %v5367_v60  ;;  %vm1559_vm6 = vweird.f32 %v5361_v26 }
 0x2d9   : > { %v3378_v63 = vpop.eup %3377  ;;  %v2384_v43 = vmul.f32 %v3376_v57, %v5367_v60  ;;  %v1563_v28 = vand.u32 2147483647, %v5361_v26  ;;  %v1565_v7 = vand.u32 2147483648, %v5361_v26  ;;  %vm1816_vm7 = vweird.f32 %v5295_v20 }
 0x2da   : > { %v2738_v42 = vmul.f32 %v3374_v29, %v2737_v4  ;;  %v1555_v49 = vmul.f32 %v3378_v63, %v5361_v26  ;;  %v1328_v50 = vsub.f32 1.5, %v1327_v38  ;;  %vm2743_vm9 = vcmp.eq.f32.partialorder %v5359_v8, inf }
 0x2db   : > { %v2385_v16 = vsub.f32 1.0, %v2384_v43  ;;  %vm5425_vm10 = vcmp.eq.f32.partialorder %v2392_v59, 8.507059e+37  ;;  %v2078_v23 = vmul.f32 %v5381_v14, %v2077_v41  ;;  %v5430_v17 = vmax.f32 %v1278_v56, 1e-06  ;;  %v5438_v56 = vpop.xlane.xlu0 %1248 }
 0x2dc   : > { %v2739_v3 = vmul.f32 0.5, %v2738_v42  ;;  %vm2745_vm11 = vcmp.eq.f32.partialorder %v5359_v8, 0.0  ;;  %vm2281_vm12 = vcmp.gt.f32.partialorder %v5346_v31, 1000.0  ;;  %v1556_v10 = vsub.f32 1.0, %v1555_v49 }
 0x2dd   : > { %v1814_v40 = vmul.f32 %v5350_v13, %v1813_v58  ;;  %v1329_v35 = vmul.f32 %v3370_v27, %v1328_v50  ;;  %v2386_v61 = vmul.f32 %v3376_v57, %v2385_v16  ;;  %vm2389_vm13 = vweird.f32 %v3376_v57 }
 0x2de   : > { %v2395_v59 = vor.u32 1.1754944e-38, %v2394_v34  ;;  %3379 = vrsqrt.f32 %v5430_v17  ;;  %v2740_v4 = vsub.f32 1.5, %v2739_v3  ;;  %v1557_v38 = vmul.f32 %v3378_v63, %v1556_v10  ;;  %vm2390_vm2 = vmor %vm2388_vm4, %vm2389_vm13 }
 0x2df   : > { %vm1560_vm15 = vweird.f32 %v3378_v63  ;;  %v1330_v41 = vmul.f32 %v1329_v35, %v5321_v25  ;;  %v2387_v43 = vadd.f32 %v3376_v57, %v2386_v61  ;;  %vm5440_vm1 = vcmp.eq.f32.partialorder %v1563_v28, 8.507059e+37 }
 0x2e0   : > { %v2079_v27 = vmul.f32 0.5, %v2078_v23  ;;  %3381 = vrsqrt.f32 %v5391_v2  ;;  %v2741_v58 = vmul.f32 %v3374_v29, %v2740_v4  ;;  %v1558_v34 = vadd.f32 %v3378_v63, %v1557_v38  ;;  %vm1561_vm14 = vmor %vm1559_vm6, %vm1560_vm15 }
 0x2e1   : > { %v1815_v49 = vadd.f32 %v5350_v13, %v1814_v40  ;;  %vm5450_vm0 = vcmp.eq.f32.partialorder %v1820_v52, 8.507059e+37  ;;  %v1332_v28 = vsel %vm1331_vm3, %v5321_v25, %v1330_v41  ;;  %v2391_v16 = vsel %vm2390_vm2, %v3376_v57, %v2387_v43  ;;  %vm5480_vm3 = vmor %vm1816_vm7, %vm1817_vm5 }
 0x2e2   : > { %v1566_v29 = vor.u32 1.1754944e-38, %v1565_v7  ;;  %v5462_v60 = vsel %vm1333_vm8, %v1334_v18, %v1332_v28  ;;  %v1274_v23 = vadd.f32 1e-07, %v5438_v56  ;;  %v2742_v52 = vmul.f32 %v2741_v58, %v5359_v8 }
 0x2e3   : > { %v2396_v3 = vsel %vm5425_vm10, %v2395_v59, %v2391_v16  ;;  %v1562_v10 = vsel %vm1561_vm14, %v3378_v63, %v1558_v34  ;;  %v1494_v40 = vmin.f32 %v5462_v60, 50.0  ;;  %v2746_v7 = vand.u32 2147483648, %v5359_v8 }
 0x2e4   : > { %v5469_v57 = vpop.eup %3379  ;;  %v2397_v35 = vmul.f32 1000.0, %v2396_v3  ;;  %v1567_v25 = vsel %vm5440_vm1, %v1566_v29, %v1562_v10  ;;  %v2080_v63 = vsub.f32 1.5, %v2079_v27  ;;  %v2744_v32 = vsel %vm2743_vm9, %v5359_v8, %v2742_v52 }
 0x2e5   : > { %v1765_v61 = vsub.f32 %v5361_v26, %v1567_v25  ;;  %v1819_v59 = vsel %vm5480_vm3, %v5350_v13, %v1815_v49  ;;  %v1512_v4 = vmul.f32 1.442695, %v1494_v40  ;;  %v2747_v20 = vsel %vm2745_vm11, %v2746_v7, %v2744_v32 }
 0x2e6   : > { %v5491_v38 = vpop.eup %3381  ;;  %v2553_v41 = vsel %vm2281_vm12, %v2397_v35, 1.0  ;;  %v1421_v43 = vmul.f32 %v5469_v57, %v5430_v17  ;;  %v5499_v42 = vmax.f32 %v1274_v23, 1e-06  ;;  %vm6780_vm14 = vcmp.eq.s32.totalorder %v5243_v11, 0 }
 0x2e7   : > { %v2832_v26 = vsel %vm6780_vm14, %v2747_v20, %v5402_v12  ;;  %v2585_v13 = vmul.f32 %v2553_v41, %v5346_v31  ;;  %v5505_v27 = vmul.f32 0.5, %v1765_v61  ;;  %3383 = vrcp.f32 %v5462_v60  ;;  %vm6782_vm6 = vmmov %vm6780_vm14 }
 0x2e8   : > { %v3029_v8 = vpack.c.bf16 %v2832_v26, %v5400_v1  ;;  %vm6781_vm4 = vcmp.eq.f32.partialorder %v5093_v51, 0.0  ;;  %3385 = vpow2.f32 %v1512_v4  ;;  %v2081_v34 = vmul.f32 %v5381_v14, %v2080_v63 }
 0x2e9   : > { %v2075_v58 = vsel %vm6781_vm4, %v2074_v0, %v5405_v44  ;;  %v2601_v49 = vmul.f32 %v2585_v13, %v2585_v13  ;;  %v1422_v31 = vmul.f32 %v5469_v57, %v1421_v43  ;;  %v2173_v28 = vmul.f32 %v5491_v38, %v5391_v2 }
 0x2ea   : > { %v2245_v12 = vmul.f32 %v2075_v58, %v5505_v27  ;;  %v5520_v16 = vmax.f32 %v5241_v45, 1e-07  ;;  %v2686_v1 = vand.u32 2147483648, %v5070_v54  ;;  %3049 = vst [vmem:[%s5523_s20 + $0x20] sm:$0xff] %v3029_v8   ;;  %v5529_v51 = vsel %vm5450_vm0, %v5394_v6, %v1819_v59 }
 0x2eb   : > { %3387 = vrsqrt.f32 %v5499_v42  ;;  %v2040_v14 = vmul.f32 %v5343_v15, %v4647_v21  ;;  %vm2685_vm5 = vcmp.eq.f32.partialorder %v5070_v54, 0.0  ;;  %v5535_v0 = vadd.f32 1.0, %v2601_v49 }
 0x2ec   : > { %v5538_v44 = vmul.f32 %v2245_v12, %v5529_v51  ;;  %v2687_v29 = vsel %vm2685_vm5, %v2686_v1, %v5384_v48  ;;  %v2634_v23 = vmul.f32 %v5387_v53, %v5175_v37  ;;  %v2082_v6 = vmul.f32 %v2081_v34, %v5284_v9 }
 0x2ed   : > { %v1423_v50 = vmul.f32 0.5, %v1422_v31  ;;  %v5544_v52 = vpop.eup %3383  ;;  %v2568_v3 = vmul.f32 %v5038_v5, %v2040_v14  ;;  %v5549_v21 = vmul.f32 %v5356_v24, %v4651_v36  ;;  %3389 = vrsqrt.f32 %v5535_v0 }
 0x2ee   : > { %v2174_v54 = vmul.f32 %v5491_v38, %v2173_v28  ;;  %v5553_v15 = vpop.eup %3385  ;;  %vm2635_vm8 = vcmp.eq.f32.partialorder %v5175_v37, inf  ;;  %v1885_v48 = vmul.f32 %v5339_v55, %v5310_v33  ;;  %v5559_v53 = vmax.f32 %v5538_v44, 1e-07 }
 0x2ef   : > { %v1424_v10 = vsub.f32 1.5, %v1423_v50  ;;  %v5563_v5 = vsel %vm6782_vm6, %v2687_v29, %v2568_v3  ;;  %v2638_v36 = vand.u32 2147483648, %v5175_v37  ;;  %3391 = vrcp.f32 %v5553_v15 }
 0x2f0   : > { %vm2083_vm7 = vcmp.eq.f32.partialorder %v5284_v9, inf  ;;  %v5571_v40 = vsel %vm2635_vm8, %v5175_v37, %v2634_v23  ;;  %3393 = vrcp.f32 %v5559_v53  ;;  %v1837_v33 = vand.u32 2147483648, %v5462_v60 }
 0x2f1   : > { %v5568_v24 = vpop.eup %3387  ;;  %v2084_v55 = vsel %vm2083_vm7, %v5284_v9, %v2082_v6  ;;  %v1827_v7 = vmul.f32 %v5544_v52, %v5462_v60  ;;  %v2086_v35 = vand.u32 2147483648, %v5284_v9  ;;  %v1425_v25 = vmul.f32 %v5469_v57, %v1424_v10 }
 0x2f2   : > { %v5580_v18 = vmul.f32 0.5, %v2174_v54  ;;  %v2041_v63 = vmul.f32 %v1885_v48, %v4667_v22  ;;  %vm2085_vm9 = vcmp.eq.f32.partialorder %v5284_v9, 0.0  ;;  %vm1427_vm10 = vcmp.eq.f32.partialorder %v5430_v17, inf }
 0x2f3   : > { %vm1429_vm11 = vcmp.eq.f32.partialorder %v5430_v17, 0.0  ;;  %v3390_v32 = vpop.eup %3389  ;;  %v5586_v61 = vsel %vm2085_vm9, %v2086_v35, %v2084_v55  ;;  %v1426_v59 = vmul.f32 %v1425_v25, %v5430_v17  ;;  %v1430_v4 = vand.u32 2147483648, %v5430_v17  ;;  %v5622_v25 = vpop.xlane.xlu2 %1242 }
 0x2f4   : > { %v1373_v57 = vmul.f32 %v5568_v24, %v5499_v42  ;;  %v5592_v20 = vmul.f32 %v2553_v41, %v2041_v63  ;;  %v2689_v22 = vmul.f32 %v3390_v32, %v5535_v0  ;;  %v1835_v9 = vand.u32 2147483647, %v5462_v60 }
 0x2f5   : > { %v5596_v43 = vor.u32 1.1754944e-38, %v1837_v33  ;;  %v3392_v26 = vpop.eup %3391  ;;  %v2698_v13 = vand.u32 2147483648, %v5535_v0  ;;  %v1828_v8 = vsub.f32 1.0, %v1827_v7  ;;  %vm1832_vm12 = vweird.f32 %v5544_v52 }
 0x2f6   : > { %v1428_v58 = vsel %vm1427_vm10, %v5430_v17, %v1426_v59  ;;  %v2176_v34 = vsub.f32 1.5, %v5580_v18  ;;  %v3394_v49 = vpop.eup %3393  ;;  %v2690_v12 = vmul.f32 %v3390_v32, %v2689_v22  ;;  %v1569_v41 = vmul.f32 %v3392_v26, %v5553_v15 }
 0x2f7   : > { %vm1573_vm13 = vweird.f32 %v5553_v15  ;;  %v1577_v31 = vand.u32 2147483647, %v5553_v15  ;;  %vm2695_vm15 = vcmp.eq.f32.partialorder %v5535_v0, inf  ;;  %v2324_v28 = vmul.f32 %v3394_v49, %v5559_v53 }
 0x2f8   : > { %v1579_v1 = vand.u32 2147483648, %v5553_v15  ;;  %vm1831_vm0 = vweird.f32 %v5462_v60  ;;  %v5611_v14 = vsel %vm1429_vm11, %v1430_v4, %v1428_v58  ;;  %v1374_v29 = vmul.f32 %v5568_v24, %v1373_v57 }
 0x2f9   : > { %v2691_v23 = vmul.f32 0.5, %v2690_v12  ;;  %vm2697_vm1 = vcmp.eq.f32.partialorder %v5535_v0, 0.0  ;;  %vm2328_vm2 = vweird.f32 %v5559_v53  ;;  %v1570_v6 = vsub.f32 1.0, %v1569_v41  ;;  %vm5648_vm10 = vmor %vm1831_vm0, %vm1832_vm12 }
 0x2fa   : > { %v1502_v50 = vmin.f32 %v5611_v14, 50.0  ;;  %v2325_v3 = vsub.f32 1.0, %v2324_v28  ;;  %v2334_v54 = vand.u32 2147483648, %v5559_v53  ;;  %vm1574_vm3 = vweird.f32 %v3392_v26 }
 0x2fb   : > { %v1829_v48 = vmul.f32 %v5544_v52, %v1828_v8  ;;  %v2692_v10 = vsub.f32 1.5, %v2691_v23  ;;  %vm2277_vm14 = vcmp.gt.f32.partialorder %v5538_v44, 1000.0  ;;  %v1571_v17 = vmul.f32 %v3392_v26, %v1570_v6  ;;  %vm1575_vm6 = vmor %vm1573_vm13, %vm1574_vm3 }
 0x2fc   : > { %v1528_v33 = vmul.f32 1.442695, %v1502_v50  ;;  %3395 = vrcp.f32 %v5611_v14  ;;  %v2326_v55 = vmul.f32 %v3394_v49, %v2325_v3  ;;  %vm2329_vm4 = vweird.f32 %v3394_v49 }
 0x2fd   : > { %v2332_v7 = vand.u32 2147483647, %v5559_v53  ;;  %v1375_v35 = vmul.f32 0.5, %v1374_v29  ;;  %v2693_v18 = vmul.f32 %v3390_v32, %v2692_v10  ;;  %v1572_v63 = vadd.f32 %v3392_v26, %v1571_v17  ;;  %vm2330_vm7 = vmor %vm2328_vm2, %vm2329_vm4 }
 0x2fe   : > { %vm1578_vm5 = vcmp.eq.f32.partialorder %v1577_v31, 8.507059e+37  ;;  %vm5624_vm8 = vcmp.eq.f32.partialorder %v1835_v9, 8.507059e+37  ;;  %3397 = vpow2.f32 %v1528_v33  ;;  %v2327_v4 = vadd.f32 %v3394_v49, %v2326_v55 }
 0x2ff   : > { %v1580_v57 = vor.u32 1.1754944e-38, %v1579_v1  ;;  %v1830_v22 = vadd.f32 %v5544_v52, %v1829_v48  ;;  %v1376_v8 = vsub.f32 1.5, %v1375_v35  ;;  %v2694_v58 = vmul.f32 %v2693_v18, %v5535_v0 }
 0x300   : > { %v2335_v32 = vor.u32 1.1754944e-38, %v2334_v54  ;;  %v1576_v9 = vsel %vm1575_vm6, %v3392_v26, %v1572_v63  ;;  %v1271_v12 = vadd.f32 1e-07, %v5622_v25  ;;  %v2331_v41 = vsel %vm2330_vm7, %v3394_v49, %v2327_v4 }
 0x301   : > { %vm2333_vm9 = vcmp.eq.f32.partialorder %v2332_v7, 8.507059e+37  ;;  %v1581_v31 = vsel %vm1578_vm5, %v1580_v57, %v1576_v9  ;;  %3399 = vrsqrt.f32 %v5438_v56  ;;  %v2696_v1 = vsel %vm2695_vm15, %v5535_v0, %v2694_v58 }
 0x302   : > { %v5638_v28 = vpop.eup %3395  ;;  %v2336_v29 = vsel %vm2333_vm9, %v2335_v32, %v2331_v41  ;;  %v1766_v23 = vsub.f32 %v5553_v15, %v1581_v31  ;;  %v1377_v26 = vmul.f32 %v5568_v24, %v1376_v8  ;;  %v2699_v49 = vsel %vm2697_vm1, %v2698_v13, %v2696_v1 }
 0x303   : > { %v2337_v6 = vmul.f32 1000.0, %v2336_v29  ;;  %v1834_v50 = vsel %vm5648_vm10, %v5544_v52, %v1830_v22  ;;  %v2177_v15 = vmul.f32 %v5491_v38, %v2176_v34  ;;  %vm6787_vm11 = vcmp.eq.s32.totalorder %v5243_v11, 0 }
 0x304   : > { %v5659_v3 = vpop.eup %3397  ;;  %v2828_v60 = vsel %vm6787_vm11, %v2699_v49, %v5592_v20  ;;  %v5664_v54 = vmul.f32 0.5, %v1766_v23  ;;  %v1378_v24 = vmul.f32 %v1377_v26, %v5499_v42  ;;  %v5667_v0 = vmax.f32 %v1271_v12, 1e-06  ;;  %vm6788_vm1 = vmmov %vm6787_vm11 }
 0x305   : > { %v3019_v13 = vpack.c.bf16 %v2828_v60, %v5563_v5  ;;  %v2549_v52 = vsel %vm2277_vm14, %v2337_v6, 1.0  ;;  %3401 = vrcp.f32 %v5659_v3  ;;  %v1947_v38 = vmul.f32 %v5638_v28, %v5611_v14 }
 0x306   : > { %v2581_v34 = vmul.f32 %v2549_v52, %v5538_v44  ;;  %v2246_v20 = vmul.f32 %v5586_v61, %v5664_v54  ;;  %vm1379_vm12 = vcmp.eq.f32.partialorder %v5499_v42, inf  ;;  %v1382_v48 = vand.u32 2147483648, %v5499_v42 }
 0x307   : > { %v5680_v10 = vpop.eup %3399  ;;  %3047 = vst [vmem:[%s5523_s20 + $0x10] sm:$0xff] %v3019_v13   ;;  %v5686_v5 = vsel %vm5624_vm8, %v5596_v43, %v1834_v50  ;;  %v2178_v17 = vmul.f32 %v2177_v15, %v5391_v2  ;;  %v1380_v33 = vsel %vm1379_vm12, %v5499_v42, %v1378_v24  ;;  %vm1381_vm13 = vcmp.eq.f32.partialorder %v5499_v42, 0.0 }
 0x308   : > { %v2597_v44 = vmul.f32 %v2581_v34, %v2581_v34  ;;  %v5692_v61 = vmul.f32 %v2246_v20, %v5686_v5  ;;  %v5694_v55 = vsel %vm1381_vm13, %v1382_v48, %v1380_v33  ;;  %3403 = vrsqrt.f32 %v5667_v0 }
 0x309   : > { %3405 = vrcp.f32 %v5520_v16  ;;  %vm2637_vm15 = vcmp.eq.f32.partialorder %v5175_v37, 0.0  ;;  %v1948_v43 = vsub.f32 1.0, %v1947_v38  ;;  %v1498_v7 = vmin.f32 %v5694_v55, 50.0 }
 0x30a   : > { %v2564_v35 = vmul.f32 %v5109_v19, %v5549_v21  ;;  %v2639_v42 = vsel %vm2637_vm15, %v2638_v36, %v5571_v40  ;;  %v5705_v18 = vadd.f32 1.0, %v2597_v44  ;;  %v5708_v63 = vmax.f32 %v5692_v61, 1e-07 }
 0x30b   : > { %v3402_v59 = vpop.eup %3401  ;;  %v1825_v4 = vmul.f32 %v5529_v51, %v5505_v27  ;;  %vm2179_vm0 = vcmp.eq.f32.partialorder %v5391_v2, inf  ;;  %v1520_v57 = vmul.f32 1.442695, %v1498_v7  ;;  %v2125_v22 = vmul.f32 %v5680_v10, %v5438_v56 }
 0x30c   : > { %3407 = vrsqrt.f32 %v5705_v18  ;;  %v1955_v19 = vand.u32 2147483647, %v5611_v14  ;;  %v2180_v37 = vsel %vm2179_vm0, %v5391_v2, %v2178_v17  ;;  %v5720_v21 = vsel %vm6788_vm1, %v2639_v42, %v2564_v35 }
 0x30d   : > { %3409 = vrcp.f32 %v5708_v63  ;;  %v1949_v27 = vmul.f32 %v5638_v28, %v1948_v43  ;;  %v2182_v51 = vand.u32 2147483648, %v5391_v2  ;;  %v1681_v40 = vmul.f32 %v3402_v59, %v5659_v3 }
 0x30e   : > { %v5725_v36 = vpop.eup %3403  ;;  %v1957_v8 = vand.u32 2147483648, %v5611_v14  ;;  %vm2181_vm2 = vcmp.eq.f32.partialorder %v5391_v2, 0.0  ;;  %3411 = vpow2.f32 %v1520_v57  ;;  %v2037_v32 = vmul.f32 %v1825_v4, %v4671_v46 }
 0x30f   : > { %v5730_v58 = vpop.eup %3405  ;;  %vm1951_vm3 = vweird.f32 %v5611_v14  ;;  %v2183_v9 = vsel %vm2181_vm2, %v2182_v51, %v2180_v37  ;;  %v2126_v12 = vmul.f32 %v5680_v10, %v2125_v22  ;;  %v1682_v41 = vsub.f32 1.0, %v1681_v40 }
 0x310   : > { %v1689_v31 = vand.u32 2147483647, %v5659_v3  ;;  %v1691_v1 = vand.u32 2147483648, %v5659_v3  ;;  %vm5737_vm14 = vcmp.eq.f32.partialorder %v1955_v19, 8.507059e+37  ;;  %v1950_v2 = vadd.f32 %v5638_v28, %v1949_v27 }
 0x311   : > { %vm1952_vm4 = vweird.f32 %v5638_v28  ;;  %3413 = vrcp.f32 %v5694_v55  ;;  %v1337_v46 = vmul.f32 %v5725_v36, %v5667_v0  ;;  %v1683_v53 = vmul.f32 %v3402_v59, %v1682_v41 }
 0x312   : > { %v3408_v23 = vpop.eup %3407  ;;  %vm1686_vm5 = vweird.f32 %v3402_v59  ;;  %v1958_v26 = vor.u32 1.1754944e-38, %v1957_v8  ;;  %3415 = vrsqrt.f32 %v5622_v25  ;;  %v5747_v6 = vmul.f32 %v2549_v52, %v2037_v32  ;;  %vm5762_vm7 = vmor %vm1951_vm3, %vm1952_vm4 }
 0x313   : > { %v3410_v49 = vpop.eup %3409  ;;  %v2641_v50 = vmul.f32 %v3408_v23, %v5705_v18  ;;  %vm1685_vm8 = vweird.f32 %v5659_v3  ;;  %v2127_v15 = vmul.f32 0.5, %v2126_v12  ;;  %v1684_v13 = vadd.f32 %v3402_v59, %v1683_v53 }
 0x314   : > { %v5751_v60 = vpop.eup %3411  ;;  %v2339_v24 = vmul.f32 %v3410_v49, %v5708_v63  ;;  %vm5754_vm6 = vcmp.eq.f32.partialorder %v1689_v31, 8.507059e+37  ;;  %v1692_v34 = vor.u32 1.1754944e-38, %v1691_v1  ;;  %vm1687_vm9 = vmor %vm1685_vm8, %vm1686_vm5  ;;  %v1954_v48 = vsel %vm5762_vm7, %v5638_v28, %v1950_v2 }
 0x315   : > { %v2642_v20 = vmul.f32 %v3408_v23, %v2641_v50  ;;  %3417 = vrcp.f32 %v5751_v60  ;;  %v1338_v17 = vmul.f32 %v5725_v36, %v1337_v46  ;;  %vm2647_vm10 = vcmp.eq.f32.partialorder %v5705_v18, inf }
 0x316   : > { %v2340_v33 = vsub.f32 1.0, %v2339_v24  ;;  %v2347_v14 = vand.u32 2147483647, %v5708_v63  ;;  %v1688_v44 = vsel %vm1687_vm9, %v3402_v59, %v1684_v13  ;;  %vm2649_vm11 = vcmp.eq.f32.partialorder %v5705_v18, 0.0 }
 0x317   : > { %v5774_v43 = vpop.eup %3413  ;;  %v2643_v7 = vmul.f32 0.5, %v2642_v20  ;;  %v2349_v35 = vand.u32 2147483648, %v5708_v63  ;;  %v1693_v28 = vsel %vm5754_vm6, %v1692_v34, %v1688_v44  ;;  %v2650_v4 = vand.u32 2147483648, %v5705_v18 }
 0x318   : > { %v5780_v42 = vpop.eup %3415  ;;  %vm2278_vm12 = vcmp.gt.f32.partialorder %v5692_v61, 1000.0  ;;  %v2341_v57 = vmul.f32 %v3410_v49, %v2340_v33  ;;  %vm2344_vm13 = vweird.f32 %v3410_v49  ;;  %v1774_v59 = vsub.f32 %v5659_v3, %v1693_v28 }
 0x319   : > { %v2644_v22 = vsub.f32 1.5, %v2643_v7  ;;  %vm2343_vm15 = vweird.f32 %v5708_v63  ;;  %v5788_v19 = vsel %vm5737_vm14, %v1958_v26, %v1954_v48  ;;  %v1339_v37 = vmul.f32 0.5, %v1338_v17 }
 0x31a   : > { %v2342_v27 = vadd.f32 %v3410_v49, %v2341_v57  ;;  %vm2348_vm0 = vcmp.eq.f32.partialorder %v2347_v14, 8.507059e+37  ;;  %v5790_v51 = vmul.f32 0.5, %v1774_v59  ;;  %v1887_v40 = vmul.f32 %v5774_v43, %v5694_v55  ;;  %vm2345_vm1 = vmor %vm2343_vm15, %vm2344_vm13 }
 0x31b   : > { %v3418_v8 = vpop.eup %3417  ;;  %v2645_v32 = vmul.f32 %v3408_v23, %v2644_v22  ;;  %v2350_v12 = vor.u32 1.1754944e-38, %v2349_v35  ;;  %v2128_v3 = vsub.f32 1.5, %v2127_v15  ;;  %v1340_v41 = vsub.f32 1.5, %v1339_v37 }
 0x31c   : > { %v2346_v31 = vsel %vm2345_vm1, %v3410_v49, %v2342_v27  ;;  %v2254_v63 = vmul.f32 %v2183_v9, %v5790_v51  ;;  %v1625_v1 = vmul.f32 %v3418_v8, %v5751_v60  ;;  %vm1343_vm2 = vcmp.eq.f32.partialorder %v5667_v0, inf  ;;  %v5803_v49 = vpop.xlane.xlu1 %1250 }
 0x31d   : > { %v2646_v29 = vmul.f32 %v2645_v32, %v5705_v18  ;;  %v2351_v2 = vsel %vm2348_vm0, %v2350_v12, %v2346_v31  ;;  %v1341_v46 = vmul.f32 %v5725_v36, %v1340_v41  ;;  %vm1345_vm3 = vcmp.eq.f32.partialorder %v5667_v0, 0.0 }
 0x31e   : > { %v2352_v53 = vmul.f32 1000.0, %v2351_v2  ;;  %v5801_v23 = vmul.f32 %v2254_v63, %v5788_v19  ;;  %v1626_v26 = vsub.f32 1.0, %v1625_v1  ;;  %v1888_v50 = vsub.f32 1.0, %v1887_v40 }
 0x31f   : > { %v2648_v9 = vsel %vm2647_vm10, %v5705_v18, %v2646_v29  ;;  %v1633_v15 = vand.u32 2147483647, %v5751_v60  ;;  %v2129_v24 = vmul.f32 %v5680_v10, %v2128_v3  ;;  %v1342_v36 = vmul.f32 %v1341_v46, %v5667_v0 }
 0x320   : > { %v2651_v13 = vsel %vm2649_vm11, %v2650_v4, %v2648_v9  ;;  %v5814_v38 = vmax.f32 %v5801_v23, 1e-07  ;;  %vm1630_vm14 = vweird.f32 %v3418_v8  ;;  %v1635_v34 = vand.u32 2147483648, %v5751_v60 }
 0x321   : > { %vm6795_vm4 = vcmp.eq.s32.totalorder %v5243_v11, 0  ;;  %v5822_v20 = vsel %vm2278_vm12, %v2352_v53, 1.0  ;;  %v1627_v10 = vmul.f32 %v3418_v8, %v1626_v26  ;;  %v1275_v48 = vadd.f32 1e-07, %v5803_v49 }
 0x322   : > { %v2824_v52 = vsel %vm6795_vm4, %v2651_v13, %v5747_v6  ;;  %v1889_v17 = vmul.f32 %v5774_v43, %v1888_v50  ;;  %v1346_v33 = vand.u32 2147483648, %v5667_v0  ;;  %v2089_v14 = vmul.f32 %v5780_v42, %v5622_v25 }
 0x323   : > { %v3009_v18 = vpack.c.bf16 %v2824_v52, %v5720_v21  ;;  %3419 = vrcp.f32 %v5814_v38  ;;  %v1628_v44 = vadd.f32 %v3418_v8, %v1627_v10  ;;  %vm1629_vm5 = vweird.f32 %v5751_v60 }
 0x324   : > { %v1344_v6 = vsel %vm1343_vm2, %v5667_v0, %v1342_v36  ;;  %v2582_v21 = vmul.f32 %v5822_v20, %v5692_v61  ;;  %vm1631_vm8 = vmor %vm1629_vm5, %vm1630_vm14  ;;  %v1636_v7 = vor.u32 1.1754944e-38, %v1635_v34  ;;  %v2130_v35 = vmul.f32 %v2129_v24, %v5438_v56 }
 0x325   : > { %3010 = vst [vmem:[%s5523_s20] sm:$0xff] %v3009_v18   ;;  %v5842_v28 = vsel %vm1345_vm3, %v1346_v33, %v1344_v6  ;;  %v1632_v4 = vsel %vm1631_vm8, %v3418_v8, %v1628_v44  ;;  %vm1634_vm6 = vcmp.eq.f32.partialorder %v1633_v15, 8.507059e+37  ;;  %v5845_v59 = vmax.f32 %v1275_v48, 1e-06  ;;  %v5898_v33 = vpop.xlane.xlu0 %1266 }
 0x326   : > { %v1495_v57 = vmin.f32 %v5842_v28, 50.0  ;;  %v1637_v22 = vsel %vm1634_vm6, %v1636_v7, %v1632_v4  ;;  %v1890_v37 = vadd.f32 %v5774_v43, %v1889_v17  ;;  %vm1892_vm7 = vweird.f32 %v5774_v43 }
 0x327   : > { %vm1891_vm9 = vweird.f32 %v5694_v55  ;;  %v1895_v61 = vand.u32 2147483647, %v5694_v55  ;;  %v1897_v27 = vand.u32 2147483648, %v5694_v55  ;;  %vm2131_vm10 = vcmp.eq.f32.partialorder %v5438_v56, inf }
 0x328   : > { %v2598_v0 = vmul.f32 %v2582_v21, %v2582_v21  ;;  %v1770_v40 = vsub.f32 %v5751_v60, %v1637_v22  ;;  %v2132_v8 = vsel %vm2131_vm10, %v5438_v56, %v2130_v35  ;;  %v1514_v32 = vmul.f32 1.442695, %v1495_v57  ;;  %vm5857_vm11 = vmor %vm1891_vm9, %vm1892_vm7 }
 0x329   : > { %v5855_v12 = vpop.eup %3419  ;;  %v2134_v41 = vand.u32 2147483648, %v5438_v56  ;;  %v2090_v31 = vmul.f32 %v5780_v42, %v2089_v14  ;;  %3421 = vrsqrt.f32 %v5845_v59  ;;  %v1894_v60 = vsel %vm5857_vm11, %v5774_v43, %v1890_v37 }
 0x32a   : > { %v5864_v55 = vmul.f32 0.5, %v1770_v40  ;;  %vm2133_vm12 = vcmp.eq.f32.partialorder %v5438_v56, 0.0  ;;  %3423 = vpow2.f32 %v1514_v32  ;;  %v1898_v63 = vor.u32 1.1754944e-38, %v1897_v27 }
 0x32b   : > { %v2135_v1 = vsel %vm2133_vm12, %v2134_v41, %v2132_v8  ;;  %3425 = vrcp.f32 %v5842_v28  ;;  %v5871_v29 = vadd.f32 1.0, %v2598_v0  ;;  %v2459_v2 = vmul.f32 %v5855_v12, %v5814_v38 }
 0x32c   : > { %vm1896_vm13 = vcmp.eq.f32.partialorder %v1895_v61, 8.507059e+37  ;;  %v2250_v46 = vmul.f32 %v2135_v1, %v5864_v55  ;;  %v2091_v26 = vmul.f32 0.5, %v2090_v31  ;;  %v2489_v43 = vmul.f32 %v5730_v58, %v5520_v16 }
 0x32d   : > { %v5876_v53 = vsel %vm1896_vm13, %v1898_v63, %v1894_v60  ;;  %3427 = vrsqrt.f32 %v5871_v29  ;;  %v2460_v15 = vsub.f32 1.0, %v2459_v2  ;;  %v2469_v10 = vand.u32 2147483648, %v5814_v38 }
 0x32e   : > { %v5881_v56 = vmul.f32 %v2250_v46, %v5876_v53  ;;  %v2092_v34 = vsub.f32 1.5, %v2091_v26  ;;  %v2490_v52 = vsub.f32 1.0, %v2489_v43  ;;  %v2497_v14 = vand.u32 2147483647, %v5520_v16 }
 0x32f   : > { %v3422_v50 = vpop.eup %3421  ;;  %v2461_v48 = vmul.f32 %v5855_v12, %v2460_v15  ;;  %vm2463_vm15 = vweird.f32 %v5814_v38  ;;  %v2467_v7 = vand.u32 2147483647, %v5814_v38  ;;  %v2098_v35 = vand.u32 2147483648, %v5622_v25 }
 0x330   : > { %v5883_v9 = vpop.eup %3423  ;;  %v5887_v24 = vmax.f32 %v5881_v56, 1e-07  ;;  %v1385_v36 = vmul.f32 %v3422_v50, %v5845_v59  ;;  %v2093_v44 = vmul.f32 %v5780_v42, %v2092_v34  ;;  %v5905_v21 = vmul.f32 %v5730_v58, %v2490_v52 }
 0x331   : > { %v5890_v13 = vpop.eup %3425  ;;  %3429 = vrcp.f32 %v5883_v9  ;;  %v5910_v57 = vor.u32 1.1754944e-38, %v2469_v10  ;;  %v1283_v37 = vadd.f32 1e-07, %v5898_v33  ;;  %v2462_v61 = vadd.f32 %v5855_v12, %v2461_v48 }
 0x332   : > { %3431 = vrcp.f32 %v5887_v24  ;;  %v1842_v18 = vmul.f32 %v5890_v13, %v5842_v28  ;;  %v1386_v17 = vmul.f32 %v3422_v50, %v1385_v36  ;;  %vm2464_vm0 = vweird.f32 %v5855_v12 }
 0x333   : > { %v5902_v6 = vpop.eup %3427  ;;  %3433 = vrsqrt.f32 %v5803_v49  ;;  %v2094_v8 = vmul.f32 %v2093_v44, %v5622_v25  ;;  %vm1391_vm1 = vcmp.eq.f32.partialorder %v5845_v59, inf  ;;  %vm1847_vm2 = vweird.f32 %v5890_v13  ;;  %vm5931_vm4 = vmor %vm2463_vm15, %vm2464_vm0 }
 0x334   : > { %v1387_v22 = vmul.f32 0.5, %v1386_v17  ;;  %v1843_v0 = vsub.f32 1.0, %v1842_v18  ;;  %vm2095_vm3 = vcmp.eq.f32.partialorder %v5622_v25, inf  ;;  %vm1393_vm14 = vcmp.eq.f32.partialorder %v5845_v59, 0.0 }
 0x335   : > { %v1394_v41 = vand.u32 2147483648, %v5845_v59  ;;  %v2653_v31 = vmul.f32 %v5902_v6, %v5871_v29  ;;  %vm5935_vm5 = vcmp.eq.f32.partialorder %v2467_v7, 8.507059e+37  ;;  %v5939_v46 = vmax.f32 %v1283_v37, 1e-06 }
 0x336   : > { %v1388_v32 = vsub.f32 1.5, %v1387_v22  ;;  %v2466_v26 = vsel %vm5931_vm4, %v5855_v12, %v2462_v61  ;;  %v1591_v43 = vand.u32 2147483647, %v5883_v9  ;;  %v1593_v38 = vand.u32 2147483648, %v5883_v9 }
 0x337   : > { %v3430_v4 = vpop.eup %3429  ;;  %v1844_v15 = vmul.f32 %v5890_v13, %v1843_v0  ;;  %vm2097_vm6 = vcmp.eq.f32.partialorder %v5622_v25, 0.0  ;;  %vm2494_vm7 = vweird.f32 %v5730_v58  ;;  %vm2403_vm9 = vweird.f32 %v5887_v24  ;;  %v6052_v0 = vpop.xlane.xlu2 %1258 }
 0x338   : > { %v5914_v42 = vpop.eup %3431  ;;  %v1583_v27 = vmul.f32 %v3430_v4, %v5883_v9  ;;  %v1389_v2 = vmul.f32 %v3422_v50, %v1388_v32  ;;  %vm1588_vm8 = vweird.f32 %v3430_v4  ;;  %v2407_v12 = vand.u32 2147483647, %v5887_v24 }
 0x339   : > { %v2399_v40 = vmul.f32 %v5914_v42, %v5887_v24  ;;  %v5947_v36 = vpop.eup %3433  ;;  %vm2404_vm10 = vweird.f32 %v5914_v42  ;;  %vm1587_vm11 = vweird.f32 %v5883_v9  ;;  %3435 = vrsqrt.f32 %v5939_v46 }
 0x33a   : > { %v1584_v3 = vsub.f32 1.0, %v1583_v27  ;;  %v1390_v50 = vmul.f32 %v1389_v2, %v5845_v59  ;;  %vm2493_vm12 = vweird.f32 %v5520_v16  ;;  %v2409_v17 = vand.u32 2147483648, %v5887_v24  ;;  %vm1589_vm13 = vmor %vm1587_vm11, %vm1588_vm8 }
 0x33b   : > { %v2400_v1 = vsub.f32 1.0, %v2399_v40  ;;  %v1594_v44 = vor.u32 1.1754944e-38, %v1593_v38  ;;  %v2137_v22 = vmul.f32 %v5947_v36, %v5803_v49  ;;  %vm1592_vm15 = vcmp.eq.f32.partialorder %v1591_v43, 8.507059e+37  ;;  %vm5976_vm0 = vmor %vm2403_vm9, %vm2404_vm10 }
 0x33c   : > { %v1585_v52 = vmul.f32 %v3430_v4, %v1584_v3  ;;  %v1392_v18 = vsel %vm1391_vm1, %v5845_v59, %v1390_v50  ;;  %v1845_v61 = vadd.f32 %v5890_v13, %v1844_v15  ;;  %vm1846_vm1 = vweird.f32 %v5842_v28 }
 0x33d   : > { %v2401_v34 = vmul.f32 %v5914_v42, %v2400_v1  ;;  %v5966_v7 = vsel %vm1393_vm14, %v1394_v41, %v1392_v18  ;;  %v1850_v40 = vand.u32 2147483647, %v5842_v28  ;;  %v2096_v24 = vsel %vm2095_vm3, %v5622_v25, %v2094_v8  ;;  %vm5996_vm14 = vmor %vm1846_vm1, %vm1847_vm2 }
 0x33e   : > { %v1586_v48 = vadd.f32 %v3430_v4, %v1585_v52  ;;  %v1499_v27 = vmin.f32 %v5966_v7, 50.0  ;;  %v2654_v60 = vmul.f32 %v5902_v6, %v2653_v31  ;;  %v2471_v1 = vsel %vm5935_vm5, %v5910_v57, %v2466_v26  ;;  %vm6022_vm3 = vmor %vm2493_vm12, %vm2494_vm7 }
 0x33f   : > { %v2402_v10 = vadd.f32 %v5914_v42, %v2401_v34  ;;  %v2410_v2 = vor.u32 1.1754944e-38, %v2409_v17  ;;  %vm2408_vm4 = vcmp.eq.f32.partialorder %v2407_v12, 8.507059e+37  ;;  %v1849_v8 = vsel %vm5996_vm14, %v5890_v13, %v1845_v61 }
 0x340   : > { %v1590_v37 = vsel %vm1589_vm13, %v3430_v4, %v1586_v48  ;;  %v1852_v4 = vand.u32 2147483648, %v5842_v28  ;;  %v1522_v41 = vmul.f32 1.442695, %v1499_v27  ;;  %v2492_v57 = vadd.f32 %v5730_v58, %v5905_v21 }
 0x341   : > { %v1595_v59 = vsel %vm1592_vm15, %v1594_v44, %v1590_v37  ;;  %v2406_v32 = vsel %vm5976_vm0, %v5914_v42, %v2402_v10  ;;  %v3436_v42 = vpop.eup %3435  ;;  %v2099_v26 = vsel %vm2097_vm6, %v2098_v35, %v2096_v24  ;;  %v2499_v38 = vand.u32 2147483648, %v5520_v16 }
 0x342   : > { %v1767_v3 = vsub.f32 %v5883_v9, %v1595_v59  ;;  %v2138_v9 = vmul.f32 %v5947_v36, %v2137_v22  ;;  %3437 = vpow2.f32 %v1522_v41  ;;  %v2411_v31 = vsel %vm2408_vm4, %v2410_v2, %v2406_v32 }
 0x343   : > { %v1853_v63 = vor.u32 1.1754944e-38, %v1852_v4  ;;  %v2472_v15 = vmul.f32 1000.0, %v2471_v1  ;;  %vm1851_vm2 = vcmp.eq.f32.partialorder %v1850_v40, 8.507059e+37  ;;  %3439 = vrcp.f32 %v5966_v7 }
 0x344   : > { %v6001_v43 = vmul.f32 0.5, %v1767_v3  ;;  %v2139_v13 = vmul.f32 0.5, %v2138_v9  ;;  %v1481_v21 = vmul.f32 %v3436_v42, %v5939_v46  ;;  %v2655_v35 = vmul.f32 0.5, %v2654_v60 }
 0x345   : > { %v6014_v52 = vsel %vm1851_vm2, %v1853_v63, %v1849_v8  ;;  %v2412_v50 = vmul.f32 1000.0, %v2411_v31  ;;  %v2496_v10 = vsel %vm6022_vm3, %v5730_v58, %v2492_v57  ;;  %vm2286_vm5 = vcmp.gt.f32.partialorder %v5801_v23, 1000.0 }
 0x346   : > { %v2247_v34 = vmul.f32 %v2099_v26, %v6001_v43  ;;  %vm2498_vm8 = vcmp.eq.f32.partialorder %v2497_v14, 8.507059e+37  ;;  %v2500_v18 = vor.u32 1.1754944e-38, %v2499_v38  ;;  %v6037_v17 = vsel %vm2286_vm5, %v2472_v15, 1.0 }
 0x347   : > { %vm2282_vm6 = vcmp.gt.f32.partialorder %v5881_v56, 1000.0  ;;  %v2140_v22 = vsub.f32 1.5, %v2139_v13  ;;  %v1482_v37 = vmul.f32 %v3436_v42, %v1481_v21  ;;  %3441 = vrsqrt.f32 %v5898_v33 }
 0x348   : > { %v6027_v12 = vmul.f32 %v2247_v34, %v6014_v52  ;;  %v6033_v48 = vpop.eup %3437  ;;  %v2501_v58 = vsel %vm2498_vm8, %v2500_v18, %v2496_v10  ;;  %v2656_v61 = vsub.f32 1.5, %v2655_v35  ;;  %v6044_v27 = vsel %vm2282_vm6, %v2412_v50, 1.0 }
 0x349   : > { %v6047_v16 = vpop.eup %3439  ;;  %v2590_v14 = vmul.f32 %v6037_v17, %v5801_v23  ;;  %v6054_v59 = vmul.f32 1000.0, %v2501_v58  ;;  %v2586_v40 = vmul.f32 %v6044_v27, %v5881_v56  ;;  %v2141_v4 = vmul.f32 %v5947_v36, %v2140_v22 }
 0x34a   : > { %v6040_v44 = vmax.f32 %v6027_v12, 1e-07  ;;  %v1483_v32 = vmul.f32 0.5, %v1482_v37  ;;  %v6061_v3 = vmul.f32 %v5686_v5, %v5664_v54  ;;  %v6064_v24 = vmul.f32 %v5902_v6, %v2656_v61  ;;  %v6104_v61 = vpop.xlane.xlu1 %1262 }
 0x34b   : > { %v1902_v23 = vmul.f32 %v6047_v16, %v5966_v7  ;;  %v2146_v41 = vand.u32 2147483648, %v5803_v49  ;;  %v6071_v1 = vmul.f32 %v2590_v14, %v2590_v14  ;;  %vm1487_vm7 = vcmp.eq.f32.partialorder %v5939_v46, inf }
 0x34c   : > { %3443 = vrcp.f32 %v6040_v44  ;;  %v1484_v56 = vsub.f32 1.5, %v1483_v32  ;;  %v1279_v36 = vadd.f32 1e-07, %v6052_v0  ;;  %v1910_v54 = vand.u32 2147483647, %v5966_v7 }
 0x34d   : > { %3445 = vrcp.f32 %v6033_v48  ;;  %v6069_v60 = vpop.eup %3441  ;;  %v1912_v5 = vand.u32 2147483648, %v5966_v7  ;;  %vm1489_vm9 = vcmp.eq.f32.partialorder %v5939_v46, 0.0  ;;  %v1490_v6 = vand.u32 2147483648, %v5939_v46 }
 0x34e   : > { %v2602_v9 = vmul.f32 %v2586_v40, %v2586_v40  ;;  %v2142_v57 = vmul.f32 %v2141_v4, %v5803_v49  ;;  %v1485_v31 = vmul.f32 %v3436_v42, %v1484_v56  ;;  %v1903_v26 = vsub.f32 1.0, %v1902_v23 }
 0x34f   : > { %vm1907_vm10 = vweird.f32 %v6047_v16  ;;  %vm2143_vm11 = vcmp.eq.f32.partialorder %v5803_v49, inf  ;;  %v2233_v38 = vmul.f32 %v6069_v60, %v5898_v33  ;;  %v2362_v34 = vand.u32 2147483647, %v6040_v44 }
 0x350   : > { %v1486_v13 = vmul.f32 %v1485_v31, %v5939_v46  ;;  %v6088_v21 = vmax.f32 %v1279_v36, 1e-06  ;;  %v2364_v25 = vand.u32 2147483648, %v6040_v44  ;;  %v1647_v35 = vand.u32 2147483647, %v6033_v48 }
 0x351   : > { %v1649_v50 = vand.u32 2147483648, %v6033_v48  ;;  %vm1906_vm12 = vweird.f32 %v5966_v7  ;;  %v1904_v37 = vmul.f32 %v6047_v16, %v1903_v26  ;;  %vm2145_vm0 = vcmp.eq.f32.partialorder %v5803_v49, 0.0 }
 0x352   : > { %v3444_v2 = vpop.eup %3443  ;;  %v1488_v18 = vsel %vm1487_vm7, %v5939_v46, %v1486_v13  ;;  %3447 = vrsqrt.f32 %v6088_v21  ;;  %v6106_v14 = vadd.f32 1.0, %v2602_v9  ;;  %vm2358_vm1 = vweird.f32 %v6040_v44  ;;  %vm6130_vm7 = vmor %vm1906_vm12, %vm1907_vm10 }
 0x353   : > { %v3446_v28 = vpop.eup %3445  ;;  %v2354_v8 = vmul.f32 %v3444_v2, %v6040_v44  ;;  %vm2359_vm13 = vweird.f32 %v3444_v2  ;;  %v6102_v58 = vsel %vm1489_vm9, %v1490_v6, %v1488_v18  ;;  %vm2363_vm4 = vcmp.eq.f32.partialorder %v2362_v34, 8.507059e+37 }
 0x354   : > { %v1639_v63 = vmul.f32 %v3446_v28, %v6033_v48  ;;  %vm1644_vm15 = vweird.f32 %v3446_v28  ;;  %v1507_v4 = vmin.f32 %v6102_v58, 50.0  ;;  %vm2360_vm14 = vmor %vm2358_vm1, %vm2359_vm13  ;;  %v2365_v32 = vor.u32 1.1754944e-38, %v2364_v25 }
 0x355   : > { %v2355_v15 = vsub.f32 1.0, %v2354_v8  ;;  %vm1643_vm2 = vweird.f32 %v6033_v48  ;;  %v1650_v46 = vor.u32 1.1754944e-38, %v1649_v50  ;;  %v1281_v6 = vadd.f32 1e-07, %v6104_v61 }
 0x356   : > { %v1640_v42 = vsub.f32 1.0, %v1639_v63  ;;  %vm1645_vm3 = vmor %vm1643_vm2, %vm1644_vm15  ;;  %v1538_v36 = vmul.f32 1.442695, %v1507_v4  ;;  %vm2288_vm5 = vcmp.gt.f32.partialorder %v5241_v45, 1000.0  ;;  %vm1648_vm8 = vcmp.eq.f32.partialorder %v1647_v35, 8.507059e+37 }
 0x357   : > { %v2356_v10 = vmul.f32 %v3444_v2, %v2355_v15  ;;  %v1905_v44 = vadd.f32 %v6047_v16, %v1904_v37  ;;  %vm2279_vm6 = vcmp.gt.f32.partialorder %v6027_v12, 1000.0  ;;  %v2234_v25 = vmul.f32 %v6069_v60, %v2233_v38 }
 0x358   : > { %v1641_v22 = vmul.f32 %v3446_v28, %v1640_v42  ;;  %v3448_v31 = vpop.eup %3447  ;;  %3449 = vpow2.f32 %v1538_v36  ;;  %v6135_v42 = vmax.f32 %v1281_v6, 1e-06  ;;  %v6146_v50 = vadd.f32 1.0, %v6071_v1 }
 0x359   : > { %v2357_v40 = vadd.f32 %v3444_v2, %v2356_v10  ;;  %3451 = vrsqrt.f32 %v6106_v14  ;;  %v1433_v34 = vmul.f32 %v3448_v31, %v6088_v21  ;;  %v1913_v10 = vor.u32 1.1754944e-38, %v1912_v5 }
 0x35a   : > { %v1642_v23 = vadd.f32 %v3446_v28, %v1641_v22  ;;  %3453 = vrsqrt.f32 %v6052_v0  ;;  %vm1911_vm9 = vcmp.eq.f32.partialorder %v1910_v54, 8.507059e+37  ;;  %vm2659_vm10 = vcmp.eq.f32.partialorder %v5871_v29, inf }
 0x35b   : > { %v2361_v56 = vsel %vm2360_vm14, %v3444_v2, %v2357_v40  ;;  %v2144_v2 = vsel %vm2143_vm11, %v5803_v49, %v2142_v57  ;;  %3455 = vrsqrt.f32 %v6135_v42  ;;  %v2235_v5 = vmul.f32 0.5, %v2234_v25 }
 0x35c   : > { %v2366_v9 = vsel %vm2363_vm4, %v2365_v32, %v2361_v56  ;;  %v1646_v8 = vsel %vm1645_vm3, %v3446_v28, %v1642_v23  ;;  %v2658_v28 = vmul.f32 %v6064_v24, %v5871_v29  ;;  %v1909_v24 = vsel %vm6130_vm7, %v6047_v16, %v1905_v44 }
 0x35d   : > { %v2367_v63 = vmul.f32 1000.0, %v2366_v9  ;;  %v1651_v26 = vsel %vm1648_vm8, %v1650_v46, %v1646_v8  ;;  %v2147_v38 = vsel %vm2145_vm0, %v2146_v41, %v2144_v2  ;;  %v6161_v1 = vsel %vm1911_vm9, %v1913_v10, %v1909_v24 }
 0x35e   : > { %v1771_v15 = vsub.f32 %v6033_v48, %v1651_v26  ;;  %v6158_v22 = vpop.eup %3449  ;;  %3457 = vrcp.f32 %v6102_v58  ;;  %v6175_v37 = vsel %vm2288_vm5, %v6054_v59, 1.0  ;;  %v2660_v40 = vsel %vm2659_vm10, %v5871_v29, %v2658_v28 }
 0x35f   : > { %v6124_v13 = vsel %vm2279_vm6, %v2367_v63, 1.0  ;;  %v6164_v49 = vpop.eup %3451  ;;  %3459 = vrcp.f32 %v6158_v22  ;;  %v2038_v32 = vmul.f32 %v6061_v3, %v4675_v62  ;;  %v2662_v23 = vand.u32 2147483648, %v5871_v29 }
 0x360   : > { %v2583_v48 = vmul.f32 %v6124_v13, %v6027_v12  ;;  %v6139_v35 = vmul.f32 0.5, %v1771_v15  ;;  %v1434_v12 = vmul.f32 %v3448_v31, %v1433_v34  ;;  %3461 = vrsqrt.f32 %v6146_v50  ;;  %v6179_v4 = vpop.eup %3453 }
 0x361   : > { %v1900_v56 = vmul.f32 %v5876_v53, %v5864_v55  ;;  %vm2661_vm11 = vcmp.eq.f32.partialorder %v5871_v29, 0.0  ;;  %v2701_v59 = vmul.f32 %v6164_v49, %v6106_v14  ;;  %v2236_v36 = vsub.f32 1.5, %v2235_v5  ;;  %v3456_v6 = vpop.eup %3455 }
 0x362   : > { %v2599_v18 = vmul.f32 %v2583_v48, %v2583_v48  ;;  %v2251_v16 = vmul.f32 %v2147_v38, %v6139_v35  ;;  %v1435_v54 = vmul.f32 0.5, %v1434_v12  ;;  %v2663_v9 = vsel %vm2661_vm11, %v2662_v23, %v2660_v40 }
 0x363   : > { %v6197_v3 = vmul.f32 %v6175_v37, %v5241_v45  ;;  %v2566_v55 = vmul.f32 %v5822_v20, %v2038_v32  ;;  %v2185_v29 = vmul.f32 %v6179_v4, %v6052_v0  ;;  %v6206_v44 = vmul.f32 %v1900_v56, %v4683_v39 }
 0x364   : > { %v6166_v41 = vadd.f32 1.0, %v2599_v18  ;;  %v6169_v7 = vmul.f32 %v2251_v16, %v6161_v1  ;;  %v1436_v8 = vsub.f32 1.5, %v1435_v54  ;;  %v6193_v62 = vpop.eup %3457  ;;  %v1855_v63 = vmul.f32 %v6014_v52, %v6001_v43 }
 0x365   : > { %v6203_v53 = vpop.eup %3459  ;;  %v1457_v2 = vmul.f32 %v3456_v6, %v6135_v42  ;;  %vm6810_vm12 = vcmp.eq.s32.totalorder %v5243_v11, 0  ;;  %v2702_v15 = vmul.f32 %v6164_v49, %v2701_v59  ;;  %v2237_v39 = vmul.f32 %v6069_v60, %v2236_v36 }
 0x366   : > { %3463 = vrsqrt.f32 %v6166_v41  ;;  %v6191_v46 = vmax.f32 %v6169_v7, 1e-07  ;;  %v1437_v26 = vmul.f32 %v3448_v31, %v1436_v8  ;;  %v6211_v45 = vpop.eup %3461  ;;  %v6215_v20 = vsel %vm6810_vm12, %v2663_v9, %v2566_v55 }
 0x367   : > { %v1751_v34 = vmul.f32 %v6203_v53, %v6158_v22  ;;  %vm1439_vm13 = vcmp.eq.f32.partialorder %v6088_v21, inf  ;;  %v1442_v43 = vand.u32 2147483648, %v6088_v21  ;;  %v1458_v52 = vmul.f32 %v3456_v6, %v1457_v2 }
 0x368   : > { %3465 = vrcp.f32 %v6191_v46  ;;  %v1438_v57 = vmul.f32 %v1437_v26, %v6088_v21  ;;  %v2022_v48 = vmul.f32 %v6193_v62, %v6102_v58  ;;  %v2186_v24 = vmul.f32 %v6179_v4, %v2185_v29 }
 0x369   : > { %v1752_v25 = vsub.f32 1.0, %v1751_v34  ;;  %v2039_v10 = vmul.f32 %v1855_v63, %v4691_v30  ;;  %vm1441_vm15 = vcmp.eq.f32.partialorder %v6088_v21, 0.0  ;;  %v1459_v38 = vmul.f32 0.5, %v1458_v52 }
 0x36a   : > { %v1440_v60 = vsel %vm1439_vm13, %v6088_v21, %v1438_v57  ;;  %v6233_v18 = vmul.f32 %v6211_v45, %v6146_v50  ;;  %v6235_v16 = vmul.f32 0.5, %v2702_v15  ;;  %v6242_v30 = vmul.f32 %v2237_v39, %v5898_v33 }
 0x36b   : > { %v6237_v54 = vsel %vm1441_vm15, %v1442_v43, %v1440_v60  ;;  %v2567_v40 = vmul.f32 %v6124_v13, %v2039_v10  ;;  %v1753_v56 = vmul.f32 %v6203_v53, %v1752_v25  ;;  %v2023_v59 = vsub.f32 1.0, %v2022_v48 }
 0x36c   : > { %v3464_v28 = vpop.eup %3463  ;;  %v1503_v21 = vmin.f32 %v6237_v54, 50.0  ;;  %v6246_v36 = vmul.f32 0.5, %v2186_v24  ;;  %vm1755_vm0 = vweird.f32 %v6158_v22  ;;  %v1460_v55 = vsub.f32 1.5, %v1459_v38 }
 0x36d   : > { %v2665_v31 = vmul.f32 %v3464_v28, %v6166_v41  ;;  %vm1463_vm1 = vcmp.eq.f32.partialorder %v6135_v42, inf  ;;  %v2422_v29 = vand.u32 2147483647, %v6191_v46  ;;  %v2424_v63 = vand.u32 2147483648, %v6191_v46 }
 0x36e   : > { %v3466_v12 = vpop.eup %3465  ;;  %v1530_v8 = vmul.f32 1.442695, %v1503_v21  ;;  %v1759_v26 = vand.u32 2147483647, %v6158_v22  ;;  %vm1756_vm4 = vweird.f32 %v6203_v53  ;;  %v1754_v34 = vadd.f32 %v6203_v53, %v1753_v56 }
 0x36f   : > { %v2666_v5 = vmul.f32 %v3464_v28, %v2665_v31  ;;  %v2414_v32 = vmul.f32 %v3466_v12, %v6191_v46  ;;  %vm2419_vm14 = vweird.f32 %v3466_v12  ;;  %v1461_v39 = vmul.f32 %v3456_v6, %v1460_v55  ;;  %vm6268_vm9 = vmor %vm1755_vm0, %vm1756_vm4 }
 0x370   : > { %3467 = vpow2.f32 %v1530_v8  ;;  %vm2418_vm2 = vweird.f32 %v6191_v46  ;;  %v1761_v43 = vand.u32 2147483648, %v6158_v22  ;;  %v2024_v52 = vmul.f32 %v6193_v62, %v2023_v59 }
 0x371   : > { %v2667_v23 = vmul.f32 0.5, %v2666_v5  ;;  %v2415_v9 = vsub.f32 1.0, %v2414_v32  ;;  %3469 = vrcp.f32 %v6237_v54  ;;  %vm2671_vm3 = vcmp.eq.f32.partialorder %v6166_v41, inf  ;;  %vm2420_vm8 = vmor %vm2418_vm2, %vm2419_vm14 }
 0x372   : > { %vm2673_vm5 = vcmp.eq.f32.partialorder %v6166_v41, 0.0  ;;  %vm2239_vm6 = vcmp.eq.f32.partialorder %v5898_v33, inf  ;;  %v2674_v25 = vand.u32 2147483648, %v6166_v41  ;;  %vm2423_vm7 = vcmp.eq.f32.partialorder %v2422_v29, 8.507059e+37 }
 0x373   : > { %v2668_v13 = vsub.f32 1.5, %v2667_v23  ;;  %v2416_v2 = vmul.f32 %v3466_v12, %v2415_v9  ;;  %v1462_v48 = vmul.f32 %v1461_v39, %v6135_v42  ;;  %vm2283_vm10 = vcmp.gt.f32.partialorder %v6169_v7, 1000.0 }
 0x374   : > { %v1758_v60 = vsel %vm6268_vm9, %v6203_v53, %v1754_v34  ;;  %vm1760_vm11 = vcmp.eq.f32.partialorder %v1759_v26, 8.507059e+37  ;;  %v1762_v32 = vor.u32 1.1754944e-38, %v1761_v43  ;;  %v1466_v53 = vand.u32 2147483648, %v6135_v42  ;;  %v6323_v34 = vpop.xlane.xlu2 %1264 }
 0x375   : > { %v2669_v15 = vmul.f32 %v3464_v28, %v2668_v13  ;;  %v2417_v57 = vadd.f32 %v3466_v12, %v2416_v2  ;;  %v2425_v28 = vor.u32 1.1754944e-38, %v2424_v63  ;;  %vm2241_vm13 = vcmp.eq.f32.partialorder %v5898_v33, 0.0 }
 0x376   : > { %v6278_v38 = vpop.eup %3467  ;;  %v1763_v9 = vsel %vm1760_vm11, %v1762_v32, %v1758_v60  ;;  %vm1465_vm15 = vcmp.eq.f32.partialorder %v6135_v42, 0.0  ;;  %v6300_v55 = vmul.f32 %v6211_v45, %v6233_v18  ;;  %v2032_v26 = vand.u32 2147483648, %v6102_v58 }
 0x377   : > { %v2670_v31 = vmul.f32 %v2669_v15, %v6166_v41  ;;  %v2421_v6 = vsel %vm2420_vm8, %v3466_v12, %v2417_v57  ;;  %v6280_v21 = vpop.eup %3469  ;;  %3471 = vrcp.f32 %v6278_v38  ;;  %vm2027_vm0 = vweird.f32 %v6193_v62 }
 0x378   : > { %v2426_v10 = vsel %vm2423_vm7, %v2425_v28, %v2421_v6  ;;  %3473 = vrsqrt.f32 %v6104_v61  ;;  %v1962_v13 = vmul.f32 %v6280_v21, %v6237_v54  ;;  %v2240_v18 = vsel %vm2239_vm6, %v5898_v33, %v6242_v30 }
 0x379   : > { %v2672_v24 = vsel %vm2671_vm3, %v6166_v41, %v2670_v31  ;;  %v2427_v5 = vmul.f32 1000.0, %v2426_v10  ;;  %v1464_v41 = vsel %vm1463_vm1, %v6135_v42, %v1462_v48  ;;  %v2025_v42 = vadd.f32 %v6193_v62, %v2024_v52 }
 0x37a   : > { %v2675_v12 = vsel %vm2673_vm5, %v2674_v25, %v2672_v24  ;;  %v6306_v29 = vsel %vm1465_vm15, %v1466_v53, %v1464_v41  ;;  %vm2026_vm1 = vweird.f32 %v6102_v58  ;;  %vm2191_vm14 = vcmp.eq.f32.partialorder %v6052_v0, inf }
 0x37b   : > { %v2826_v23 = vsel %vm6810_vm12, %v2675_v12, %v2567_v40  ;;  %v6290_v59 = vsel %vm2283_vm10, %v2427_v5, 1.0  ;;  %v2188_v40 = vsub.f32 1.5, %v6246_v36  ;;  %v2242_v36 = vand.u32 2147483648, %v5898_v33  ;;  %vm6335_vm4 = vmor %vm2026_vm1, %vm2027_vm0 }
 0x37c   : > { %v3014_v56 = vpack.c.bf16 %v2826_v23, %v6215_v20  ;;  %v2587_v8 = vmul.f32 %v6290_v59, %v6169_v7  ;;  %v2704_v20 = vsub.f32 1.5, %v6235_v16  ;;  %v1779_v7 = vsub.f32 %v6158_v22, %v1763_v9 }
 0x37d   : > { %v1505_v16 = vmin.f32 %v6306_v29, 50.0  ;;  %v3472_v2 = vpop.eup %3471  ;;  %v2189_v22 = vmul.f32 %v6179_v4, %v2188_v40  ;;  %v2030_v43 = vand.u32 2147483647, %v6102_v58  ;;  %v1963_v52 = vsub.f32 1.0, %v1962_v13 }
 0x37e   : > { %3046 = vst [vmem:[%s5523_s20 + $0x8] sm:$0xff] %v3014_v56   ;;  %v2603_v63 = vmul.f32 %v2587_v8, %v2587_v8  ;;  %v6325_v39 = vpop.eup %3473  ;;  %v2705_v57 = vmul.f32 %v6164_v49, %v2704_v20  ;;  %v1695_v30 = vmul.f32 %v3472_v2, %v6278_v38  ;;  %v6331_v31 = vmul.f32 0.5, %v1779_v7 }
 0x37f   : > { %v2033_v28 = vor.u32 1.1754944e-38, %v2032_v26  ;;  %v2243_v25 = vsel %vm2241_vm13, %v2242_v36, %v2240_v18  ;;  %v2029_v58 = vsel %vm6335_vm4, %v6193_v62, %v2025_v42  ;;  %v1534_v6 = vmul.f32 1.442695, %v1505_v16 }
 0x380   : > { %v6318_v15 = vadd.f32 1.0, %v2603_v63  ;;  %v1696_v49 = vsub.f32 1.0, %v1695_v30  ;;  %v1282_v46 = vadd.f32 1e-07, %v6323_v34  ;;  %vm2707_vm2 = vcmp.eq.f32.partialorder %v6106_v14, inf }
 0x381   : > { %v1703_v48 = vand.u32 2147483647, %v6278_v38  ;;  %v1705_v24 = vand.u32 2147483648, %v6278_v38  ;;  %v2190_v10 = vmul.f32 %v2189_v22, %v6052_v0  ;;  %v2209_v33 = vmul.f32 %v6325_v39, %v6104_v61 }
 0x382   : > { %3475 = vrsqrt.f32 %v6318_v15  ;;  %v1697_v60 = vmul.f32 %v3472_v2, %v1696_v49  ;;  %vm1700_vm3 = vweird.f32 %v3472_v2  ;;  %v1964_v12 = vmul.f32 %v6280_v21, %v1963_v52 }
 0x383   : > { %3477 = vpow2.f32 %v1534_v6  ;;  %v2706_v62 = vmul.f32 %v2705_v57, %v6106_v14  ;;  %vm2031_vm5 = vcmp.eq.f32.partialorder %v2030_v43, 8.507059e+37  ;;  %v2259_v5 = vmul.f32 %v2243_v25, %v6331_v31 }
 0x384   : > { %3479 = vrcp.f32 %v6306_v29  ;;  %v6355_v32 = vsel %vm2031_vm5, %v2033_v28, %v2029_v58  ;;  %v1698_v23 = vadd.f32 %v3472_v2, %v1697_v60  ;;  %vm1699_vm8 = vweird.f32 %v6278_v38 }
 0x385   : > { %v6358_v41 = vmax.f32 %v1282_v46, 1e-06  ;;  %vm1701_vm6 = vmor %vm1699_vm8, %vm1700_vm3  ;;  %v1706_v56 = vor.u32 1.1754944e-38, %v1705_v24  ;;  %vm1967_vm7 = vweird.f32 %v6280_v21  ;;  %v2192_v9 = vsel %vm2191_vm14, %v6052_v0, %v2190_v10 }
 0x386   : > { %v2210_v8 = vmul.f32 %v6325_v39, %v2209_v33  ;;  %v1702_v20 = vsel %vm1701_vm6, %v3472_v2, %v1698_v23  ;;  %vm1704_vm9 = vcmp.eq.f32.partialorder %v1703_v48, 8.507059e+37  ;;  %v1965_v13 = vadd.f32 %v6280_v21, %v1964_v12 }
 0x387   : > { %v6368_v63 = vmul.f32 %v2259_v5, %v6355_v32  ;;  %v1707_v7 = vsel %vm1704_vm9, %v1706_v56, %v1702_v20  ;;  %vm1966_vm10 = vweird.f32 %v6237_v54  ;;  %v1972_v26 = vand.u32 2147483648, %v6237_v54 }
 0x388   : > { %v3476_v53 = vpop.eup %3475  ;;  %v1775_v18 = vsub.f32 %v6278_v38, %v1707_v7  ;;  %v1970_v16 = vand.u32 2147483647, %v6237_v54  ;;  %3481 = vrsqrt.f32 %v6358_v41  ;;  %vm6381_vm11 = vmor %vm1966_vm10, %vm1967_vm7  ;;  %vm2193_vm12 = vcmp.eq.f32.partialorder %v6052_v0, 0.0 }
 0x389   : > { %v2713_v40 = vmul.f32 %v3476_v53, %v6318_v15  ;;  %v6372_v36 = vpop.eup %3477  ;;  %v2194_v57 = vand.u32 2147483648, %v6052_v0  ;;  %v2211_v43 = vmul.f32 0.5, %v2210_v8  ;;  %v2708_v54 = vsel %vm2707_vm2, %v6106_v14, %v2706_v62 }
 0x38a   : > { %v6377_v2 = vpop.eup %3479  ;;  %3483 = vrcp.f32 %v6372_v36  ;;  %v6391_v30 = vmul.f32 0.5, %v1775_v18  ;;  %v1969_v52 = vsel %vm6381_vm11, %v6280_v21, %v1965_v13  ;;  %v1915_v4 = vmul.f32 %v6161_v1, %v6139_v35 }
 0x38b   : > { %v2714_v42 = vmul.f32 %v3476_v53, %v2713_v40  ;;  %v6399_v28 = vmax.f32 %v6368_v63, 1e-07  ;;  %v1973_v0 = vor.u32 1.1754944e-38, %v1972_v26  ;;  %v2195_v25 = vsel %vm2193_vm12, %v2194_v57, %v2192_v9 }
 0x38c   : > { %vm1971_vm13 = vcmp.eq.f32.partialorder %v1970_v16, 8.507059e+37  ;;  %v2255_v49 = vmul.f32 %v2195_v25, %v6391_v30  ;;  %v1992_v6 = vmul.f32 %v6377_v2, %v6306_v29  ;;  %v2608_v46 = vmul.f32 %v6197_v3, %v6197_v3 }
 0x38d   : > { %v2715_v38 = vmul.f32 0.5, %v2714_v42  ;;  %v2710_v21 = vand.u32 2147483648, %v6106_v14  ;;  %v6407_v48 = vsel %vm1971_vm13, %v1973_v0, %v1969_v52  ;;  %v2212_v35 = vsub.f32 1.5, %v2211_v43 }
 0x38e   : > { %v3482_v1 = vpop.eup %3481  ;;  %v2570_v24 = vmul.f32 %v6044_v27, %v6206_v44  ;;  %vm2709_vm15 = vcmp.eq.f32.partialorder %v6106_v14, 0.0  ;;  %v6413_v33 = vmul.f32 %v2255_v49, %v6407_v48  ;;  %v6416_v12 = vmul.f32 0.5, %v6300_v55 }
 0x38f   : > { %v2716_v58 = vsub.f32 1.5, %v2715_v38  ;;  %v2711_v3 = vsel %vm2709_vm15, %v2710_v21, %v2708_v54  ;;  %v2043_v62 = vmul.f32 %v1915_v4, %v4703_v47  ;;  %3485 = vrcp.f32 %v6399_v28 }
 0x390   : > { %v3484_v60 = vpop.eup %3483  ;;  %v6422_v23 = vmax.f32 %v6413_v33, 1e-07  ;;  %v1993_v14 = vsub.f32 1.0, %v1992_v6  ;;  %vm2719_vm0 = vcmp.eq.f32.partialorder %v6318_v15, inf  ;;  %v2722_v44 = vand.u32 2147483648, %v6318_v15 }
 0x391   : > { %v2717_v10 = vmul.f32 %v3476_v53, %v2716_v58  ;;  %v1723_v27 = vmul.f32 %v3484_v60, %v6372_v36  ;;  %v2213_v55 = vmul.f32 %v6325_v39, %v2212_v35  ;;  %v1469_v53 = vmul.f32 %v3482_v1, %v6358_v41 }
 0x392   : > { %v2571_v47 = vmul.f32 %v6290_v59, %v2043_v62  ;;  %vm2721_vm1 = vcmp.eq.f32.partialorder %v6318_v15, 0.0  ;;  %3487 = vrcp.f32 %v6422_v23  ;;  %v6433_v9 = vadd.f32 1.0, %v2608_v46 }
 0x393   : > { %v2718_v5 = vmul.f32 %v2717_v10, %v6318_v15  ;;  %v2752_v8 = vsub.f32 1.5, %v6416_v12  ;;  %v1724_v20 = vsub.f32 1.0, %v1723_v27  ;;  %vm6817_vm14 = vcmp.eq.s32.totalorder %v5243_v11, 0 }
 0x394   : > { %v2829_v39 = vsel %vm6817_vm14, %v2711_v3, %v2570_v24  ;;  %vm6818_vm4 = vmmov %vm6817_vm14  ;;  %v1994_v59 = vmul.f32 %v6377_v2, %v1993_v14  ;;  %v1470_v7 = vmul.f32 %v3482_v1, %v1469_v53  ;;  %v1733_v42 = vand.u32 2147483648, %v6372_v36 }
 0x395   : > { %v2720_v56 = vsel %vm2719_vm0, %v6318_v15, %v2718_v5  ;;  %v6441_v26 = vpop.eup %3485  ;;  %v2214_v18 = vmul.f32 %v2213_v55, %v6104_v61  ;;  %vm2215_vm2 = vcmp.eq.f32.partialorder %v6104_v61, inf  ;;  %v1725_v16 = vmul.f32 %v3484_v60, %v1724_v20 }
 0x396   : > { %v2723_v40 = vsel %vm2721_vm1, %v2722_v44, %v2720_v56  ;;  %vm1728_vm3 = vweird.f32 %v3484_v60  ;;  %v1731_v22 = vand.u32 2147483647, %v6372_v36  ;;  %vm2217_vm5 = vcmp.eq.f32.partialorder %v6104_v61, 0.0 }
 0x397   : > { %v2830_v13 = vsel %vm6818_vm4, %v2723_v40, %v2571_v47  ;;  %vm1996_vm8 = vweird.f32 %v6306_v29  ;;  %v2002_v57 = vand.u32 2147483648, %v6306_v29  ;;  %v2218_v43 = vand.u32 2147483648, %v6104_v61 }
 0x398   : > { %v3024_v15 = vpack.c.bf16 %v2830_v13, %v2829_v39  ;;  %v1471_v54 = vmul.f32 0.5, %v1470_v7  ;;  %v3488_v38 = vpop.eup %3487  ;;  %v1726_v52 = vadd.f32 %v3484_v60, %v1725_v16  ;;  %vm1727_vm6 = vweird.f32 %v6372_v36 }
 0x399   : > { %v1995_v4 = vadd.f32 %v6377_v2, %v1994_v59  ;;  %vm1997_vm7 = vweird.f32 %v6377_v2  ;;  %v2474_v0 = vmul.f32 %v3488_v38, %v6422_v23  ;;  %vm1729_vm9 = vmor %vm1727_vm6, %vm1728_vm3  ;;  %v1734_v25 = vor.u32 1.1754944e-38, %v1733_v42 }
 0x39a   : > { %3048 = vst [vmem:[%s5523_s20 + $0x18] sm:$0xff] %v3024_v15   ;;  %v2216_v58 = vsel %vm2215_vm2, %v6104_v61, %v2214_v18  ;;  %v1472_v49 = vsub.f32 1.5, %v1471_v54  ;;  %v2534_v6 = vmul.f32 %v6441_v26, %v6399_v28  ;;  %v1730_v46 = vsel %vm1729_vm9, %v3484_v60, %v1726_v52  ;;  %vm6464_vm11 = vmor %vm1996_vm8, %vm1997_vm7 }
 0x39b   : > { %vm1732_vm10 = vcmp.eq.f32.partialorder %v1731_v22, 8.507059e+37  ;;  %v2000_v21 = vand.u32 2147483647, %v6306_v29  ;;  %v2475_v35 = vsub.f32 1.0, %v2474_v0  ;;  %v2003_v3 = vor.u32 1.1754944e-38, %v2002_v57 }
 0x39c   : > { %v1735_v24 = vsel %vm1732_vm10, %v1734_v25, %v1730_v46  ;;  %v1473_v62 = vmul.f32 %v3482_v1, %v1472_v49  ;;  %v2484_v5 = vand.u32 2147483648, %v6422_v23  ;;  %v1999_v60 = vsel %vm6464_vm11, %v6377_v2, %v1995_v4 }
 0x39d   : > { %v1777_v27 = vsub.f32 %v6372_v36, %v1735_v24  ;;  %v2219_v14 = vsel %vm2217_vm5, %v2218_v43, %v2216_v58  ;;  %v2476_v44 = vmul.f32 %v3488_v38, %v2475_v35  ;;  %vm2479_vm12 = vweird.f32 %v3488_v38 }
 0x39e   : > { %v2482_v29 = vand.u32 2147483647, %v6422_v23  ;;  %v1474_v55 = vmul.f32 %v1473_v62, %v6358_v41  ;;  %vm1475_vm13 = vcmp.eq.f32.partialorder %v6358_v41, inf  ;;  %v1478_v1 = vand.u32 2147483648, %v6358_v41 }
 0x39f   : > { %v6477_v53 = vmul.f32 0.5, %v1777_v27  ;;  %3489 = vrsqrt.f32 %v6323_v34  ;;  %v2477_v36 = vadd.f32 %v3488_v38, %v2476_v44  ;;  %vm2478_vm15 = vweird.f32 %v6422_v23 }
 0x3a0   : > { %v1476_v61 = vsel %vm1475_vm13, %v6358_v41, %v1474_v55  ;;  %vm1477_vm0 = vcmp.eq.f32.partialorder %v6358_v41, 0.0  ;;  %vm2480_vm1 = vmor %vm2478_vm15, %vm2479_vm12  ;;  %v2485_v2 = vor.u32 1.1754944e-38, %v2484_v5  ;;  %vm2001_vm14 = vcmp.eq.f32.partialorder %v2000_v21, 8.507059e+37  ;;  %v6821_v21 = vld [vmem:[#allocation9_spill] sm:$0xff] }
 0x3a1   : > { %v2257_v47 = vmul.f32 %v2219_v14, %v6477_v53  ;;  %v6486_v56 = vsel %vm1477_vm0, %v1478_v1, %v1476_v61  ;;  %v2481_v40 = vsel %vm2480_vm1, %v3488_v38, %v2477_v36  ;;  %vm2483_vm4 = vcmp.eq.f32.partialorder %v2482_v29, 8.507059e+37 }
 0x3a2   : > { %v6488_v20 = vsel %vm2001_vm14, %v2003_v3, %v1999_v60  ;;  %v1506_v39 = vmin.f32 %v6486_v56, 50.0  ;;  %3491 = vrsqrt.f32 %v6433_v9  ;;  %v2486_v23 = vsel %vm2483_vm4, %v2485_v2, %v2481_v40 }
 0x3a3   : > { %v6493_v13 = vmul.f32 %v2257_v47, %v6488_v20  ;;  %v2753_v41 = vmul.f32 %v6211_v45, %v2752_v8  ;;  %v2535_v59 = vsub.f32 1.0, %v2534_v6  ;;  %v2487_v7 = vmul.f32 1000.0, %v2486_v23 }
 0x3a4   : > { %v1536_v15 = vmul.f32 1.442695, %v1506_v39  ;;  %vm2287_vm2 = vcmp.gt.f32.partialorder %v6413_v33, 1000.0  ;;  %v1960_v54 = vmul.f32 %v5788_v19, %v5790_v51  ;;  %vm2755_vm3 = vcmp.eq.f32.partialorder %v6146_v50, inf }
 0x3a5   : > { %v6498_v42 = vpop.eup %3489  ;;  %v2305_v18 = vmax.f32 %v6493_v13, 1e-07  ;;  %v6502_v16 = vsel %vm2287_vm2, %v2487_v7, 1.0  ;;  %v2754_v12 = vmul.f32 %v2753_v41, %v6146_v50  ;;  %v2536_v45 = vmul.f32 %v6441_v26, %v2535_v59  ;;  %v6825_v7 = vld [vmem:[#allocation13_spill] sm:$0xff] }
 0x3a6   : > { %3493 = vpow2.f32 %v1536_v15  ;;  %v2591_v22 = vmul.f32 %v6502_v16, %v6413_v33  ;;  %v2221_v8 = vmul.f32 %v6498_v42, %v6323_v34  ;;  %vm2539_vm5 = vweird.f32 %v6441_v26 }
 0x3a7   : > { %3495 = vrcp.f32 %v2305_v18  ;;  %v2756_v52 = vsel %vm2755_vm3, %v6146_v50, %v2754_v12  ;;  %v2537_v4 = vadd.f32 %v6441_v26, %v2536_v45  ;;  %v2542_v58 = vand.u32 2147483647, %v6399_v28 }
 0x3a8   : > { %v6510_v57 = vpop.eup %3491  ;;  %v2607_v43 = vmul.f32 %v2591_v22, %v2591_v22  ;;  %3497 = vrcp.f32 %v6486_v56  ;;  %v2222_v0 = vmul.f32 %v6498_v42, %v2221_v8  ;;  %v2544_v49 = vand.u32 2147483648, %v6399_v28 }
 0x3a9   : > { %v2773_v19 = vmul.f32 %v6510_v57, %v6433_v9  ;;  %v2758_v51 = vand.u32 2147483648, %v6146_v50  ;;  %vm2538_vm8 = vweird.f32 %v6399_v28  ;;  %v2046_v35 = vmul.f32 %v1960_v54, %v6821_v21 }
 0x3aa   : > { %v6516_v38 = vadd.f32 1.0, %v2607_v43  ;;  %vm2757_vm6 = vcmp.eq.f32.partialorder %v6146_v50, 0.0  ;;  %vm6536_vm7 = vmor %vm2538_vm8, %vm2539_vm5  ;;  %v2223_v28 = vmul.f32 0.5, %v2222_v0  ;;  %vm2543_vm9 = vcmp.eq.f32.partialorder %v2542_v58, 8.507059e+37 }
 0x3ab   : > { %v2759_v10 = vsel %vm2757_vm6, %v2758_v51, %v2756_v52  ;;  %v2541_v3 = vsel %vm6536_vm7, %v6441_v26, %v2537_v4  ;;  %v2545_v5 = vor.u32 1.1754944e-38, %v2544_v49  ;;  %v2514_v27 = vand.u32 2147483648, %v2305_v18 }
 0x3ac   : > { %v6518_v33 = vpop.eup %3493  ;;  %3499 = vrsqrt.f32 %v6516_v38  ;;  %v2774_v60 = vmul.f32 %v6510_v57, %v2773_v19  ;;  %v2512_v44 = vand.u32 2147483647, %v2305_v18  ;;  %v2574_v55 = vmul.f32 %v6037_v17, %v2046_v35 }
 0x3ad   : > { %v3496_v25 = vpop.eup %3495  ;;  %3501 = vrcp.f32 %v6518_v33  ;;  %v2546_v1 = vsel %vm2543_vm9, %v2545_v5, %v2541_v3  ;;  %v1975_v26 = vmul.f32 %v6407_v48, %v6391_v30  ;;  %vm2508_vm11 = vweird.f32 %v2305_v18 }
 0x3ae   : > { %v2504_v6 = vmul.f32 %v3496_v25, %v2305_v18  ;;  %v6532_v46 = vpop.eup %3497  ;;  %vm2509_vm10 = vweird.f32 %v3496_v25  ;;  %v2224_v47 = vsub.f32 1.5, %v2223_v28  ;;  %vm6824_vm12 = vcmp.eq.s32.totalorder %v5243_v11, 0 }
 0x3af   : > { %v2007_v50 = vmul.f32 %v6532_v46, %v6486_v56  ;;  %v6552_v40 = vsel %vm6824_vm12, %v2759_v10, %v2574_v55  ;;  %vm2510_vm13 = vmor %vm2508_vm11, %vm2509_vm10  ;;  %v2515_v39 = vor.u32 1.1754944e-38, %v2514_v27  ;;  %v6554_v23 = vmul.f32 0.5, %v2774_v60 }
 0x3b0   : > { %v2505_v62 = vsub.f32 1.0, %v2504_v6  ;;  %vm2513_vm15 = vcmp.eq.f32.partialorder %v2512_v44, 8.507059e+37  ;;  %v2547_v48 = vmul.f32 1000.0, %v2546_v1  ;;  %v2047_v15 = vmul.f32 %v1975_v26, %v6825_v7  ;;  %vm6826_vm11 = vmmov %vm6824_vm12 }
 0x3b1   : > { %v2008_v30 = vsub.f32 1.0, %v2007_v50  ;;  %v1747_v8 = vand.u32 2147483648, %v6518_v33  ;;  %v2225_v43 = vmul.f32 %v6498_v42, %v2224_v47  ;;  %vm2289_vm0 = vcmp.gt.f32.partialorder %v6493_v13, 1000.0 }
 0x3b2   : > { %v2506_v14 = vmul.f32 %v3496_v25, %v2505_v62  ;;  %v3500_v29 = vpop.eup %3499  ;;  %v1745_v52 = vand.u32 2147483647, %v6518_v33  ;;  %vm2227_vm14 = vcmp.eq.f32.partialorder %v6323_v34, inf  ;;  %vm1741_vm4 = vweird.f32 %v6518_v33 }
 0x3b3   : > { %v3502_v36 = vpop.eup %3501  ;;  %v2761_v61 = vmul.f32 %v3500_v29, %v6516_v38  ;;  %vm2011_vm2 = vweird.f32 %v6486_v56  ;;  %v1748_v19 = vor.u32 1.1754944e-38, %v1747_v8  ;;  %v2015_v51 = vand.u32 2147483647, %v6486_v56 }
 0x3b4   : > { %v2507_v2 = vadd.f32 %v3496_v25, %v2506_v14  ;;  %v1737_v17 = vmul.f32 %v3502_v36, %v6518_v33  ;;  %vm1742_vm1 = vweird.f32 %v3502_v36  ;;  %v2226_v6 = vmul.f32 %v2225_v43, %v6323_v34 }
 0x3b5   : > { %v2762_v41 = vmul.f32 %v3500_v29, %v2761_v61  ;;  %vm1743_vm3 = vmor %vm1741_vm4, %vm1742_vm1  ;;  %vm1746_vm5 = vcmp.eq.f32.partialorder %v1745_v52, 8.507059e+37  ;;  %v2017_v24 = vand.u32 2147483648, %v6486_v56  ;;  %vm2012_vm8 = vweird.f32 %v6532_v46 }
 0x3b6   : > { %v2511_v59 = vsel %vm2510_vm13, %v3496_v25, %v2507_v2  ;;  %v1738_v18 = vsub.f32 1.0, %v1737_v17  ;;  %v2009_v25 = vmul.f32 %v6532_v46, %v2008_v30  ;;  %vm2767_vm6 = vcmp.eq.f32.partialorder %v6516_v38, inf  ;;  %vm2013_vm10 = vmor %vm2011_vm2, %vm2012_vm8 }
 0x3b7   : > { %v2516_v22 = vsel %vm2513_vm15, %v2515_v39, %v2511_v59  ;;  %v2763_v12 = vmul.f32 0.5, %v2762_v41  ;;  %v2770_v62 = vand.u32 2147483648, %v6516_v38  ;;  %v2575_v27 = vmul.f32 %v6502_v16, %v2047_v15  ;;  %v6828_v59 = vld [vmem:[#allocation15_spill] sm:$0xff]  ;;  %vm6831_vm2 = vmmov %vm6826_vm11 }
 0x3b8   : > { %v2517_v45 = vmul.f32 1000.0, %v2516_v22  ;;  %v1739_v54 = vmul.f32 %v3502_v36, %v1738_v18  ;;  %v2010_v3 = vadd.f32 %v6532_v46, %v2009_v25  ;;  %vm2769_vm7 = vcmp.eq.f32.partialorder %v6516_v38, 0.0  ;;  %v6829_v18 = vld [vmem:[#allocation8_spill] sm:$0xff] }
 0x3b9   : > { %v2764_v4 = vsub.f32 1.5, %v2763_v12  ;;  %v2228_v14 = vsel %vm2227_vm14, %v6323_v34, %v2226_v6  ;;  %vm2291_vm9 = vcmp.gt.f32.partialorder %v6368_v63, 1000.0  ;;  %vm2229_vm12 = vcmp.eq.f32.partialorder %v6323_v34, 0.0 }
 0x3ba   : > { %v6562_v0 = vsel %vm2289_vm0, %v2517_v45, 1.0  ;;  %v1740_v49 = vadd.f32 %v3502_v36, %v1739_v54  ;;  %v2018_v1 = vor.u32 1.1754944e-38, %v2017_v24  ;;  %v2776_v56 = vsub.f32 1.5, %v6554_v23  ;;  %v6827_v23 = vld [vmem:[#allocation14_spill] sm:$0xff] }
 0x3bb   : > { %v2593_v58 = vmul.f32 %v6562_v0, %v6493_v13  ;;  %v2765_v42 = vmul.f32 %v3500_v29, %v2764_v4  ;;  %v6595_v29 = vsel %vm2291_vm9, %v2547_v48, 1.0  ;;  %vm2016_vm13 = vcmp.eq.f32.partialorder %v2015_v51, 8.507059e+37  ;;  %v6830_v4 = vld [vmem:[#allocation10_spill] sm:$0xff] }
 0x3bc   : > { %v1744_v35 = vsel %vm1743_vm3, %v3502_v36, %v1740_v49  ;;  %v2595_v2 = vmul.f32 %v6595_v29, %v6368_v63  ;;  %v2777_v47 = vmul.f32 %v6510_v57, %v2776_v56  ;;  %v1990_v30 = vmul.f32 %v6828_v59, %v6827_v23  ;;  %vm6832_vm3 = vmmov %vm6831_vm2 }
 0x3bd   : > { %v2609_v21 = vmul.f32 %v2593_v58, %v2593_v58  ;;  %v2766_v10 = vmul.f32 %v2765_v42, %v6516_v38  ;;  %v1749_v13 = vsel %vm1746_vm5, %v1748_v19, %v1744_v35  ;;  %v2005_v63 = vmul.f32 %v6488_v20, %v6477_v53 }
 0x3be   : > { %v1778_v5 = vsub.f32 %v6518_v33, %v1749_v13  ;;  %v2230_v33 = vand.u32 2147483648, %v6323_v34  ;;  %v2611_v17 = vmul.f32 %v2595_v2, %v2595_v2  ;;  %v2778_v48 = vmul.f32 %v2777_v47, %v6433_v9 }
 0x3bf   : > { %v2625_v28 = vadd.f32 1.0, %v2609_v21  ;;  %v2768_v60 = vsel %vm2767_vm6, %v6516_v38, %v2766_v10  ;;  %v2014_v38 = vsel %vm2013_vm10, %v6532_v46, %v2010_v3  ;;  %v2048_v12 = vmul.f32 %v1990_v30, %v6829_v18 }
 0x3c0   : > { %v2771_v44 = vsel %vm2769_vm7, %v2770_v62, %v2768_v60  ;;  %v6591_v50 = vmul.f32 0.5, %v1778_v5  ;;  %v2231_v26 = vsel %vm2229_vm12, %v2230_v33, %v2228_v14  ;;  %v6601_v61 = vsel %vm2016_vm13, %v2018_v1, %v2014_v38  ;;  %vm6835_vm13 = vmmov %vm6831_vm2 }
 0x3c1   : > { %3503 = vrsqrt.f32 %v2625_v28  ;;  %v2834_v16 = vsel %vm6826_vm11, %v2771_v44, %v2575_v27  ;;  %v6610_v15 = vadd.f32 1.0, %v2611_v17  ;;  %vm2779_vm15 = vcmp.eq.f32.partialorder %v6433_v9, inf }
 0x3c2   : > { %v3034_v55 = vpack.c.bf16 %v2834_v16, %v6552_v40  ;;  %v2258_v36 = vmul.f32 %v2231_v26, %v6591_v50  ;;  %v2780_v45 = vsel %vm2779_vm15, %v6433_v9, %v2778_v48  ;;  %v2576_v43 = vmul.f32 %v6175_v37, %v2048_v12  ;;  %vm6836_vm15 = vmmov %vm6831_vm2 }
 0x3c3   : > { %v2782_v54 = vand.u32 2147483648, %v6433_v9  ;;  %v2049_v25 = vmul.f32 %v2005_v63, %v6830_v4  ;;  %vm2781_vm0 = vcmp.eq.f32.partialorder %v6433_v9, 0.0  ;;  %vm2791_vm1 = vcmp.eq.f32.partialorder %v2625_v28, inf }
 0x3c4   : > { %3050 = vst [vmem:[%s5523_s20 + $0x28] sm:$0xff] %v3034_v55   ;;  %v2274_v46 = vmul.f32 %v2258_v36, %v6601_v61  ;;  %v2794_v58 = vand.u32 2147483648, %v2625_v28  ;;  %vm2793_vm14 = vcmp.eq.f32.partialorder %v2625_v28, 0.0  ;;  %vm2815_vm9 = vcmp.eq.f32.partialorder %v6610_v15, inf }
 0x3c5   : > { %v2783_v20 = vsel %vm2781_vm0, %v2782_v54, %v2780_v45  ;;  %v2577_v42 = vmul.f32 %v6562_v0, %v2049_v25  ;;  %v2818_v17 = vand.u32 2147483648, %v6610_v15  ;;  %vm2817_vm10 = vcmp.eq.f32.partialorder %v6610_v15, 0.0 }
 0x3c6   : > { %v2306_v40 = vmax.f32 %v2274_v46, 1e-07  ;;  %v2835_v35 = vsel %vm6831_vm2, %v2783_v20, %v2576_v43  ;;  %vm2290_vm7 = vcmp.gt.f32.partialorder %v2274_v46, 1000.0 }
 0x3c7   : > { %v3504_v34 = vpop.eup %3503 }
 0x3c8   : > { %v2785_v39 = vmul.f32 %v3504_v34, %v2625_v28  ;;  %3505 = vrcp.f32 %v2306_v40  ;;  %v2529_v37 = vand.u32 2147483648, %v2306_v40  ;;  %v2527_v21 = vand.u32 2147483647, %v2306_v40 }
 0x3c9   : > { %3507 = vrsqrt.f32 %v6610_v15  ;;  %vm2523_vm5 = vweird.f32 %v2306_v40 }
 0x3ca   : > { %v2786_v41 = vmul.f32 %v3504_v34, %v2785_v39  ;;  %v2530_v0 = vor.u32 1.1754944e-38, %v2529_v37  ;;  %vm2528_vm6 = vcmp.eq.f32.partialorder %v2527_v21, 8.507059e+37 }
 0x3cc   : > { %v2787_v7 = vmul.f32 0.5, %v2786_v41  ;;  %v6833_v41 = vld [vmem:[#allocation12_spill] sm:$0xff] }
 0x3ce   : > { %v2788_v22 = vsub.f32 1.5, %v2787_v7  ;;  %v3506_v57 = vpop.eup %3505 }
 0x3cf   : > { %v2519_v52 = vmul.f32 %v3506_v57, %v2306_v40  ;;  %vm2524_vm4 = vweird.f32 %v3506_v57  ;;  %v3508_v13 = vpop.eup %3507 }
 0x3d0   : > { %v2789_v8 = vmul.f32 %v3504_v34, %v2788_v22  ;;  %vm2525_vm8 = vmor %vm2523_vm5, %vm2524_vm4  ;;  %v2035_v34 = vmul.f32 %v6355_v32, %v6331_v31  ;;  %v6834_v31 = vld [vmem:[#allocation11_spill] sm:$0xff] }
 0x3d1   : > { %v2520_v49 = vsub.f32 1.0, %v2519_v52 }
 0x3d2   : > { %v2790_v53 = vmul.f32 %v2789_v8, %v2625_v28  ;;  %v2051_v23 = vmul.f32 %v2035_v34, %v6833_v41 }
 0x3d3   : > { %v2521_v6 = vmul.f32 %v3506_v57, %v2520_v49 }
 0x3d4   : > { %v2792_v19 = vsel %vm2791_vm1, %v2625_v28, %v2790_v53  ;;  %v2809_v28 = vmul.f32 %v3508_v13, %v6610_v15  ;;  %v2579_v30 = vmul.f32 %v6595_v29, %v2051_v23 }
 0x3d5   : > { %v2795_v51 = vsel %vm2793_vm14, %v2794_v58, %v2792_v19  ;;  %v2522_v10 = vadd.f32 %v3506_v57, %v2521_v6 }
 0x3d6   : > { %v2836_v9 = vsel %vm6832_vm3, %v2795_v51, %v2577_v42  ;;  %v2810_v14 = vmul.f32 %v3508_v13, %v2809_v28 }
 0x3d7   : > { %v3039_v24 = vpack.c.bf16 %v2836_v9, %v2835_v35  ;;  %v2526_v3 = vsel %vm2525_vm8, %v3506_v57, %v2522_v10 }
 0x3d8   : > { %v2531_v62 = vsel %vm2528_vm6, %v2530_v0, %v2526_v3  ;;  %v2811_v16 = vmul.f32 0.5, %v2810_v14 }
 0x3d9   : > { %3051 = vst [vmem:[%s5523_s20 + $0x30] sm:$0xff] %v3039_v24   ;;  %v2532_v5 = vmul.f32 1000.0, %v2531_v62 }
 0x3da   : > { %v2812_v38 = vsub.f32 1.5, %v2811_v16 }
 0x3db   : > { %v2562_v27 = vsel %vm2290_vm7, %v2532_v5, 1.0 }
 0x3dc   : > { %v2594_v60 = vmul.f32 %v2562_v27, %v2274_v46  ;;  %v2813_v1 = vmul.f32 %v3508_v13, %v2812_v38  ;;  %v2020_v46 = vmul.f32 %v6601_v61, %v6591_v50 }
 0x3de   : > { %v2610_v44 = vmul.f32 %v2594_v60, %v2594_v60  ;;  %v2814_v36 = vmul.f32 %v2813_v1, %v6610_v15  ;;  %v2050_v32 = vmul.f32 %v2020_v46, %v6834_v31 }
 0x3e0   : > { %v2626_v33 = vadd.f32 1.0, %v2610_v44  ;;  %v2816_v39 = vsel %vm2815_vm9, %v6610_v15, %v2814_v36  ;;  %v2578_v48 = vmul.f32 %v2562_v27, %v2050_v32 }
 0x3e1   : > { %v2819_v50 = vsel %vm2817_vm10, %v2818_v17, %v2816_v39 }
 0x3e2   : > { %3509 = vrsqrt.f32 %v2626_v33  ;;  %vm2803_vm11 = vcmp.eq.f32.partialorder %v2626_v33, inf  ;;  %v2806_v61 = vand.u32 2147483648, %v2626_v33  ;;  %vm2805_vm12 = vcmp.eq.f32.partialorder %v2626_v33, 0.0 }
 0x3e3   : > { %v2838_v15 = vsel %vm6835_vm13, %v2819_v50, %v2579_v30 }
 0x3e8   : > { %v3510_v55 = vpop.eup %3509 }
 0x3e9   : > { %v2797_v26 = vmul.f32 %v3510_v55, %v2626_v33 }
 0x3eb   : > { %v2798_v56 = vmul.f32 %v3510_v55, %v2797_v26 }
 0x3ed   : > { %v2799_v2 = vmul.f32 0.5, %v2798_v56 }
 0x3ef   : > { %v2800_v47 = vsub.f32 1.5, %v2799_v2 }
 0x3f1   : > { %v2801_v40 = vmul.f32 %v3510_v55, %v2800_v47 }
 0x3f3   : > { %v2802_v59 = vmul.f32 %v2801_v40, %v2626_v33 }
 0x3f5   : > { %v2804_v7 = vsel %vm2803_vm11, %v2626_v33, %v2802_v59 }
 0x3f6   : > { %v2807_v63 = vsel %vm2805_vm12, %v2806_v61, %v2804_v7 }
 0x3f7   : > { %v2837_v22 = vsel %vm6836_vm15, %v2807_v63, %v2578_v48 }
 0x3f8   : > { %v3044_v18 = vpack.c.bf16 %v2838_v15, %v2837_v22 }
 0x3fa   : > { %3052 = vst [vmem:[%s5523_s20 + $0x38] sm:$0xff] %v3044_v18  }
 0x3fb   : > { %3584 = shalt.err (!%p3581_p8)
}
 0x3fc   : > { %s3629_s10 = smov 64   ;;  %s3630_s11 = smov 4  }
 0x3fd   : > { %3105 = dma.vmem_to_hbm [thread:$0]  (%p3689_p5), %s2885_s16, 1024, %s2887_s28, %s2872_s29, %s3629_s10, %s3629_s10, %s3630_s11  }
 0x3fe PF: > { %p3117_p9 = scmp.ge.s32.totalorder %s3623_s15, 2  ;;  %s2901_s17 = sand.u32 1, %s3611_s12  }
 0x3ff   : > { %s2902_s19 = scalar_lea.sflag [#allocation4], %s2901_s17 }
 0x400   : > { %p3112_p10 = pnand %p3117_p9, %p3693_p6 }
 0x402   : > { %p3113_p11 = pneg %p3112_p10 }
 0x404   : > { %3606 = dma.done.wait (%p3113_p11), %s2902_s19, 1024  }
 0x405   : > { %3608 = vsyncadd (%p3113_p11), %s2902_s19, 4294966272  ;;  %p14_p12 = scmp.ge.s32.totalorder %s3676_s18, 5   ;;  %s6837_s12 = smov %s3615_s13 }
 0x406   : > { %s6838_s13 = smov %s3619_s14  ;;  %s6839_s14 = smov %s3687_s21 }
 0x407   : > { %s6840_s15 = smov %s3676_s18  ;;  %16 = sbr.rel (!%p14_p12) target bundleno = 4 (0x4), region = 75 }
 0x40c   :  { %2908 = vsyncpa [#allocation3], 1 }
 0x40d   :  { %2910 = vsyncpa [#allocation3 + $0x1], 1 }
 0x40e   :  { %2911 = vsyncpa [#allocation4], 1 }
 0x40f   :  { %2913 = vsyncpa [#allocation4 + $0x1], 1 }

</bundles_post_ra>
